<compile_context>
chip_gen: v7x
topology: tpu7x:2x2x1
jax: 0.10.0
libtpu: 0.0.40
codegen_flags: <defaults>
</compile_context>

<pallas_src>
import math
import jax
import jax.numpy as jnp
from jax import lax
from jax.experimental import pallas as pl
from jax.experimental.pallas import tpu as pltpu


# ----------------------------------------------------------------------------
# Fused Pallas kernel: fc projections + both relation branches + grouped conv
# ----------------------------------------------------------------------------
def _fused_relation_kernel(feat_ref, ctx_ref,
                           wgt_ref, bgt_ref, wctx_ref, bctx_ref,
                           pos_gc_ref, pos_cg_ref,
                           wc_ref, bc_ref,
                           gt_out_ref, ctx_out_ref,
                           sgc_ref, scg_ref):
    """One grid step handles GC = num_group / num_split groups end-to-end."""
    M = feat_ref.shape[0]
    N = ctx_ref.shape[0]
    GC, Dk, NF = wc_ref.shape
    w_dtype = wgt_ref.dtype

    feat = feat_ref[...]                      # (M, NF)  f32
    ctx = ctx_ref[...]                        # (N, NF)  f32

    # fc_gt / fc_ctx restricted to this step's groups (bf16 MXU inputs, f32 acc).
    # The 1/sqrt(Dk) score scale is pre-folded into wgt/bgt at init.
    gt_data = jnp.dot(feat.astype(w_dtype), wgt_ref[...],
                      preferred_element_type=jnp.float32) + bgt_ref[...]     # (M, GC*Dk)
    ctx_data = jnp.dot(ctx.astype(w_dtype), wctx_ref[...],
                       preferred_element_type=jnp.float32) + bctx_ref[...]   # (N, GC*Dk)

    # Per-group QK^T; the ctx<-gt score block is the transpose of the gt<-ctx one
    # (torch: ctx_gt = gt_ctx.permute(0,2,1)).  Stack group-major into VMEM scratch.
    for g in range(GC):
        qg = gt_data[:, g * Dk:(g + 1) * Dk]              # (M, Dk), scale folded in
        kg = ctx_data[:, g * Dk:(g + 1) * Dk]             # (N, Dk)
        sg = lax.dot_general(qg, kg, (((1,), (1,)), ((), ())),
                             preferred_element_type=jnp.float32)             # (M, N)
        sgc_ref[g * M:(g + 1) * M, :] = sg
        scg_ref[g * N:(g + 1) * N, :] = sg.T

    def _softmax(logits):
        logits = logits - jnp.max(logits, axis=-1, keepdims=True)
        p = jnp.exp(logits)
        return p / jnp.sum(p, axis=-1, keepdims=True)      # exact divide (parity)

    # log(clamp(pos, 1e-6)) + scores, softmax over the key axis (exact torch semantics).
    w_gc = _softmax(jnp.log(jnp.maximum(pos_gc_ref[...], 1e-6)) + sgc_ref[...])   # (GC*M, N)
    w_cg = _softmax(jnp.log(jnp.maximum(pos_cg_ref[...], 1e-6)) + scg_ref[...])   # (GC*N, M)

    # Stacked attention readout: one wide MXU dot per branch.
    a_gt = jnp.dot(w_gc, ctx, preferred_element_type=jnp.float32)    # (GC*M, NF)
    a_ctx = jnp.dot(w_cg, feat, preferred_element_type=jnp.float32)  # (GC*N, NF)

    # Grouped 1x1 conv (torch forward routes BOTH branches through gt_ctx_linear_out;
    # kept intentionally).  Assemble all GC group outputs, then ONE full-width
    # lane-dense store per branch.
    gt_parts, ctx_parts = [], []
    for g in range(GC):
        wg = wc_ref[g]                                     # (Dk, NF)
        gt_parts.append(lax.dot_general(
            a_gt[g * M:(g + 1) * M, :].astype(w_dtype), wg,
            (((1,), (1,)), ((), ())), preferred_element_type=jnp.float32))   # (M, Dk)
        ctx_parts.append(lax.dot_general(
            a_ctx[g * N:(g + 1) * N, :].astype(w_dtype), wg,
            (((1,), (1,)), ((), ())), preferred_element_type=jnp.float32))   # (N, Dk)
    gt_out_ref[...] = jnp.concatenate(gt_parts, axis=1) + bc_ref[...]        # (M, GC*Dk)
    ctx_out_ref[...] = jnp.concatenate(ctx_parts, axis=1) + bc_ref[...]      # (N, GC*Dk)


def fused_relation_forward(feat, ctx_feat, pos_gc, pos_cg,
                           w_gt_t, b_gt, w_ctx_t, b_ctx, wc, bc,
                           *, num_split=4):
    """
    feat:    (M, NF) f32    ctx_feat: (N, NF) f32
    pos_gc:  (G*M, N) f32   group-major position bias, gt <- ctx branch
    pos_cg:  (G*N, M) f32   group-major position bias, ctx <- gt branch
    w_gt_t:  (NF, NF)       fc_gt weight, pre-transposed (in, out), 1/sqrt(Dk) folded
    w_ctx_t: (NF, NF)       fc_ctx weight, pre-transposed (in, out)
    wc:      (G, Dk, NF)    grouped 1x1 conv weight (lane-dense layout)
    bc:      (1, NF) f32    grouped 1x1 conv bias
    returns  (M, NF) f32, (N, NF) f32
    """
    M, NF = feat.shape
    N = ctx_feat.shape[0]
    G, Dk, _ = wc.shape
    assert G % num_split == 0
    GC = G // num_split
    CL = GC * Dk                                   # output lanes per step
    assert CL % 128 == 0, "per-step output block must be lane-dense"

    vmem_limit = (16 << 20) if wc.dtype == jnp.bfloat16 else (32 << 20)

    return pl.pallas_call(
        _fused_relation_kernel,
        out_shape=(jax.ShapeDtypeStruct((M, NF), jnp.float32),
                   jax.ShapeDtypeStruct((N, NF), jnp.float32)),
        grid=(num_split,),
        in_specs=[
            pl.BlockSpec((M, NF), lambda c: (0, 0)),          # feat
            pl.BlockSpec((N, NF), lambda c: (0, 0)),          # ctx_feat
            pl.BlockSpec((NF, CL), lambda c: (0, c)),         # fc_gt weight slice
            pl.BlockSpec((1, CL), lambda c: (0, c)),          # fc_gt bias slice
            pl.BlockSpec((NF, CL), lambda c: (0, c)),         # fc_ctx weight slice
            pl.BlockSpec((1, CL), lambda c: (0, c)),          # fc_ctx bias slice
            pl.BlockSpec((GC * M, N), lambda c: (c, 0)),      # pos bias gt<-ctx
            pl.BlockSpec((GC * N, M), lambda c: (c, 0)),      # pos bias ctx<-gt
            pl.BlockSpec((GC, Dk, NF), lambda c: (c, 0, 0)),  # grouped conv weight
            pl.BlockSpec((1, CL), lambda c: (0, c)),          # grouped conv bias slice
        ],
        out_specs=(
            pl.BlockSpec((M, CL), lambda c: (0, c)),          # gt_out lane block
            pl.BlockSpec((N, CL), lambda c: (0, c)),          # ctx_out lane block
        ),
        scratch_shapes=[
            pltpu.VMEM((GC * M, N), jnp.float32),             # stacked gt<-ctx scores
            pltpu.VMEM((GC * N, M), jnp.float32),             # stacked ctx<-gt scores
        ],
        compiler_params=pltpu.CompilerParams(
            dimension_semantics=("parallel",),                # v7x: 2 TCs, 2 steps each
            vmem_limit_bytes=vmem_limit,
        ),
    )(feat, ctx_feat, w_gt_t, b_gt, w_ctx_t, b_ctx, pos_gc, pos_cg, wc, bc)


# ----------------------------------------------------------------------------
# Plain-JAX glue: position sin/cos embedding (tiny, exact torch semantics)
# ----------------------------------------------------------------------------
def position_embedding(box, ctx_box, feat_dim=64, wave_length=1000.0):
    xmin, ymin, xmax, ymax = (box[:, 0:1], box[:, 1:2], box[:, 2:3], box[:, 3:4])
    bw = xmax - xmin + 1.0
    bh = ymax - ymin + 1.0
    cx = 0.5 * (xmin + xmax)
    cy = 0.5 * (ymin + ymax)

    cxmin, cymin, cxmax, cymax = (
        ctx_box[:, 0:1], ctx_box[:, 1:2], ctx_box[:, 2:3], ctx_box[:, 3:4]
    )
    cbw = cxmax - cxmin + 1.0
    cbh = cymax - cymin + 1.0
    ccx = 0.5 * (cxmin + cxmax)
    ccy = 0.5 * (cymin + cymax)

    dx = (cx - ccx.T) / bw
    dx = jnp.log(jnp.maximum(jnp.abs(dx), 1e-3))
    dy = (cy - ccy.T) / bh
    dy = jnp.log(jnp.maximum(jnp.abs(dy), 1e-3))
    dw = jnp.log(cbw.T / bw)
    dh = jnp.log(cbh.T / bh)

    pos_mat = jnp.stack([dx, dy, dw, dh], axis=2)                      # (M, N, 4)
    feat_range = jnp.arange(feat_dim // 8, dtype=jnp.float32)          # (8,)
    dim_mat = jnp.power(wave_length, (8.0 / feat_dim) * feat_range)
    div = (100.0 * pos_mat)[..., None] / dim_mat.reshape(1, 1, 1, -1)  # (M,N,4,8)
    emb = jnp.concatenate([jnp.sin(div), jnp.cos(div)], axis=3)        # (M,N,4,16)
    M, N = box.shape[0], ctx_box.shape[0]
    return emb.reshape(M * N, feat_dim)


# ----------------------------------------------------------------------------
# Module
# ----------------------------------------------------------------------------
class HumanObjectRelationPallas:
    def __init__(self, num_feat=1024, num_group=16, num_split=4,
                 use_bf16_weights=True, key=jax.random.PRNGKey(42)):
        self.num_feat = num_feat
        self.num_group = num_group
        self.num_split = num_split
        self.dim_k = num_feat // num_group
        w_dtype = jnp.bfloat16 if use_bf16_weights else jnp.float32
        scale = 1.0 / math.sqrt(float(self.dim_k))        # 0.125 — exact in f32/bf16
        ks = jax.random.split(key, 12)

        # fc_gt_ctx_position / fc_ctx_gt_position: Linear(64 -> num_group)
        # (tiny, evaluated in plain JAX; pre-transposed to (in, out))
        self.w_gt_ctx_pos_t = (0.01 * jax.random.normal(ks[0], (num_group, 64), jnp.float32)).T
        self.b_gt_ctx_pos = 0.01 * jax.random.normal(ks[1], (num_group,), jnp.float32)
        self.w_ctx_gt_pos_t = (0.01 * jax.random.normal(ks[2], (num_group, 64), jnp.float32)).T
        self.b_ctx_gt_pos = 0.01 * jax.random.normal(ks[3], (num_group,), jnp.float32)

        # fc_gt: Linear(1024 -> num_feat); 1/sqrt(dim_k) folded into weight+bias,
        # pre-transposed to (in, out) and stored bf16 for HBM-bandwidth.
        w_gt = 0.01 * jax.random.normal(ks[4], (num_feat, 1024), jnp.float32)   # (out, in)
        self.w_gt_t = (w_gt.T * scale).astype(w_dtype)
        self.b_gt = (scale * 0.01 * jax.random.normal(ks[5], (num_feat,), jnp.float32)
                     ).reshape(1, num_feat)
        # fc_ctx: Linear(1024 -> num_feat), pre-transposed, bf16
        w_ctx = 0.01 * jax.random.normal(ks[6], (num_feat, 1024), jnp.float32)
        self.w_ctx_t = w_ctx.T.astype(w_dtype)
        self.b_ctx = (0.01 * jax.random.normal(ks[7], (num_feat,), jnp.float32)
                      ).reshape(1, num_feat)

        # gt_ctx_linear_out: Conv2d(16384 -> num_feat, 1x1, groups=num_group),
        # stored lane-dense as (G, dim_k, 1024): wc[g, j, f] = conv_w[g*dim_k + j, f]
        self.wc_gt_ctx = (0.01 * jax.random.normal(
            ks[8], (num_group, self.dim_k, num_feat), jnp.float32)).astype(w_dtype)
        self.bc_gt_ctx = (0.01 * jax.random.normal(ks[9], (num_feat,), jnp.float32)
                          ).reshape(1, num_feat)
        # ctx_gt_linear_out exists in the torch module but is NEVER used in its
        # forward (both branches go through gt_ctx_linear_out) — kept for parity.
        self.wc_ctx_gt = (0.01 * jax.random.normal(
            ks[10], (num_group, self.dim_k, num_feat), jnp.float32)).astype(w_dtype)
        self.bc_ctx_gt = (0.01 * jax.random.normal(ks[11], (num_feat,), jnp.float32)
                          ).reshape(1, num_feat)

        self._forward = jax.jit(self._forward_impl)

    def _forward_impl(self, feat, ctx_feat, box, ctx_box):
        M = feat.shape[0]
        N = ctx_feat.shape[0]
        G = self.num_group

        # Position bias (tiny): sin/cos embedding -> relu -> Linear(64 -> G),
        # laid out group-major (G*rows, cols) to match the kernel's row stacking.
        emb_gc = jax.nn.relu(position_embedding(box, ctx_box, 64))        # (M*N, 64)
        pos_gc = emb_gc @ self.w_gt_ctx_pos_t + self.b_gt_ctx_pos         # (M*N, G)
        pos_gc = pos_gc.reshape(M, N, G).transpose(2, 0, 1).reshape(G * M, N)

        emb_cg = jax.nn.relu(position_embedding(ctx_box, box, 64))        # (N*M, 64)
        pos_cg = emb_cg @ self.w_ctx_gt_pos_t + self.b_ctx_gt_pos         # (N*M, G)
        pos_cg = pos_cg.reshape(N, M, G).transpose(2, 0, 1).reshape(G * N, M)

        return fused_relation_forward(
            feat, ctx_feat, pos_gc, pos_cg,
            self.w_gt_t, self.b_gt, self.w_ctx_t, self.b_ctx,
            self.wc_gt_ctx, self.bc_gt_ctx,
            num_split=self.num_split)

    def __call__(self, feat, ctx_feat, box, ctx_box):
        return self._forward(feat, ctx_feat, box, ctx_box)


# ----------------------------------------------------------------------------
# Driver
# ----------------------------------------------------------------------------
if __name__ == "__main__":
    key = jax.random.PRNGKey(0)
    kf, kc, kb1, kb2, kb3, kb4 = jax.random.split(key, 6)

    M, N = 8, 8   # number of gt boxes / ctx boxes (small, (8,128)-friendly)
    feat = jax.random.normal(kf, (M, 1024), jnp.float32)
    ctx_feat = jax.random.normal(kc, (N, 1024), jnp.float32)

    # corner-encoded boxes with positive width/height
    mins = jax.random.uniform(kb1, (M, 2), jnp.float32, 0.0, 50.0)
    sizes = jax.random.uniform(kb2, (M, 2), jnp.float32, 5.0, 60.0)
    box = jnp.concatenate([mins, mins + sizes], axis=1)          # (M, 4)

    cmins = jax.random.uniform(kb3, (N, 2), jnp.float32, 0.0, 50.0)
    csizes = jax.random.uniform(kb4, (N, 2), jnp.float32, 5.0, 60.0)
    ctx_box = jnp.concatenate([cmins, cmins + csizes], axis=1)   # (N, 4)

    model = HumanObjectRelationPallas(num_feat=1024, num_group=16, num_split=4,
                                      use_bf16_weights=True)
    gt_out, ctx_out = model(feat, ctx_feat, box, ctx_box)
    jax.block_until_ready((gt_out, ctx_out))

    assert gt_out.shape == (M, 1024) and ctx_out.shape == (N, 1024)
    assert bool(jnp.all(jnp.isfinite(gt_out))) and bool(jnp.all(jnp.isfinite(ctx_out)))
    print("KERNEL_OK")
</pallas_src>

<mosaic_0001>
module attributes {stable_mosaic.version = 11 : i64} {
  func.func @_fused_relation_kernel(%arg0: i32, %arg1: memref<8x1024xf32, #tpu.memory_space<vmem>>, %arg2: memref<8x1024xf32, #tpu.memory_space<vmem>>, %arg3: memref<1024x256xbf16, #tpu.memory_space<vmem>>, %arg4: memref<1x256xf32, #tpu.memory_space<vmem>>, %arg5: memref<1024x256xbf16, #tpu.memory_space<vmem>>, %arg6: memref<1x256xf32, #tpu.memory_space<vmem>>, %arg7: memref<32x8xf32, #tpu.memory_space<vmem>>, %arg8: memref<32x8xf32, #tpu.memory_space<vmem>>, %arg9: memref<4x64x1024xbf16, #tpu.memory_space<vmem>>, %arg10: memref<1x256xf32, #tpu.memory_space<vmem>>, %arg11: memref<8x256xf32, #tpu.memory_space<vmem>>, %arg12: memref<8x256xf32, #tpu.memory_space<vmem>>, %arg13: memref<32x8xf32, #tpu.memory_space<vmem>>, %arg14: memref<32x8xf32, #tpu.memory_space<vmem>>) attributes {dimension_semantics = [#tpu.dimension_semantics<parallel>], iteration_bounds = array<i64: 4>, scalar_prefetch = 0 : i64, scratch_operands = 2 : i64, tpu.core_type = #tpu.core_type<tc>, window_params = [{pipeline_mode = #tpu.pipeline_mode<synchronous>, transform_indices = @transform_0, window_bounds = array<i64: 8, 1024>}, {pipeline_mode = #tpu.pipeline_mode<synchronous>, transform_indices = @transform_1, window_bounds = array<i64: 8, 1024>}, {transform_indices = @transform_2, window_bounds = array<i64: 1024, 256>}, {transform_indices = @transform_3, window_bounds = array<i64: 1, 256>}, {transform_indices = @transform_4, window_bounds = array<i64: 1024, 256>}, {transform_indices = @transform_5, window_bounds = array<i64: 1, 256>}, {transform_indices = @transform_6, window_bounds = array<i64: 32, 8>}, {transform_indices = @transform_7, window_bounds = array<i64: 32, 8>}, {transform_indices = @transform_8, window_bounds = array<i64: 4, 64, 1024>}, {transform_indices = @transform_9, window_bounds = array<i64: 1, 256>}, {transform_indices = @transform_10, window_bounds = array<i64: 8, 256>}, {transform_indices = @transform_11, window_bounds = array<i64: 8, 256>}]} {
    %c0 = arith.constant 0 : index
    %c0_0 = arith.constant 0 : index
    %0 = vector.load %arg1[%c0, %c0_0] : memref<8x1024xf32, #tpu.memory_space<vmem>>, vector<8x1024xf32>
    %c0_1 = arith.constant 0 : index
    %c0_2 = arith.constant 0 : index
    %1 = vector.load %arg2[%c0_1, %c0_2] : memref<8x1024xf32, #tpu.memory_space<vmem>>, vector<8x1024xf32>
    %2 = arith.truncf %0 : vector<8x1024xf32> to vector<8x1024xbf16>
    %c0_3 = arith.constant 0 : index
    %c0_4 = arith.constant 0 : index
    %3 = vector.load %arg3[%c0_3, %c0_4] : memref<1024x256xbf16, #tpu.memory_space<vmem>>, vector<1024x256xbf16>
    %cst = arith.constant dense<0.000000e+00> : vector<8x256xf32>
    %4 = tpu.matmul %2, %3, %cst {dimension_numbers = #tpu.dot_dimension_numbers<[1], [0], [0], [1], [0, 0, 1, 1], [], []>} : vector<8x1024xbf16>, vector<1024x256xbf16>, vector<8x256xf32> -> vector<8x256xf32>
    %c0_5 = arith.constant 0 : index
    %c0_6 = arith.constant 0 : index
    %5 = vector.load %arg4[%c0_5, %c0_6] : memref<1x256xf32, #tpu.memory_space<vmem>>, vector<1x256xf32>
    %6 = vector.broadcast %5 : vector<1x256xf32> to vector<8x256xf32>
    %7 = arith.addf %4, %6 : vector<8x256xf32>
    %8 = arith.truncf %1 : vector<8x1024xf32> to vector<8x1024xbf16>
    %c0_7 = arith.constant 0 : index
    %c0_8 = arith.constant 0 : index
    %9 = vector.load %arg5[%c0_7, %c0_8] : memref<1024x256xbf16, #tpu.memory_space<vmem>>, vector<1024x256xbf16>
    %cst_9 = arith.constant dense<0.000000e+00> : vector<8x256xf32>
    %10 = tpu.matmul %8, %9, %cst_9 {dimension_numbers = #tpu.dot_dimension_numbers<[1], [0], [0], [1], [0, 0, 1, 1], [], []>} : vector<8x1024xbf16>, vector<1024x256xbf16>, vector<8x256xf32> -> vector<8x256xf32>
    %c0_10 = arith.constant 0 : index
    %c0_11 = arith.constant 0 : index
    %11 = vector.load %arg6[%c0_10, %c0_11] : memref<1x256xf32, #tpu.memory_space<vmem>>, vector<1x256xf32>
    %12 = vector.broadcast %11 : vector<1x256xf32> to vector<8x256xf32>
    %13 = arith.addf %10, %12 : vector<8x256xf32>
    %14 = vector.extract_strided_slice %7 {offsets = [0, 0], sizes = [8, 64], strides = [1, 1]} : vector<8x256xf32> to vector<8x64xf32>
    %15 = vector.extract_strided_slice %13 {offsets = [0, 0], sizes = [8, 64], strides = [1, 1]} : vector<8x256xf32> to vector<8x64xf32>
    %cst_12 = arith.constant dense<0.000000e+00> : vector<8x8xf32>
    %16 = tpu.matmul %14, %15, %cst_12 {dimension_numbers = #tpu.dot_dimension_numbers<[1], [1], [0], [0], [0, 0, 1, 0], [], []>} : vector<8x64xf32>, vector<8x64xf32>, vector<8x8xf32> -> vector<8x8xf32>
    %c0_13 = arith.constant 0 : index
    %c0_14 = arith.constant 0 : index
    %17 = vector.load %arg13[%c0_13, %c0_14] : memref<32x8xf32, #tpu.memory_space<vmem>>, vector<8x8xf32>
    tpu.vector_store %arg13[%c0_13, %c0_14], %16 {strides = array<i32>} : memref<32x8xf32, #tpu.memory_space<vmem>>, vector<8x8xf32>,
    %18 = tpu.transpose %16, [1, 0] : vector<8x8xf32> -> vector<8x8xf32>
    %c0_15 = arith.constant 0 : index
    %c0_16 = arith.constant 0 : index
    %19 = vector.load %arg14[%c0_15, %c0_16] : memref<32x8xf32, #tpu.memory_space<vmem>>, vector<8x8xf32>
    tpu.vector_store %arg14[%c0_15, %c0_16], %18 {strides = array<i32>} : memref<32x8xf32, #tpu.memory_space<vmem>>, vector<8x8xf32>,
    %20 = vector.extract_strided_slice %7 {offsets = [0, 64], sizes = [8, 64], strides = [1, 1]} : vector<8x256xf32> to vector<8x64xf32>
    %21 = vector.extract_strided_slice %13 {offsets = [0, 64], sizes = [8, 64], strides = [1, 1]} : vector<8x256xf32> to vector<8x64xf32>
    %cst_17 = arith.constant dense<0.000000e+00> : vector<8x8xf32>
    %22 = tpu.matmul %20, %21, %cst_17 {dimension_numbers = #tpu.dot_dimension_numbers<[1], [1], [0], [0], [0, 0, 1, 0], [], []>} : vector<8x64xf32>, vector<8x64xf32>, vector<8x8xf32> -> vector<8x8xf32>
    %c8 = arith.constant 8 : index
    %c0_18 = arith.constant 0 : index
    %23 = vector.load %arg13[%c8, %c0_18] : memref<32x8xf32, #tpu.memory_space<vmem>>, vector<8x8xf32>
    tpu.vector_store %arg13[%c8, %c0_18], %22 {strides = array<i32>} : memref<32x8xf32, #tpu.memory_space<vmem>>, vector<8x8xf32>,
    %24 = tpu.transpose %22, [1, 0] : vector<8x8xf32> -> vector<8x8xf32>
    %c8_19 = arith.constant 8 : index
    %c0_20 = arith.constant 0 : index
    %25 = vector.load %arg14[%c8_19, %c0_20] : memref<32x8xf32, #tpu.memory_space<vmem>>, vector<8x8xf32>
    tpu.vector_store %arg14[%c8_19, %c0_20], %24 {strides = array<i32>} : memref<32x8xf32, #tpu.memory_space<vmem>>, vector<8x8xf32>,
    %26 = vector.extract_strided_slice %7 {offsets = [0, 128], sizes = [8, 64], strides = [1, 1]} : vector<8x256xf32> to vector<8x64xf32>
    %27 = vector.extract_strided_slice %13 {offsets = [0, 128], sizes = [8, 64], strides = [1, 1]} : vector<8x256xf32> to vector<8x64xf32>
    %cst_21 = arith.constant dense<0.000000e+00> : vector<8x8xf32>
    %28 = tpu.matmul %26, %27, %cst_21 {dimension_numbers = #tpu.dot_dimension_numbers<[1], [1], [0], [0], [0, 0, 1, 0], [], []>} : vector<8x64xf32>, vector<8x64xf32>, vector<8x8xf32> -> vector<8x8xf32>
    %c16 = arith.constant 16 : index
    %c0_22 = arith.constant 0 : index
    %29 = vector.load %arg13[%c16, %c0_22] : memref<32x8xf32, #tpu.memory_space<vmem>>, vector<8x8xf32>
    tpu.vector_store %arg13[%c16, %c0_22], %28 {strides = array<i32>} : memref<32x8xf32, #tpu.memory_space<vmem>>, vector<8x8xf32>,
    %30 = tpu.transpose %28, [1, 0] : vector<8x8xf32> -> vector<8x8xf32>
    %c16_23 = arith.constant 16 : index
    %c0_24 = arith.constant 0 : index
    %31 = vector.load %arg14[%c16_23, %c0_24] : memref<32x8xf32, #tpu.memory_space<vmem>>, vector<8x8xf32>
    tpu.vector_store %arg14[%c16_23, %c0_24], %30 {strides = array<i32>} : memref<32x8xf32, #tpu.memory_space<vmem>>, vector<8x8xf32>,
    %32 = vector.extract_strided_slice %7 {offsets = [0, 192], sizes = [8, 64], strides = [1, 1]} : vector<8x256xf32> to vector<8x64xf32>
    %33 = vector.extract_strided_slice %13 {offsets = [0, 192], sizes = [8, 64], strides = [1, 1]} : vector<8x256xf32> to vector<8x64xf32>
    %cst_25 = arith.constant dense<0.000000e+00> : vector<8x8xf32>
    %34 = tpu.matmul %32, %33, %cst_25 {dimension_numbers = #tpu.dot_dimension_numbers<[1], [1], [0], [0], [0, 0, 1, 0], [], []>} : vector<8x64xf32>, vector<8x64xf32>, vector<8x8xf32> -> vector<8x8xf32>
    %c24 = arith.constant 24 : index
    %c0_26 = arith.constant 0 : index
    %35 = vector.load %arg13[%c24, %c0_26] : memref<32x8xf32, #tpu.memory_space<vmem>>, vector<8x8xf32>
    tpu.vector_store %arg13[%c24, %c0_26], %34 {strides = array<i32>} : memref<32x8xf32, #tpu.memory_space<vmem>>, vector<8x8xf32>,
    %36 = tpu.transpose %34, [1, 0] : vector<8x8xf32> -> vector<8x8xf32>
    %c24_27 = arith.constant 24 : index
    %c0_28 = arith.constant 0 : index
    %37 = vector.load %arg14[%c24_27, %c0_28] : memref<32x8xf32, #tpu.memory_space<vmem>>, vector<8x8xf32>
    tpu.vector_store %arg14[%c24_27, %c0_28], %36 {strides = array<i32>} : memref<32x8xf32, #tpu.memory_space<vmem>>, vector<8x8xf32>,
    %c0_29 = arith.constant 0 : index
    %c0_30 = arith.constant 0 : index
    %38 = vector.load %arg7[%c0_29, %c0_30] : memref<32x8xf32, #tpu.memory_space<vmem>>, vector<32x8xf32>
    %cst_31 = arith.constant 9.99999997E-7 : f32
    %39 = vector.broadcast %cst_31 : f32 to vector<32x8xf32>
    %40 = arith.maximumf %38, %39 : vector<32x8xf32>
    %41 = math.log %40 : vector<32x8xf32>
    %c0_32 = arith.constant 0 : index
    %c0_33 = arith.constant 0 : index
    %42 = vector.load %arg13[%c0_32, %c0_33] : memref<32x8xf32, #tpu.memory_space<vmem>>, vector<32x8xf32>
    %43 = arith.addf %41, %42 : vector<32x8xf32>
    %cst_34 = arith.constant dense<0xFF800000> : vector<32xf32>
    %44 = vector.multi_reduction <maximumf>, %43, %cst_34 [1] : vector<32x8xf32> to vector<32xf32>
    %45 = vector.shape_cast %44 : vector<32xf32> to vector<32x1xf32>
    %46 = vector.broadcast %45 : vector<32x1xf32> to vector<32x8xf32>
    %47 = arith.subf %43, %46 : vector<32x8xf32>
    %48 = math.exp %47 : vector<32x8xf32>
    %cst_35 = arith.constant dense<0.000000e+00> : vector<32xf32>
    %49 = vector.multi_reduction <add>, %48, %cst_35 [1] : vector<32x8xf32> to vector<32xf32>
    %50 = vector.shape_cast %49 : vector<32xf32> to vector<32x1xf32>
    %51 = vector.broadcast %50 : vector<32x1xf32> to vector<32x8xf32>
    %52 = arith.divf %48, %51 : vector<32x8xf32>
    %c0_36 = arith.constant 0 : index
    %c0_37 = arith.constant 0 : index
    %53 = vector.load %arg8[%c0_36, %c0_37] : memref<32x8xf32, #tpu.memory_space<vmem>>, vector<32x8xf32>
    %cst_38 = arith.constant 9.99999997E-7 : f32
    %54 = vector.broadcast %cst_38 : f32 to vector<32x8xf32>
    %55 = arith.maximumf %53, %54 : vector<32x8xf32>
    %56 = math.log %55 : vector<32x8xf32>
    %c0_39 = arith.constant 0 : index
    %c0_40 = arith.constant 0 : index
    %57 = vector.load %arg14[%c0_39, %c0_40] : memref<32x8xf32, #tpu.memory_space<vmem>>, vector<32x8xf32>
    %58 = arith.addf %56, %57 : vector<32x8xf32>
    %cst_41 = arith.constant dense<0xFF800000> : vector<32xf32>
    %59 = vector.multi_reduction <maximumf>, %58, %cst_41 [1] : vector<32x8xf32> to vector<32xf32>
    %60 = vector.shape_cast %59 : vector<32xf32> to vector<32x1xf32>
    %61 = vector.broadcast %60 : vector<32x1xf32> to vector<32x8xf32>
    %62 = arith.subf %58, %61 : vector<32x8xf32>
    %63 = math.exp %62 : vector<32x8xf32>
    %cst_42 = arith.constant dense<0.000000e+00> : vector<32xf32>
    %64 = vector.multi_reduction <add>, %63, %cst_42 [1] : vector<32x8xf32> to vector<32xf32>
    %65 = vector.shape_cast %64 : vector<32xf32> to vector<32x1xf32>
    %66 = vector.broadcast %65 : vector<32x1xf32> to vector<32x8xf32>
    %67 = arith.divf %63, %66 : vector<32x8xf32>
    %cst_43 = arith.constant dense<0.000000e+00> : vector<32x1024xf32>
    %68 = tpu.matmul %52, %1, %cst_43 {dimension_numbers = #tpu.dot_dimension_numbers<[1], [0], [0], [1], [0, 0, 1, 1], [], []>} : vector<32x8xf32>, vector<8x1024xf32>, vector<32x1024xf32> -> vector<32x1024xf32>
    %cst_44 = arith.constant dense<0.000000e+00> : vector<32x1024xf32>
    %69 = tpu.matmul %67, %0, %cst_44 {dimension_numbers = #tpu.dot_dimension_numbers<[1], [0], [0], [1], [0, 0, 1, 1], [], []>} : vector<32x8xf32>, vector<8x1024xf32>, vector<32x1024xf32> -> vector<32x1024xf32>
    %c0_45 = arith.constant 0 : index
    %c0_46 = arith.constant 0 : index
    %c0_47 = arith.constant 0 : index
    %70 = vector.load %arg9[%c0_45, %c0_46, %c0_47] : memref<4x64x1024xbf16, #tpu.memory_space<vmem>>, vector<1x64x1024xbf16>
    %71 = vector.shape_cast %70 : vector<1x64x1024xbf16> to vector<64x1024xbf16>
    %72 = vector.extract_strided_slice %68 {offsets = [0, 0], sizes = [8, 1024], strides = [1, 1]} : vector<32x1024xf32> to vector<8x1024xf32>
    %73 = arith.truncf %72 : vector<8x1024xf32> to vector<8x1024xbf16>
    %cst_48 = arith.constant dense<0.000000e+00> : vector<8x64xf32>
    %74 = tpu.matmul %73, %71, %cst_48 {dimension_numbers = #tpu.dot_dimension_numbers<[1], [1], [0], [0], [0, 0, 1, 0], [], []>} : vector<8x1024xbf16>, vector<64x1024xbf16>, vector<8x64xf32> -> vector<8x64xf32>
    %75 = vector.extract_strided_slice %69 {offsets = [0, 0], sizes = [8, 1024], strides = [1, 1]} : vector<32x1024xf32> to vector<8x1024xf32>
    %76 = arith.truncf %75 : vector<8x1024xf32> to vector<8x1024xbf16>
    %cst_49 = arith.constant dense<0.000000e+00> : vector<8x64xf32>
    %77 = tpu.matmul %76, %71, %cst_49 {dimension_numbers = #tpu.dot_dimension_numbers<[1], [1], [0], [0], [0, 0, 1, 0], [], []>} : vector<8x1024xbf16>, vector<64x1024xbf16>, vector<8x64xf32> -> vector<8x64xf32>
    %c1 = arith.constant 1 : index
    %c0_50 = arith.constant 0 : index
    %c0_51 = arith.constant 0 : index
    %78 = vector.load %arg9[%c1, %c0_50, %c0_51] : memref<4x64x1024xbf16, #tpu.memory_space<vmem>>, vector<1x64x1024xbf16>
    %79 = vector.shape_cast %78 : vector<1x64x1024xbf16> to vector<64x1024xbf16>
    %80 = vector.extract_strided_slice %68 {offsets = [8, 0], sizes = [8, 1024], strides = [1, 1]} : vector<32x1024xf32> to vector<8x1024xf32>
    %81 = arith.truncf %80 : vector<8x1024xf32> to vector<8x1024xbf16>
    %cst_52 = arith.constant dense<0.000000e+00> : vector<8x64xf32>
    %82 = tpu.matmul %81, %79, %cst_52 {dimension_numbers = #tpu.dot_dimension_numbers<[1], [1], [0], [0], [0, 0, 1, 0], [], []>} : vector<8x1024xbf16>, vector<64x1024xbf16>, vector<8x64xf32> -> vector<8x64xf32>
    %83 = vector.extract_strided_slice %69 {offsets = [8, 0], sizes = [8, 1024], strides = [1, 1]} : vector<32x1024xf32> to vector<8x1024xf32>
    %84 = arith.truncf %83 : vector<8x1024xf32> to vector<8x1024xbf16>
    %cst_53 = arith.constant dense<0.000000e+00> : vector<8x64xf32>
    %85 = tpu.matmul %84, %79, %cst_53 {dimension_numbers = #tpu.dot_dimension_numbers<[1], [1], [0], [0], [0, 0, 1, 0], [], []>} : vector<8x1024xbf16>, vector<64x1024xbf16>, vector<8x64xf32> -> vector<8x64xf32>
    %c2 = arith.constant 2 : index
    %c0_54 = arith.constant 0 : index
    %c0_55 = arith.constant 0 : index
    %86 = vector.load %arg9[%c2, %c0_54, %c0_55] : memref<4x64x1024xbf16, #tpu.memory_space<vmem>>, vector<1x64x1024xbf16>
    %87 = vector.shape_cast %86 : vector<1x64x1024xbf16> to vector<64x1024xbf16>
    %88 = vector.extract_strided_slice %68 {offsets = [16, 0], sizes = [8, 1024], strides = [1, 1]} : vector<32x1024xf32> to vector<8x1024xf32>
    %89 = arith.truncf %88 : vector<8x1024xf32> to vector<8x1024xbf16>
    %cst_56 = arith.constant dense<0.000000e+00> : vector<8x64xf32>
    %90 = tpu.matmul %89, %87, %cst_56 {dimension_numbers = #tpu.dot_dimension_numbers<[1], [1], [0], [0], [0, 0, 1, 0], [], []>} : vector<8x1024xbf16>, vector<64x1024xbf16>, vector<8x64xf32> -> vector<8x64xf32>
    %91 = vector.extract_strided_slice %69 {offsets = [16, 0], sizes = [8, 1024], strides = [1, 1]} : vector<32x1024xf32> to vector<8x1024xf32>
    %92 = arith.truncf %91 : vector<8x1024xf32> to vector<8x1024xbf16>
    %cst_57 = arith.constant dense<0.000000e+00> : vector<8x64xf32>
    %93 = tpu.matmul %92, %87, %cst_57 {dimension_numbers = #tpu.dot_dimension_numbers<[1], [1], [0], [0], [0, 0, 1, 0], [], []>} : vector<8x1024xbf16>, vector<64x1024xbf16>, vector<8x64xf32> -> vector<8x64xf32>
    %c3 = arith.constant 3 : index
    %c0_58 = arith.constant 0 : index
    %c0_59 = arith.constant 0 : index
    %94 = vector.load %arg9[%c3, %c0_58, %c0_59] : memref<4x64x1024xbf16, #tpu.memory_space<vmem>>, vector<1x64x1024xbf16>
    %95 = vector.shape_cast %94 : vector<1x64x1024xbf16> to vector<64x1024xbf16>
    %96 = vector.extract_strided_slice %68 {offsets = [24, 0], sizes = [8, 1024], strides = [1, 1]} : vector<32x1024xf32> to vector<8x1024xf32>
    %97 = arith.truncf %96 : vector<8x1024xf32> to vector<8x1024xbf16>
    %cst_60 = arith.constant dense<0.000000e+00> : vector<8x64xf32>
    %98 = tpu.matmul %97, %95, %cst_60 {dimension_numbers = #tpu.dot_dimension_numbers<[1], [1], [0], [0], [0, 0, 1, 0], [], []>} : vector<8x1024xbf16>, vector<64x1024xbf16>, vector<8x64xf32> -> vector<8x64xf32>
    %99 = vector.extract_strided_slice %69 {offsets = [24, 0], sizes = [8, 1024], strides = [1, 1]} : vector<32x1024xf32> to vector<8x1024xf32>
    %100 = arith.truncf %99 : vector<8x1024xf32> to vector<8x1024xbf16>
    %cst_61 = arith.constant dense<0.000000e+00> : vector<8x64xf32>
    %101 = tpu.matmul %100, %95, %cst_61 {dimension_numbers = #tpu.dot_dimension_numbers<[1], [1], [0], [0], [0, 0, 1, 0], [], []>} : vector<8x1024xbf16>, vector<64x1024xbf16>, vector<8x64xf32> -> vector<8x64xf32>
    %102 = tpu.concatenate %74, %82, %90, %98 in 1 : vector<8x64xf32>, vector<8x64xf32>, vector<8x64xf32>, vector<8x64xf32> -> vector<8x256xf32>
    %c0_62 = arith.constant 0 : index
    %c0_63 = arith.constant 0 : index
    %103 = vector.load %arg10[%c0_62, %c0_63] : memref<1x256xf32, #tpu.memory_space<vmem>>, vector<1x256xf32>
    %104 = vector.broadcast %103 : vector<1x256xf32> to vector<8x256xf32>
    %105 = arith.addf %102, %104 : vector<8x256xf32>
    %c0_64 = arith.constant 0 : index
    %c0_65 = arith.constant 0 : index
    %106 = vector.load %arg11[%c0_64, %c0_65] : memref<8x256xf32, #tpu.memory_space<vmem>>, vector<8x256xf32>
    tpu.vector_store %arg11[%c0_64, %c0_65], %105 {strides = array<i32>} : memref<8x256xf32, #tpu.memory_space<vmem>>, vector<8x256xf32>,
    %107 = tpu.concatenate %77, %85, %93, %101 in 1 : vector<8x64xf32>, vector<8x64xf32>, vector<8x64xf32>, vector<8x64xf32> -> vector<8x256xf32>
    %c0_66 = arith.constant 0 : index
    %c0_67 = arith.constant 0 : index
    %108 = vector.load %arg10[%c0_66, %c0_67] : memref<1x256xf32, #tpu.memory_space<vmem>>, vector<1x256xf32>
    %109 = vector.broadcast %108 : vector<1x256xf32> to vector<8x256xf32>
    %110 = arith.addf %107, %109 : vector<8x256xf32>
    %c0_68 = arith.constant 0 : index
    %c0_69 = arith.constant 0 : index
    %111 = vector.load %arg12[%c0_68, %c0_69] : memref<8x256xf32, #tpu.memory_space<vmem>>, vector<8x256xf32>
    tpu.vector_store %arg12[%c0_68, %c0_69], %110 {strides = array<i32>} : memref<8x256xf32, #tpu.memory_space<vmem>>, vector<8x256xf32>,
    return
  }
  func.func @transform_0(%arg0: i32) -> (i32, i32) {
    %c0_i32 = arith.constant 0 : i32
    %c0_i32_0 = arith.constant 0 : i32
    %c0_i32_1 = arith.constant 0 : i32
    return %c0_i32, %c0_i32_0 : i32, i32
  }
  func.func @transform_1(%arg0: i32) -> (i32, i32) {
    %c0_i32 = arith.constant 0 : i32
    %c0_i32_0 = arith.constant 0 : i32
    %c0_i32_1 = arith.constant 0 : i32
    return %c0_i32, %c0_i32_0 : i32, i32
  }
  func.func @transform_2(%arg0: i32) -> (i32, i32) {
    %c0_i32 = arith.constant 0 : i32
    %c0_i32_0 = arith.constant 0 : i32
    return %c0_i32, %arg0 : i32, i32
  }
  func.func @transform_3(%arg0: i32) -> (i32, i32) {
    %c0_i32 = arith.constant 0 : i32
    %c0_i32_0 = arith.constant 0 : i32
    return %c0_i32, %arg0 : i32, i32
  }
  func.func @transform_4(%arg0: i32) -> (i32, i32) {
    %c0_i32 = arith.constant 0 : i32
    %c0_i32_0 = arith.constant 0 : i32
    return %c0_i32, %arg0 : i32, i32
  }
  func.func @transform_5(%arg0: i32) -> (i32, i32) {
    %c0_i32 = arith.constant 0 : i32
    %c0_i32_0 = arith.constant 0 : i32
    return %c0_i32, %arg0 : i32, i32
  }
  func.func @transform_6(%arg0: i32) -> (i32, i32) {
    %c0_i32 = arith.constant 0 : i32
    %c0_i32_0 = arith.constant 0 : i32
    return %arg0, %c0_i32 : i32, i32
  }
  func.func @transform_7(%arg0: i32) -> (i32, i32) {
    %c0_i32 = arith.constant 0 : i32
    %c0_i32_0 = arith.constant 0 : i32
    return %arg0, %c0_i32 : i32, i32
  }
  func.func @transform_8(%arg0: i32) -> (i32, i32, i32) {
    %c0_i32 = arith.constant 0 : i32
    %c0_i32_0 = arith.constant 0 : i32
    %c0_i32_1 = arith.constant 0 : i32
    return %arg0, %c0_i32, %c0_i32_0 : i32, i32, i32
  }
  func.func @transform_9(%arg0: i32) -> (i32, i32) {
    %c0_i32 = arith.constant 0 : i32
    %c0_i32_0 = arith.constant 0 : i32
    return %c0_i32, %arg0 : i32, i32
  }
  func.func @transform_10(%arg0: i32) -> (i32, i32) {
    %c0_i32 = arith.constant 0 : i32
    %c0_i32_0 = arith.constant 0 : i32
    return %c0_i32, %arg0 : i32, i32
  }
  func.func @transform_11(%arg0: i32) -> (i32, i32) {
    %c0_i32 = arith.constant 0 : i32
    %c0_i32_0 = arith.constant 0 : i32
    return %c0_i32, %arg0 : i32, i32
  }
}

</mosaic_0001>

<bundles_post_ra>
// kernel: _forward_impl.1
= control target key start
LH: loop header
LB: loop body
LE: loop exit
PB: predicated region body
PF: predicated region fallthrough
CT: control target
= control target key end

     0   :  { %s10713_s0 = inlined_call_operand.vmem [shape: f32[8,1024], index: 0, kind: input, shape index: {}]   ;;  %s10714_s1 = inlined_call_operand.vmem [shape: f32[8,1024], index: 1, kind: input, shape index: {}]   ;;  %s10715_s2 = inlined_call_operand.vmem [shape: bf16[1024,1024], index: 2, kind: input, shape index: {}]   ;;  %s10716_s3 = inlined_call_operand.vmem [shape: f32[1,1024], index: 3, kind: input, shape index: {}]   ;;  %s10717_s4 = inlined_call_operand.vmem [shape: bf16[1024,1024], index: 4, kind: input, shape index: {}]   ;;  %s10718_s5 = inlined_call_operand.vmem [shape: f32[1,1024], index: 5, kind: input, shape index: {}]   ;;  %s10719_s6 = inlined_call_operand.vmem [shape: f32[128,8], index: 6, kind: input, shape index: {}]   ;;  %s10720_s7 = inlined_call_operand.vmem [shape: f32[128,8], index: 7, kind: input, shape index: {}]   ;;  %s10721_s8 = inlined_call_operand.vmem [shape: bf16[16,64,1024], index: 8, kind: input, shape index: {}]   ;;  %s10722_s9 = inlined_call_operand.vmem [shape: f32[1,1024], index: 9, kind: input, shape index: {}]   ;;  %s10723_s10 = inlined_call_operand.hbm [shape: f32[8,1024], index: 10, kind: output, shape index: {0}]   ;;  %s10724_s11 = inlined_call_operand.hbm [shape: f32[8,1024], index: 11, kind: output, shape index: {1}]  }
   0x1   :  { %10730 = sst [smem:[#allocation32_spill]] %s10713_s0 }
   0x2   :  { %10731 = sst [smem:[#allocation33_spill]] %s10714_s1 }
   0x3   :  { %10732 = sst [smem:[#allocation34_spill]] %s10715_s2 }
   0x4   :  { %17 = vsyncpa [#allocation7], 0 }
   0x5   :  { %19 = vsyncpa [#allocation7 + $0x1], 0 }
   0x6   :  { %20 = vsyncpa [#allocation9], 0 }
   0x7   :  { %22 = vsyncpa [#allocation9 + $0x1], 0  ;;  %s8607_s17 = smov 0   ;;  %s8609_s18 = smov 0  }
   0x8   :  { %s8611_s19 = smov 0   ;;  %s8613_s20 = smov 0  }
   0x9 LB: > { %s8628_s21 = sadd.s32 4294967295, %s8540_s20   ;;  %s7250_s22 = sadd.s32 4294967294, %s8540_s20   ;;  %s8540_s20 = sphi %s8613_s20, %s10783_s20   ;;  %s8536_s19 = sphi %s8611_s19, %s10782_s19   ;;  %s8532_s18 = sphi %s8609_s18, %s10781_s18   ;;  %s8528_s17 = sphi %s8607_s17, %s10780_s17  }
   0xa   : > { %s8632_s23 = sadd.s32 1, %s8540_s20   ;;  %s77_s24 = sadd.s32 1, %s8536_s19 }
   0xb   : > { %s74_s25 = ssub.s32 %s8540_s20, %s8632_s23  ;;  %p84_p0 = scmp.ne.s32.totalorder %s8536_s19, %s8532_s18 }
   0xc   : > { %p75_p1 = scmp.eq.s32.totalorder %s74_s25, 0  ;;  %p85_p2 = scmp.eq.s32.totalorder %s8540_s20, 0 }
   0xd   : > { %p296_p3 = scmp.eq.s32.totalorder %s8628_s21, 3  ;;  %p301_p4 = scmp.ne.s32.totalorder %s8532_s18, %s8528_s17 }
   0xe   : > { %s8644_s26 = scalar_select %p75_p1, %s8536_s19, %s77_s24  }
   0xf   : > { %p8646_p5 = por %p85_p2, %p84_p0  ;;  %p8650_p6 = por %p296_p3, %p84_p0 }
  0x10   : > { %p302_p7 = scmp.eq.s32.totalorder %s7250_s22, 3  ;;  %p7252_p9 = scmp.ge.s32.totalorder %s8540_s20, 4 }
  0x12   : > { %p8654_p8 = por %p302_p7, %p301_p4  ;;  %350 = sbr.rel (%p7252_p9) target bundleno = 295 (0x127), region = 24 }
  0x19   : > { %353 = sbr.rel (!%p8646_p5) target bundleno = 163 (0xa3), region = 28  ;;  %s355_s30 = sand.u32 (%p8646_p5), 1, %s8536_s19  }
  0x1a   : > { %s7802_s12 = sshll.u32 (%p8646_p5), %s8540_s20, 3  ;;  %s7253_s13 = sshll.u32 (%p8646_p5), %s355_s30, 10 }
  0x1b   : > { %s10736_s2 = sld [smem:[#allocation34_spill]] (%p8646_p5)  ;;  %s8671_s22 = scalar_lea.vmem (%p8646_p5), [#allocation4], %s7253_s13 }
  0x21   : > { %s8666_s16 = scalar_lea.vmem %s10736_s2, %s7802_s12 }
  0x22   : > { %v642_v0 = vld [vmem:[%s8666_s16] sm:$0xff] }
  0x23   : > { %v644_v1 = vld [vmem:[%s8666_s16 + $0x20] sm:$0xff]  ;;  %643 = vst [vmem:[%s8671_s22] sm:$0xff] %v642_v0 }
  0x24   : > { %v646_v2 = vld [vmem:[%s8666_s16 + $0x40] sm:$0xff]  ;;  %645 = vst [vmem:[%s8671_s22 + $0x8] sm:$0xff] %v644_v1 }
  0x25   : > { %647 = vst [vmem:[%s8671_s22 + $0x10] sm:$0xff] %v646_v2  ;;  %v648_v3 = vld [vmem:[%s8666_s16 + $0x60] sm:$0xff] }
  0x26   : > { %v650_v4 = vld [vmem:[%s8666_s16 + $0x80] sm:$0xff]  ;;  %649 = vst [vmem:[%s8671_s22 + $0x18] sm:$0xff] %v648_v3 }
  0x27   : > { %v652_v5 = vld [vmem:[%s8666_s16 + $0xa0] sm:$0xff]  ;;  %651 = vst [vmem:[%s8671_s22 + $0x20] sm:$0xff] %v650_v4 }
  0x28   : > { %653 = vst [vmem:[%s8671_s22 + $0x28] sm:$0xff] %v652_v5  ;;  %v654_v6 = vld [vmem:[%s8666_s16 + $0xc0] sm:$0xff] }
  0x29   : > { %v656_v7 = vld [vmem:[%s8666_s16 + $0xe0] sm:$0xff]  ;;  %655 = vst [vmem:[%s8671_s22 + $0x30] sm:$0xff] %v654_v6 }
  0x2a   : > { %v658_v8 = vld [vmem:[%s8666_s16 + $0x100] sm:$0xff]  ;;  %657 = vst [vmem:[%s8671_s22 + $0x38] sm:$0xff] %v656_v7 }
  0x2b   : > { %659 = vst [vmem:[%s8671_s22 + $0x40] sm:$0xff] %v658_v8  ;;  %v660_v9 = vld [vmem:[%s8666_s16 + $0x120] sm:$0xff] }
  0x2c   : > { %v662_v10 = vld [vmem:[%s8666_s16 + $0x140] sm:$0xff]  ;;  %661 = vst [vmem:[%s8671_s22 + $0x48] sm:$0xff] %v660_v9 }
  0x2d   : > { %v664_v11 = vld [vmem:[%s8666_s16 + $0x160] sm:$0xff]  ;;  %663 = vst [vmem:[%s8671_s22 + $0x50] sm:$0xff] %v662_v10 }
  0x2e   : > { %665 = vst [vmem:[%s8671_s22 + $0x58] sm:$0xff] %v664_v11  ;;  %v666_v12 = vld [vmem:[%s8666_s16 + $0x180] sm:$0xff] }
  0x2f   : > { %v668_v13 = vld [vmem:[%s8666_s16 + $0x1a0] sm:$0xff]  ;;  %667 = vst [vmem:[%s8671_s22 + $0x60] sm:$0xff] %v666_v12 }
  0x30   : > { %v670_v14 = vld [vmem:[%s8666_s16 + $0x1c0] sm:$0xff]  ;;  %669 = vst [vmem:[%s8671_s22 + $0x68] sm:$0xff] %v668_v13 }
  0x31   : > { %671 = vst [vmem:[%s8671_s22 + $0x70] sm:$0xff] %v670_v14  ;;  %v672_v15 = vld [vmem:[%s8666_s16 + $0x1e0] sm:$0xff] }
  0x32   : > { %v674_v16 = vld [vmem:[%s8666_s16 + $0x200] sm:$0xff]  ;;  %673 = vst [vmem:[%s8671_s22 + $0x78] sm:$0xff] %v672_v15 }
  0x33   : > { %v676_v17 = vld [vmem:[%s8666_s16 + $0x220] sm:$0xff]  ;;  %675 = vst [vmem:[%s8671_s22 + $0x80] sm:$0xff] %v674_v16 }
  0x34   : > { %677 = vst [vmem:[%s8671_s22 + $0x88] sm:$0xff] %v676_v17  ;;  %v678_v18 = vld [vmem:[%s8666_s16 + $0x240] sm:$0xff] }
  0x35   : > { %v680_v19 = vld [vmem:[%s8666_s16 + $0x260] sm:$0xff]  ;;  %679 = vst [vmem:[%s8671_s22 + $0x90] sm:$0xff] %v678_v18 }
  0x36   : > { %v682_v20 = vld [vmem:[%s8666_s16 + $0x280] sm:$0xff]  ;;  %681 = vst [vmem:[%s8671_s22 + $0x98] sm:$0xff] %v680_v19 }
  0x37   : > { %683 = vst [vmem:[%s8671_s22 + $0xa0] sm:$0xff] %v682_v20  ;;  %v684_v21 = vld [vmem:[%s8666_s16 + $0x2a0] sm:$0xff] }
  0x38   : > { %v686_v22 = vld [vmem:[%s8666_s16 + $0x2c0] sm:$0xff]  ;;  %685 = vst [vmem:[%s8671_s22 + $0xa8] sm:$0xff] %v684_v21 }
  0x39   : > { %v688_v23 = vld [vmem:[%s8666_s16 + $0x2e0] sm:$0xff]  ;;  %687 = vst [vmem:[%s8671_s22 + $0xb0] sm:$0xff] %v686_v22 }
  0x3a   : > { %689 = vst [vmem:[%s8671_s22 + $0xb8] sm:$0xff] %v688_v23  ;;  %v690_v24 = vld [vmem:[%s8666_s16 + $0x300] sm:$0xff] }
  0x3b   : > { %v692_v25 = vld [vmem:[%s8666_s16 + $0x320] sm:$0xff]  ;;  %691 = vst [vmem:[%s8671_s22 + $0xc0] sm:$0xff] %v690_v24 }
  0x3c   : > { %v694_v26 = vld [vmem:[%s8666_s16 + $0x340] sm:$0xff]  ;;  %693 = vst [vmem:[%s8671_s22 + $0xc8] sm:$0xff] %v692_v25 }
  0x3d   : > { %695 = vst [vmem:[%s8671_s22 + $0xd0] sm:$0xff] %v694_v26  ;;  %v696_v27 = vld [vmem:[%s8666_s16 + $0x360] sm:$0xff] }
  0x3e   : > { %v698_v28 = vld [vmem:[%s8666_s16 + $0x380] sm:$0xff]  ;;  %697 = vst [vmem:[%s8671_s22 + $0xd8] sm:$0xff] %v696_v27 }
  0x3f   : > { %v700_v29 = vld [vmem:[%s8666_s16 + $0x3a0] sm:$0xff]  ;;  %699 = vst [vmem:[%s8671_s22 + $0xe0] sm:$0xff] %v698_v28 }
  0x40   : > { %701 = vst [vmem:[%s8671_s22 + $0xe8] sm:$0xff] %v700_v29  ;;  %v702_v30 = vld [vmem:[%s8666_s16 + $0x3c0] sm:$0xff] }
  0x41   : > { %v704_v31 = vld [vmem:[%s8666_s16 + $0x3e0] sm:$0xff]  ;;  %703 = vst [vmem:[%s8671_s22 + $0xf0] sm:$0xff] %v702_v30 }
  0x42   : > { %v706_v32 = vld [vmem:[%s8666_s16 + $0x400] sm:$0xff]  ;;  %705 = vst [vmem:[%s8671_s22 + $0xf8] sm:$0xff] %v704_v31 }
  0x43   : > { %707 = vst [vmem:[%s8671_s22 + $0x100] sm:$0xff] %v706_v32  ;;  %v708_v33 = vld [vmem:[%s8666_s16 + $0x420] sm:$0xff] }
  0x44   : > { %v710_v34 = vld [vmem:[%s8666_s16 + $0x440] sm:$0xff]  ;;  %709 = vst [vmem:[%s8671_s22 + $0x108] sm:$0xff] %v708_v33 }
  0x45   : > { %v712_v35 = vld [vmem:[%s8666_s16 + $0x460] sm:$0xff]  ;;  %711 = vst [vmem:[%s8671_s22 + $0x110] sm:$0xff] %v710_v34 }
  0x46   : > { %713 = vst [vmem:[%s8671_s22 + $0x118] sm:$0xff] %v712_v35  ;;  %v714_v36 = vld [vmem:[%s8666_s16 + $0x480] sm:$0xff] }
  0x47   : > { %v716_v37 = vld [vmem:[%s8666_s16 + $0x4a0] sm:$0xff]  ;;  %715 = vst [vmem:[%s8671_s22 + $0x120] sm:$0xff] %v714_v36 }
  0x48   : > { %v718_v38 = vld [vmem:[%s8666_s16 + $0x4c0] sm:$0xff]  ;;  %717 = vst [vmem:[%s8671_s22 + $0x128] sm:$0xff] %v716_v37 }
  0x49   : > { %719 = vst [vmem:[%s8671_s22 + $0x130] sm:$0xff] %v718_v38  ;;  %v720_v39 = vld [vmem:[%s8666_s16 + $0x4e0] sm:$0xff] }
  0x4a   : > { %v722_v40 = vld [vmem:[%s8666_s16 + $0x500] sm:$0xff]  ;;  %721 = vst [vmem:[%s8671_s22 + $0x138] sm:$0xff] %v720_v39 }
  0x4b   : > { %v724_v41 = vld [vmem:[%s8666_s16 + $0x520] sm:$0xff]  ;;  %723 = vst [vmem:[%s8671_s22 + $0x140] sm:$0xff] %v722_v40 }
  0x4c   : > { %725 = vst [vmem:[%s8671_s22 + $0x148] sm:$0xff] %v724_v41  ;;  %v726_v42 = vld [vmem:[%s8666_s16 + $0x540] sm:$0xff] }
  0x4d   : > { %v728_v43 = vld [vmem:[%s8666_s16 + $0x560] sm:$0xff]  ;;  %727 = vst [vmem:[%s8671_s22 + $0x150] sm:$0xff] %v726_v42 }
  0x4e   : > { %v730_v44 = vld [vmem:[%s8666_s16 + $0x580] sm:$0xff]  ;;  %729 = vst [vmem:[%s8671_s22 + $0x158] sm:$0xff] %v728_v43 }
  0x4f   : > { %731 = vst [vmem:[%s8671_s22 + $0x160] sm:$0xff] %v730_v44  ;;  %v732_v45 = vld [vmem:[%s8666_s16 + $0x5a0] sm:$0xff] }
  0x50   : > { %v734_v46 = vld [vmem:[%s8666_s16 + $0x5c0] sm:$0xff]  ;;  %733 = vst [vmem:[%s8671_s22 + $0x168] sm:$0xff] %v732_v45 }
  0x51   : > { %v736_v47 = vld [vmem:[%s8666_s16 + $0x5e0] sm:$0xff]  ;;  %735 = vst [vmem:[%s8671_s22 + $0x170] sm:$0xff] %v734_v46 }
  0x52   : > { %737 = vst [vmem:[%s8671_s22 + $0x178] sm:$0xff] %v736_v47  ;;  %v738_v48 = vld [vmem:[%s8666_s16 + $0x600] sm:$0xff] }
  0x53   : > { %v740_v49 = vld [vmem:[%s8666_s16 + $0x620] sm:$0xff]  ;;  %739 = vst [vmem:[%s8671_s22 + $0x180] sm:$0xff] %v738_v48 }
  0x54   : > { %v742_v50 = vld [vmem:[%s8666_s16 + $0x640] sm:$0xff]  ;;  %741 = vst [vmem:[%s8671_s22 + $0x188] sm:$0xff] %v740_v49 }
  0x55   : > { %743 = vst [vmem:[%s8671_s22 + $0x190] sm:$0xff] %v742_v50  ;;  %v744_v51 = vld [vmem:[%s8666_s16 + $0x660] sm:$0xff] }
  0x56   : > { %v746_v52 = vld [vmem:[%s8666_s16 + $0x680] sm:$0xff]  ;;  %745 = vst [vmem:[%s8671_s22 + $0x198] sm:$0xff] %v744_v51 }
  0x57   : > { %v748_v53 = vld [vmem:[%s8666_s16 + $0x6a0] sm:$0xff]  ;;  %747 = vst [vmem:[%s8671_s22 + $0x1a0] sm:$0xff] %v746_v52 }
  0x58   : > { %749 = vst [vmem:[%s8671_s22 + $0x1a8] sm:$0xff] %v748_v53  ;;  %v750_v54 = vld [vmem:[%s8666_s16 + $0x6c0] sm:$0xff] }
  0x59   : > { %v752_v55 = vld [vmem:[%s8666_s16 + $0x6e0] sm:$0xff]  ;;  %751 = vst [vmem:[%s8671_s22 + $0x1b0] sm:$0xff] %v750_v54 }
  0x5a   : > { %v754_v56 = vld [vmem:[%s8666_s16 + $0x700] sm:$0xff]  ;;  %753 = vst [vmem:[%s8671_s22 + $0x1b8] sm:$0xff] %v752_v55 }
  0x5b   : > { %755 = vst [vmem:[%s8671_s22 + $0x1c0] sm:$0xff] %v754_v56  ;;  %v756_v57 = vld [vmem:[%s8666_s16 + $0x720] sm:$0xff] }
  0x5c   : > { %v758_v58 = vld [vmem:[%s8666_s16 + $0x740] sm:$0xff]  ;;  %757 = vst [vmem:[%s8671_s22 + $0x1c8] sm:$0xff] %v756_v57 }
  0x5d   : > { %v760_v59 = vld [vmem:[%s8666_s16 + $0x760] sm:$0xff]  ;;  %759 = vst [vmem:[%s8671_s22 + $0x1d0] sm:$0xff] %v758_v58 }
  0x5e   : > { %761 = vst [vmem:[%s8671_s22 + $0x1d8] sm:$0xff] %v760_v59  ;;  %v762_v60 = vld [vmem:[%s8666_s16 + $0x780] sm:$0xff] }
  0x5f   : > { %v764_v61 = vld [vmem:[%s8666_s16 + $0x7a0] sm:$0xff]  ;;  %763 = vst [vmem:[%s8671_s22 + $0x1e0] sm:$0xff] %v762_v60 }
  0x60   : > { %v766_v62 = vld [vmem:[%s8666_s16 + $0x7c0] sm:$0xff]  ;;  %765 = vst [vmem:[%s8671_s22 + $0x1e8] sm:$0xff] %v764_v61 }
  0x61   : > { %767 = vst [vmem:[%s8671_s22 + $0x1f0] sm:$0xff] %v766_v62  ;;  %v768_v63 = vld [vmem:[%s8666_s16 + $0x7e0] sm:$0xff] }
  0x62   : > { %v770_v0 = vld [vmem:[%s8666_s16 + $0x800] sm:$0xff]  ;;  %769 = vst [vmem:[%s8671_s22 + $0x1f8] sm:$0xff] %v768_v63 }
  0x63   : > { %v772_v1 = vld [vmem:[%s8666_s16 + $0x820] sm:$0xff]  ;;  %771 = vst [vmem:[%s8671_s22 + $0x200] sm:$0xff] %v770_v0 }
  0x64   : > { %773 = vst [vmem:[%s8671_s22 + $0x208] sm:$0xff] %v772_v1  ;;  %v774_v2 = vld [vmem:[%s8666_s16 + $0x840] sm:$0xff] }
  0x65   : > { %v776_v3 = vld [vmem:[%s8666_s16 + $0x860] sm:$0xff]  ;;  %775 = vst [vmem:[%s8671_s22 + $0x210] sm:$0xff] %v774_v2 }
  0x66   : > { %v778_v4 = vld [vmem:[%s8666_s16 + $0x880] sm:$0xff]  ;;  %777 = vst [vmem:[%s8671_s22 + $0x218] sm:$0xff] %v776_v3 }
  0x67   : > { %779 = vst [vmem:[%s8671_s22 + $0x220] sm:$0xff] %v778_v4  ;;  %v780_v5 = vld [vmem:[%s8666_s16 + $0x8a0] sm:$0xff] }
  0x68   : > { %v782_v6 = vld [vmem:[%s8666_s16 + $0x8c0] sm:$0xff]  ;;  %781 = vst [vmem:[%s8671_s22 + $0x228] sm:$0xff] %v780_v5 }
  0x69   : > { %v784_v7 = vld [vmem:[%s8666_s16 + $0x8e0] sm:$0xff]  ;;  %783 = vst [vmem:[%s8671_s22 + $0x230] sm:$0xff] %v782_v6 }
  0x6a   : > { %785 = vst [vmem:[%s8671_s22 + $0x238] sm:$0xff] %v784_v7  ;;  %v786_v8 = vld [vmem:[%s8666_s16 + $0x900] sm:$0xff] }
  0x6b   : > { %v788_v9 = vld [vmem:[%s8666_s16 + $0x920] sm:$0xff]  ;;  %787 = vst [vmem:[%s8671_s22 + $0x240] sm:$0xff] %v786_v8 }
  0x6c   : > { %v790_v10 = vld [vmem:[%s8666_s16 + $0x940] sm:$0xff]  ;;  %789 = vst [vmem:[%s8671_s22 + $0x248] sm:$0xff] %v788_v9 }
  0x6d   : > { %791 = vst [vmem:[%s8671_s22 + $0x250] sm:$0xff] %v790_v10  ;;  %v792_v11 = vld [vmem:[%s8666_s16 + $0x960] sm:$0xff] }
  0x6e   : > { %v794_v12 = vld [vmem:[%s8666_s16 + $0x980] sm:$0xff]  ;;  %793 = vst [vmem:[%s8671_s22 + $0x258] sm:$0xff] %v792_v11 }
  0x6f   : > { %v796_v13 = vld [vmem:[%s8666_s16 + $0x9a0] sm:$0xff]  ;;  %795 = vst [vmem:[%s8671_s22 + $0x260] sm:$0xff] %v794_v12 }
  0x70   : > { %797 = vst [vmem:[%s8671_s22 + $0x268] sm:$0xff] %v796_v13  ;;  %v798_v14 = vld [vmem:[%s8666_s16 + $0x9c0] sm:$0xff] }
  0x71   : > { %v800_v15 = vld [vmem:[%s8666_s16 + $0x9e0] sm:$0xff]  ;;  %799 = vst [vmem:[%s8671_s22 + $0x270] sm:$0xff] %v798_v14 }
  0x72   : > { %v802_v16 = vld [vmem:[%s8666_s16 + $0xa00] sm:$0xff]  ;;  %801 = vst [vmem:[%s8671_s22 + $0x278] sm:$0xff] %v800_v15 }
  0x73   : > { %803 = vst [vmem:[%s8671_s22 + $0x280] sm:$0xff] %v802_v16  ;;  %v804_v17 = vld [vmem:[%s8666_s16 + $0xa20] sm:$0xff] }
  0x74   : > { %v806_v18 = vld [vmem:[%s8666_s16 + $0xa40] sm:$0xff]  ;;  %805 = vst [vmem:[%s8671_s22 + $0x288] sm:$0xff] %v804_v17 }
  0x75   : > { %v808_v19 = vld [vmem:[%s8666_s16 + $0xa60] sm:$0xff]  ;;  %807 = vst [vmem:[%s8671_s22 + $0x290] sm:$0xff] %v806_v18 }
  0x76   : > { %809 = vst [vmem:[%s8671_s22 + $0x298] sm:$0xff] %v808_v19  ;;  %v810_v20 = vld [vmem:[%s8666_s16 + $0xa80] sm:$0xff] }
  0x77   : > { %v812_v21 = vld [vmem:[%s8666_s16 + $0xaa0] sm:$0xff]  ;;  %811 = vst [vmem:[%s8671_s22 + $0x2a0] sm:$0xff] %v810_v20 }
  0x78   : > { %v814_v22 = vld [vmem:[%s8666_s16 + $0xac0] sm:$0xff]  ;;  %813 = vst [vmem:[%s8671_s22 + $0x2a8] sm:$0xff] %v812_v21 }
  0x79   : > { %815 = vst [vmem:[%s8671_s22 + $0x2b0] sm:$0xff] %v814_v22  ;;  %v816_v23 = vld [vmem:[%s8666_s16 + $0xae0] sm:$0xff] }
  0x7a   : > { %v818_v24 = vld [vmem:[%s8666_s16 + $0xb00] sm:$0xff]  ;;  %817 = vst [vmem:[%s8671_s22 + $0x2b8] sm:$0xff] %v816_v23 }
  0x7b   : > { %v820_v25 = vld [vmem:[%s8666_s16 + $0xb20] sm:$0xff]  ;;  %819 = vst [vmem:[%s8671_s22 + $0x2c0] sm:$0xff] %v818_v24 }
  0x7c   : > { %821 = vst [vmem:[%s8671_s22 + $0x2c8] sm:$0xff] %v820_v25  ;;  %v822_v26 = vld [vmem:[%s8666_s16 + $0xb40] sm:$0xff] }
  0x7d   : > { %v824_v27 = vld [vmem:[%s8666_s16 + $0xb60] sm:$0xff]  ;;  %823 = vst [vmem:[%s8671_s22 + $0x2d0] sm:$0xff] %v822_v26 }
  0x7e   : > { %v826_v28 = vld [vmem:[%s8666_s16 + $0xb80] sm:$0xff]  ;;  %825 = vst [vmem:[%s8671_s22 + $0x2d8] sm:$0xff] %v824_v27 }
  0x7f   : > { %827 = vst [vmem:[%s8671_s22 + $0x2e0] sm:$0xff] %v826_v28  ;;  %v828_v29 = vld [vmem:[%s8666_s16 + $0xba0] sm:$0xff] }
  0x80   : > { %v830_v30 = vld [vmem:[%s8666_s16 + $0xbc0] sm:$0xff]  ;;  %829 = vst [vmem:[%s8671_s22 + $0x2e8] sm:$0xff] %v828_v29 }
  0x81   : > { %v832_v31 = vld [vmem:[%s8666_s16 + $0xbe0] sm:$0xff]  ;;  %831 = vst [vmem:[%s8671_s22 + $0x2f0] sm:$0xff] %v830_v30 }
  0x82   : > { %833 = vst [vmem:[%s8671_s22 + $0x2f8] sm:$0xff] %v832_v31  ;;  %v834_v32 = vld [vmem:[%s8666_s16 + $0xc00] sm:$0xff] }
  0x83   : > { %v836_v33 = vld [vmem:[%s8666_s16 + $0xc20] sm:$0xff]  ;;  %835 = vst [vmem:[%s8671_s22 + $0x300] sm:$0xff] %v834_v32 }
  0x84   : > { %v838_v34 = vld [vmem:[%s8666_s16 + $0xc40] sm:$0xff]  ;;  %837 = vst [vmem:[%s8671_s22 + $0x308] sm:$0xff] %v836_v33 }
  0x85   : > { %839 = vst [vmem:[%s8671_s22 + $0x310] sm:$0xff] %v838_v34  ;;  %v840_v35 = vld [vmem:[%s8666_s16 + $0xc60] sm:$0xff] }
  0x86   : > { %v842_v36 = vld [vmem:[%s8666_s16 + $0xc80] sm:$0xff]  ;;  %841 = vst [vmem:[%s8671_s22 + $0x318] sm:$0xff] %v840_v35 }
  0x87   : > { %v844_v37 = vld [vmem:[%s8666_s16 + $0xca0] sm:$0xff]  ;;  %843 = vst [vmem:[%s8671_s22 + $0x320] sm:$0xff] %v842_v36 }
  0x88   : > { %845 = vst [vmem:[%s8671_s22 + $0x328] sm:$0xff] %v844_v37  ;;  %v846_v38 = vld [vmem:[%s8666_s16 + $0xcc0] sm:$0xff] }
  0x89   : > { %v848_v39 = vld [vmem:[%s8666_s16 + $0xce0] sm:$0xff]  ;;  %847 = vst [vmem:[%s8671_s22 + $0x330] sm:$0xff] %v846_v38 }
  0x8a   : > { %v850_v40 = vld [vmem:[%s8666_s16 + $0xd00] sm:$0xff]  ;;  %849 = vst [vmem:[%s8671_s22 + $0x338] sm:$0xff] %v848_v39 }
  0x8b   : > { %851 = vst [vmem:[%s8671_s22 + $0x340] sm:$0xff] %v850_v40  ;;  %v852_v41 = vld [vmem:[%s8666_s16 + $0xd20] sm:$0xff] }
  0x8c   : > { %v854_v42 = vld [vmem:[%s8666_s16 + $0xd40] sm:$0xff]  ;;  %853 = vst [vmem:[%s8671_s22 + $0x348] sm:$0xff] %v852_v41 }
  0x8d   : > { %v856_v43 = vld [vmem:[%s8666_s16 + $0xd60] sm:$0xff]  ;;  %855 = vst [vmem:[%s8671_s22 + $0x350] sm:$0xff] %v854_v42 }
  0x8e   : > { %857 = vst [vmem:[%s8671_s22 + $0x358] sm:$0xff] %v856_v43  ;;  %v858_v44 = vld [vmem:[%s8666_s16 + $0xd80] sm:$0xff] }
  0x8f   : > { %v860_v45 = vld [vmem:[%s8666_s16 + $0xda0] sm:$0xff]  ;;  %859 = vst [vmem:[%s8671_s22 + $0x360] sm:$0xff] %v858_v44 }
  0x90   : > { %v862_v46 = vld [vmem:[%s8666_s16 + $0xdc0] sm:$0xff]  ;;  %861 = vst [vmem:[%s8671_s22 + $0x368] sm:$0xff] %v860_v45 }
  0x91   : > { %863 = vst [vmem:[%s8671_s22 + $0x370] sm:$0xff] %v862_v46  ;;  %v864_v47 = vld [vmem:[%s8666_s16 + $0xde0] sm:$0xff] }
  0x92   : > { %v866_v48 = vld [vmem:[%s8666_s16 + $0xe00] sm:$0xff]  ;;  %865 = vst [vmem:[%s8671_s22 + $0x378] sm:$0xff] %v864_v47 }
  0x93   : > { %v868_v49 = vld [vmem:[%s8666_s16 + $0xe20] sm:$0xff]  ;;  %867 = vst [vmem:[%s8671_s22 + $0x380] sm:$0xff] %v866_v48 }
  0x94   : > { %869 = vst [vmem:[%s8671_s22 + $0x388] sm:$0xff] %v868_v49  ;;  %v870_v50 = vld [vmem:[%s8666_s16 + $0xe40] sm:$0xff] }
  0x95   : > { %v872_v51 = vld [vmem:[%s8666_s16 + $0xe60] sm:$0xff]  ;;  %871 = vst [vmem:[%s8671_s22 + $0x390] sm:$0xff] %v870_v50 }
  0x96   : > { %v874_v52 = vld [vmem:[%s8666_s16 + $0xe80] sm:$0xff]  ;;  %873 = vst [vmem:[%s8671_s22 + $0x398] sm:$0xff] %v872_v51 }
  0x97   : > { %875 = vst [vmem:[%s8671_s22 + $0x3a0] sm:$0xff] %v874_v52  ;;  %v876_v53 = vld [vmem:[%s8666_s16 + $0xea0] sm:$0xff] }
  0x98   : > { %v878_v54 = vld [vmem:[%s8666_s16 + $0xec0] sm:$0xff]  ;;  %877 = vst [vmem:[%s8671_s22 + $0x3a8] sm:$0xff] %v876_v53 }
  0x99   : > { %v880_v55 = vld [vmem:[%s8666_s16 + $0xee0] sm:$0xff]  ;;  %879 = vst [vmem:[%s8671_s22 + $0x3b0] sm:$0xff] %v878_v54 }
  0x9a   : > { %881 = vst [vmem:[%s8671_s22 + $0x3b8] sm:$0xff] %v880_v55  ;;  %v882_v56 = vld [vmem:[%s8666_s16 + $0xf00] sm:$0xff] }
  0x9b   : > { %v884_v57 = vld [vmem:[%s8666_s16 + $0xf20] sm:$0xff]  ;;  %883 = vst [vmem:[%s8671_s22 + $0x3c0] sm:$0xff] %v882_v56 }
  0x9c   : > { %v886_v58 = vld [vmem:[%s8666_s16 + $0xf40] sm:$0xff]  ;;  %885 = vst [vmem:[%s8671_s22 + $0x3c8] sm:$0xff] %v884_v57 }
  0x9d   : > { %887 = vst [vmem:[%s8671_s22 + $0x3d0] sm:$0xff] %v886_v58  ;;  %v888_v59 = vld [vmem:[%s8666_s16 + $0xf60] sm:$0xff] }
  0x9e   : > { %v890_v60 = vld [vmem:[%s8666_s16 + $0xf80] sm:$0xff]  ;;  %889 = vst [vmem:[%s8671_s22 + $0x3d8] sm:$0xff] %v888_v59 }
  0x9f   : > { %v892_v61 = vld [vmem:[%s8666_s16 + $0xfa0] sm:$0xff]  ;;  %891 = vst [vmem:[%s8671_s22 + $0x3e0] sm:$0xff] %v890_v60 }
  0xa0   : > { %893 = vst [vmem:[%s8671_s22 + $0x3e8] sm:$0xff] %v892_v61  ;;  %v894_v62 = vld [vmem:[%s8666_s16 + $0xfc0] sm:$0xff] }
  0xa1   : > { %v896_v63 = vld [vmem:[%s8666_s16 + $0xfe0] sm:$0xff]  ;;  %895 = vst [vmem:[%s8671_s22 + $0x3f0] sm:$0xff] %v894_v62 }
  0xa2   : > { %897 = vst [vmem:[%s8671_s22 + $0x3f8] sm:$0xff] %v896_v63 }
  0xa3 PF: > { %911 = sbr.rel (!%p8646_p5) target bundleno = 295 (0x127), region = 70  ;;  %s913_s24 = sand.u32 (%p8646_p5), 1, %s8536_s19  }
  0xa4   : > { %s7803_s25 = sshll.u32 (%p8646_p5), %s8540_s20, 3  ;;  %s7256_s30 = sshll.u32 (%p8646_p5), %s913_s24, 10 }
  0xa5   : > { %s8933_s14 = scalar_lea.vmem (%p8646_p5), %s10717_s4, %s7803_s25  ;;  %s8938_s27 = scalar_lea.vmem (%p8646_p5), [#allocation5], %s7256_s30 }
  0xa6   : > { %v1200_v0 = vld [vmem:[%s8933_s14] sm:$0xff] (%p8646_p5) }
  0xa7   : > { %v1202_v1 = vld [vmem:[%s8933_s14 + $0x20] sm:$0xff] (%p8646_p5)  ;;  %1201 = vst [vmem:[%s8938_s27] sm:$0xff] (%p8646_p5), %v1200_v0 }
  0xa8   : > { %v1204_v2 = vld [vmem:[%s8933_s14 + $0x40] sm:$0xff] (%p8646_p5)  ;;  %1203 = vst [vmem:[%s8938_s27 + $0x8] sm:$0xff] (%p8646_p5), %v1202_v1 }
  0xa9   : > { %1205 = vst [vmem:[%s8938_s27 + $0x10] sm:$0xff] (%p8646_p5), %v1204_v2  ;;  %v1206_v3 = vld [vmem:[%s8933_s14 + $0x60] sm:$0xff] (%p8646_p5) }
  0xaa   : > { %v1208_v4 = vld [vmem:[%s8933_s14 + $0x80] sm:$0xff]  ;;  %1207 = vst [vmem:[%s8938_s27 + $0x18] sm:$0xff] %v1206_v3 }
  0xab   : > { %v1210_v5 = vld [vmem:[%s8933_s14 + $0xa0] sm:$0xff]  ;;  %1209 = vst [vmem:[%s8938_s27 + $0x20] sm:$0xff] %v1208_v4 }
  0xac   : > { %1211 = vst [vmem:[%s8938_s27 + $0x28] sm:$0xff] %v1210_v5  ;;  %v1212_v6 = vld [vmem:[%s8933_s14 + $0xc0] sm:$0xff] }
  0xad   : > { %v1214_v7 = vld [vmem:[%s8933_s14 + $0xe0] sm:$0xff]  ;;  %1213 = vst [vmem:[%s8938_s27 + $0x30] sm:$0xff] %v1212_v6 }
  0xae   : > { %v1216_v8 = vld [vmem:[%s8933_s14 + $0x100] sm:$0xff]  ;;  %1215 = vst [vmem:[%s8938_s27 + $0x38] sm:$0xff] %v1214_v7 }
  0xaf   : > { %1217 = vst [vmem:[%s8938_s27 + $0x40] sm:$0xff] %v1216_v8  ;;  %v1218_v9 = vld [vmem:[%s8933_s14 + $0x120] sm:$0xff] }
  0xb0   : > { %v1220_v10 = vld [vmem:[%s8933_s14 + $0x140] sm:$0xff]  ;;  %1219 = vst [vmem:[%s8938_s27 + $0x48] sm:$0xff] %v1218_v9 }
  0xb1   : > { %v1222_v11 = vld [vmem:[%s8933_s14 + $0x160] sm:$0xff]  ;;  %1221 = vst [vmem:[%s8938_s27 + $0x50] sm:$0xff] %v1220_v10 }
  0xb2   : > { %1223 = vst [vmem:[%s8938_s27 + $0x58] sm:$0xff] %v1222_v11  ;;  %v1224_v12 = vld [vmem:[%s8933_s14 + $0x180] sm:$0xff] }
  0xb3   : > { %v1226_v13 = vld [vmem:[%s8933_s14 + $0x1a0] sm:$0xff]  ;;  %1225 = vst [vmem:[%s8938_s27 + $0x60] sm:$0xff] %v1224_v12 }
  0xb4   : > { %v1228_v14 = vld [vmem:[%s8933_s14 + $0x1c0] sm:$0xff]  ;;  %1227 = vst [vmem:[%s8938_s27 + $0x68] sm:$0xff] %v1226_v13 }
  0xb5   : > { %1229 = vst [vmem:[%s8938_s27 + $0x70] sm:$0xff] %v1228_v14  ;;  %v1230_v15 = vld [vmem:[%s8933_s14 + $0x1e0] sm:$0xff] }
  0xb6   : > { %v1232_v16 = vld [vmem:[%s8933_s14 + $0x200] sm:$0xff]  ;;  %1231 = vst [vmem:[%s8938_s27 + $0x78] sm:$0xff] %v1230_v15 }
  0xb7   : > { %v1234_v17 = vld [vmem:[%s8933_s14 + $0x220] sm:$0xff]  ;;  %1233 = vst [vmem:[%s8938_s27 + $0x80] sm:$0xff] %v1232_v16 }
  0xb8   : > { %1235 = vst [vmem:[%s8938_s27 + $0x88] sm:$0xff] %v1234_v17  ;;  %v1236_v18 = vld [vmem:[%s8933_s14 + $0x240] sm:$0xff] }
  0xb9   : > { %v1238_v19 = vld [vmem:[%s8933_s14 + $0x260] sm:$0xff]  ;;  %1237 = vst [vmem:[%s8938_s27 + $0x90] sm:$0xff] %v1236_v18 }
  0xba   : > { %v1240_v20 = vld [vmem:[%s8933_s14 + $0x280] sm:$0xff]  ;;  %1239 = vst [vmem:[%s8938_s27 + $0x98] sm:$0xff] %v1238_v19 }
  0xbb   : > { %1241 = vst [vmem:[%s8938_s27 + $0xa0] sm:$0xff] %v1240_v20  ;;  %v1242_v21 = vld [vmem:[%s8933_s14 + $0x2a0] sm:$0xff] }
  0xbc   : > { %v1244_v22 = vld [vmem:[%s8933_s14 + $0x2c0] sm:$0xff]  ;;  %1243 = vst [vmem:[%s8938_s27 + $0xa8] sm:$0xff] %v1242_v21 }
  0xbd   : > { %v1246_v23 = vld [vmem:[%s8933_s14 + $0x2e0] sm:$0xff]  ;;  %1245 = vst [vmem:[%s8938_s27 + $0xb0] sm:$0xff] %v1244_v22 }
  0xbe   : > { %1247 = vst [vmem:[%s8938_s27 + $0xb8] sm:$0xff] %v1246_v23  ;;  %v1248_v24 = vld [vmem:[%s8933_s14 + $0x300] sm:$0xff] }
  0xbf   : > { %v1250_v25 = vld [vmem:[%s8933_s14 + $0x320] sm:$0xff]  ;;  %1249 = vst [vmem:[%s8938_s27 + $0xc0] sm:$0xff] %v1248_v24 }
  0xc0   : > { %v1252_v26 = vld [vmem:[%s8933_s14 + $0x340] sm:$0xff]  ;;  %1251 = vst [vmem:[%s8938_s27 + $0xc8] sm:$0xff] %v1250_v25 }
  0xc1   : > { %1253 = vst [vmem:[%s8938_s27 + $0xd0] sm:$0xff] %v1252_v26  ;;  %v1254_v27 = vld [vmem:[%s8933_s14 + $0x360] sm:$0xff] }
  0xc2   : > { %v1256_v28 = vld [vmem:[%s8933_s14 + $0x380] sm:$0xff]  ;;  %1255 = vst [vmem:[%s8938_s27 + $0xd8] sm:$0xff] %v1254_v27 }
  0xc3   : > { %v1258_v29 = vld [vmem:[%s8933_s14 + $0x3a0] sm:$0xff]  ;;  %1257 = vst [vmem:[%s8938_s27 + $0xe0] sm:$0xff] %v1256_v28 }
  0xc4   : > { %1259 = vst [vmem:[%s8938_s27 + $0xe8] sm:$0xff] %v1258_v29  ;;  %v1260_v30 = vld [vmem:[%s8933_s14 + $0x3c0] sm:$0xff] }
  0xc5   : > { %v1262_v31 = vld [vmem:[%s8933_s14 + $0x3e0] sm:$0xff]  ;;  %1261 = vst [vmem:[%s8938_s27 + $0xf0] sm:$0xff] %v1260_v30 }
  0xc6   : > { %v1264_v32 = vld [vmem:[%s8933_s14 + $0x400] sm:$0xff]  ;;  %1263 = vst [vmem:[%s8938_s27 + $0xf8] sm:$0xff] %v1262_v31 }
  0xc7   : > { %1265 = vst [vmem:[%s8938_s27 + $0x100] sm:$0xff] %v1264_v32  ;;  %v1266_v33 = vld [vmem:[%s8933_s14 + $0x420] sm:$0xff] }
  0xc8   : > { %v1268_v34 = vld [vmem:[%s8933_s14 + $0x440] sm:$0xff]  ;;  %1267 = vst [vmem:[%s8938_s27 + $0x108] sm:$0xff] %v1266_v33 }
  0xc9   : > { %v1270_v35 = vld [vmem:[%s8933_s14 + $0x460] sm:$0xff]  ;;  %1269 = vst [vmem:[%s8938_s27 + $0x110] sm:$0xff] %v1268_v34 }
  0xca   : > { %1271 = vst [vmem:[%s8938_s27 + $0x118] sm:$0xff] %v1270_v35  ;;  %v1272_v36 = vld [vmem:[%s8933_s14 + $0x480] sm:$0xff] }
  0xcb   : > { %v1274_v37 = vld [vmem:[%s8933_s14 + $0x4a0] sm:$0xff]  ;;  %1273 = vst [vmem:[%s8938_s27 + $0x120] sm:$0xff] %v1272_v36 }
  0xcc   : > { %v1276_v38 = vld [vmem:[%s8933_s14 + $0x4c0] sm:$0xff]  ;;  %1275 = vst [vmem:[%s8938_s27 + $0x128] sm:$0xff] %v1274_v37 }
  0xcd   : > { %1277 = vst [vmem:[%s8938_s27 + $0x130] sm:$0xff] %v1276_v38  ;;  %v1278_v39 = vld [vmem:[%s8933_s14 + $0x4e0] sm:$0xff] }
  0xce   : > { %v1280_v40 = vld [vmem:[%s8933_s14 + $0x500] sm:$0xff]  ;;  %1279 = vst [vmem:[%s8938_s27 + $0x138] sm:$0xff] %v1278_v39 }
  0xcf   : > { %v1282_v41 = vld [vmem:[%s8933_s14 + $0x520] sm:$0xff]  ;;  %1281 = vst [vmem:[%s8938_s27 + $0x140] sm:$0xff] %v1280_v40 }
  0xd0   : > { %1283 = vst [vmem:[%s8938_s27 + $0x148] sm:$0xff] %v1282_v41  ;;  %v1284_v42 = vld [vmem:[%s8933_s14 + $0x540] sm:$0xff] }
  0xd1   : > { %v1286_v43 = vld [vmem:[%s8933_s14 + $0x560] sm:$0xff]  ;;  %1285 = vst [vmem:[%s8938_s27 + $0x150] sm:$0xff] %v1284_v42 }
  0xd2   : > { %v1288_v44 = vld [vmem:[%s8933_s14 + $0x580] sm:$0xff]  ;;  %1287 = vst [vmem:[%s8938_s27 + $0x158] sm:$0xff] %v1286_v43 }
  0xd3   : > { %1289 = vst [vmem:[%s8938_s27 + $0x160] sm:$0xff] %v1288_v44  ;;  %v1290_v45 = vld [vmem:[%s8933_s14 + $0x5a0] sm:$0xff] }
  0xd4   : > { %v1292_v46 = vld [vmem:[%s8933_s14 + $0x5c0] sm:$0xff]  ;;  %1291 = vst [vmem:[%s8938_s27 + $0x168] sm:$0xff] %v1290_v45 }
  0xd5   : > { %v1294_v47 = vld [vmem:[%s8933_s14 + $0x5e0] sm:$0xff]  ;;  %1293 = vst [vmem:[%s8938_s27 + $0x170] sm:$0xff] %v1292_v46 }
  0xd6   : > { %1295 = vst [vmem:[%s8938_s27 + $0x178] sm:$0xff] %v1294_v47  ;;  %v1296_v48 = vld [vmem:[%s8933_s14 + $0x600] sm:$0xff] }
  0xd7   : > { %v1298_v49 = vld [vmem:[%s8933_s14 + $0x620] sm:$0xff]  ;;  %1297 = vst [vmem:[%s8938_s27 + $0x180] sm:$0xff] %v1296_v48 }
  0xd8   : > { %v1300_v50 = vld [vmem:[%s8933_s14 + $0x640] sm:$0xff]  ;;  %1299 = vst [vmem:[%s8938_s27 + $0x188] sm:$0xff] %v1298_v49 }
  0xd9   : > { %1301 = vst [vmem:[%s8938_s27 + $0x190] sm:$0xff] %v1300_v50  ;;  %v1302_v51 = vld [vmem:[%s8933_s14 + $0x660] sm:$0xff] }
  0xda   : > { %v1304_v52 = vld [vmem:[%s8933_s14 + $0x680] sm:$0xff]  ;;  %1303 = vst [vmem:[%s8938_s27 + $0x198] sm:$0xff] %v1302_v51 }
  0xdb   : > { %v1306_v53 = vld [vmem:[%s8933_s14 + $0x6a0] sm:$0xff]  ;;  %1305 = vst [vmem:[%s8938_s27 + $0x1a0] sm:$0xff] %v1304_v52 }
  0xdc   : > { %1307 = vst [vmem:[%s8938_s27 + $0x1a8] sm:$0xff] %v1306_v53  ;;  %v1308_v54 = vld [vmem:[%s8933_s14 + $0x6c0] sm:$0xff] }
  0xdd   : > { %v1310_v55 = vld [vmem:[%s8933_s14 + $0x6e0] sm:$0xff]  ;;  %1309 = vst [vmem:[%s8938_s27 + $0x1b0] sm:$0xff] %v1308_v54 }
  0xde   : > { %v1312_v56 = vld [vmem:[%s8933_s14 + $0x700] sm:$0xff]  ;;  %1311 = vst [vmem:[%s8938_s27 + $0x1b8] sm:$0xff] %v1310_v55 }
  0xdf   : > { %1313 = vst [vmem:[%s8938_s27 + $0x1c0] sm:$0xff] %v1312_v56  ;;  %v1314_v57 = vld [vmem:[%s8933_s14 + $0x720] sm:$0xff] }
  0xe0   : > { %v1316_v58 = vld [vmem:[%s8933_s14 + $0x740] sm:$0xff]  ;;  %1315 = vst [vmem:[%s8938_s27 + $0x1c8] sm:$0xff] %v1314_v57 }
  0xe1   : > { %v1318_v59 = vld [vmem:[%s8933_s14 + $0x760] sm:$0xff]  ;;  %1317 = vst [vmem:[%s8938_s27 + $0x1d0] sm:$0xff] %v1316_v58 }
  0xe2   : > { %1319 = vst [vmem:[%s8938_s27 + $0x1d8] sm:$0xff] %v1318_v59  ;;  %v1320_v60 = vld [vmem:[%s8933_s14 + $0x780] sm:$0xff] }
  0xe3   : > { %v1322_v61 = vld [vmem:[%s8933_s14 + $0x7a0] sm:$0xff]  ;;  %1321 = vst [vmem:[%s8938_s27 + $0x1e0] sm:$0xff] %v1320_v60 }
  0xe4   : > { %v1324_v62 = vld [vmem:[%s8933_s14 + $0x7c0] sm:$0xff]  ;;  %1323 = vst [vmem:[%s8938_s27 + $0x1e8] sm:$0xff] %v1322_v61 }
  0xe5   : > { %1325 = vst [vmem:[%s8938_s27 + $0x1f0] sm:$0xff] %v1324_v62  ;;  %v1326_v63 = vld [vmem:[%s8933_s14 + $0x7e0] sm:$0xff] }
  0xe6   : > { %v1328_v0 = vld [vmem:[%s8933_s14 + $0x800] sm:$0xff]  ;;  %1327 = vst [vmem:[%s8938_s27 + $0x1f8] sm:$0xff] %v1326_v63 }
  0xe7   : > { %v1330_v1 = vld [vmem:[%s8933_s14 + $0x820] sm:$0xff]  ;;  %1329 = vst [vmem:[%s8938_s27 + $0x200] sm:$0xff] %v1328_v0 }
  0xe8   : > { %1331 = vst [vmem:[%s8938_s27 + $0x208] sm:$0xff] %v1330_v1  ;;  %v1332_v2 = vld [vmem:[%s8933_s14 + $0x840] sm:$0xff] }
  0xe9   : > { %v1334_v3 = vld [vmem:[%s8933_s14 + $0x860] sm:$0xff]  ;;  %1333 = vst [vmem:[%s8938_s27 + $0x210] sm:$0xff] %v1332_v2 }
  0xea   : > { %v1336_v4 = vld [vmem:[%s8933_s14 + $0x880] sm:$0xff]  ;;  %1335 = vst [vmem:[%s8938_s27 + $0x218] sm:$0xff] %v1334_v3 }
  0xeb   : > { %1337 = vst [vmem:[%s8938_s27 + $0x220] sm:$0xff] %v1336_v4  ;;  %v1338_v5 = vld [vmem:[%s8933_s14 + $0x8a0] sm:$0xff] }
  0xec   : > { %v1340_v6 = vld [vmem:[%s8933_s14 + $0x8c0] sm:$0xff]  ;;  %1339 = vst [vmem:[%s8938_s27 + $0x228] sm:$0xff] %v1338_v5 }
  0xed   : > { %v1342_v7 = vld [vmem:[%s8933_s14 + $0x8e0] sm:$0xff]  ;;  %1341 = vst [vmem:[%s8938_s27 + $0x230] sm:$0xff] %v1340_v6 }
  0xee   : > { %1343 = vst [vmem:[%s8938_s27 + $0x238] sm:$0xff] %v1342_v7  ;;  %v1344_v8 = vld [vmem:[%s8933_s14 + $0x900] sm:$0xff] }
  0xef   : > { %v1346_v9 = vld [vmem:[%s8933_s14 + $0x920] sm:$0xff]  ;;  %1345 = vst [vmem:[%s8938_s27 + $0x240] sm:$0xff] %v1344_v8 }
  0xf0   : > { %v1348_v10 = vld [vmem:[%s8933_s14 + $0x940] sm:$0xff]  ;;  %1347 = vst [vmem:[%s8938_s27 + $0x248] sm:$0xff] %v1346_v9 }
  0xf1   : > { %1349 = vst [vmem:[%s8938_s27 + $0x250] sm:$0xff] %v1348_v10  ;;  %v1350_v11 = vld [vmem:[%s8933_s14 + $0x960] sm:$0xff] }
  0xf2   : > { %v1352_v12 = vld [vmem:[%s8933_s14 + $0x980] sm:$0xff]  ;;  %1351 = vst [vmem:[%s8938_s27 + $0x258] sm:$0xff] %v1350_v11 }
  0xf3   : > { %v1354_v13 = vld [vmem:[%s8933_s14 + $0x9a0] sm:$0xff]  ;;  %1353 = vst [vmem:[%s8938_s27 + $0x260] sm:$0xff] %v1352_v12 }
  0xf4   : > { %1355 = vst [vmem:[%s8938_s27 + $0x268] sm:$0xff] %v1354_v13  ;;  %v1356_v14 = vld [vmem:[%s8933_s14 + $0x9c0] sm:$0xff] }
  0xf5   : > { %v1358_v15 = vld [vmem:[%s8933_s14 + $0x9e0] sm:$0xff]  ;;  %1357 = vst [vmem:[%s8938_s27 + $0x270] sm:$0xff] %v1356_v14 }
  0xf6   : > { %v1360_v16 = vld [vmem:[%s8933_s14 + $0xa00] sm:$0xff]  ;;  %1359 = vst [vmem:[%s8938_s27 + $0x278] sm:$0xff] %v1358_v15 }
  0xf7   : > { %1361 = vst [vmem:[%s8938_s27 + $0x280] sm:$0xff] %v1360_v16  ;;  %v1362_v17 = vld [vmem:[%s8933_s14 + $0xa20] sm:$0xff] }
  0xf8   : > { %v1364_v18 = vld [vmem:[%s8933_s14 + $0xa40] sm:$0xff]  ;;  %1363 = vst [vmem:[%s8938_s27 + $0x288] sm:$0xff] %v1362_v17 }
  0xf9   : > { %v1366_v19 = vld [vmem:[%s8933_s14 + $0xa60] sm:$0xff]  ;;  %1365 = vst [vmem:[%s8938_s27 + $0x290] sm:$0xff] %v1364_v18 }
  0xfa   : > { %1367 = vst [vmem:[%s8938_s27 + $0x298] sm:$0xff] %v1366_v19  ;;  %v1368_v20 = vld [vmem:[%s8933_s14 + $0xa80] sm:$0xff] }
  0xfb   : > { %v1370_v21 = vld [vmem:[%s8933_s14 + $0xaa0] sm:$0xff]  ;;  %1369 = vst [vmem:[%s8938_s27 + $0x2a0] sm:$0xff] %v1368_v20 }
  0xfc   : > { %v1372_v22 = vld [vmem:[%s8933_s14 + $0xac0] sm:$0xff]  ;;  %1371 = vst [vmem:[%s8938_s27 + $0x2a8] sm:$0xff] %v1370_v21 }
  0xfd   : > { %1373 = vst [vmem:[%s8938_s27 + $0x2b0] sm:$0xff] %v1372_v22  ;;  %v1374_v23 = vld [vmem:[%s8933_s14 + $0xae0] sm:$0xff] }
  0xfe   : > { %v1376_v24 = vld [vmem:[%s8933_s14 + $0xb00] sm:$0xff]  ;;  %1375 = vst [vmem:[%s8938_s27 + $0x2b8] sm:$0xff] %v1374_v23 }
  0xff   : > { %v1378_v25 = vld [vmem:[%s8933_s14 + $0xb20] sm:$0xff]  ;;  %1377 = vst [vmem:[%s8938_s27 + $0x2c0] sm:$0xff] %v1376_v24 }
 0x100   : > { %1379 = vst [vmem:[%s8938_s27 + $0x2c8] sm:$0xff] %v1378_v25  ;;  %v1380_v26 = vld [vmem:[%s8933_s14 + $0xb40] sm:$0xff] }
 0x101   : > { %v1382_v27 = vld [vmem:[%s8933_s14 + $0xb60] sm:$0xff]  ;;  %1381 = vst [vmem:[%s8938_s27 + $0x2d0] sm:$0xff] %v1380_v26 }
 0x102   : > { %v1384_v28 = vld [vmem:[%s8933_s14 + $0xb80] sm:$0xff]  ;;  %1383 = vst [vmem:[%s8938_s27 + $0x2d8] sm:$0xff] %v1382_v27 }
 0x103   : > { %1385 = vst [vmem:[%s8938_s27 + $0x2e0] sm:$0xff] %v1384_v28  ;;  %v1386_v29 = vld [vmem:[%s8933_s14 + $0xba0] sm:$0xff] }
 0x104   : > { %v1388_v30 = vld [vmem:[%s8933_s14 + $0xbc0] sm:$0xff]  ;;  %1387 = vst [vmem:[%s8938_s27 + $0x2e8] sm:$0xff] %v1386_v29 }
 0x105   : > { %v1390_v31 = vld [vmem:[%s8933_s14 + $0xbe0] sm:$0xff]  ;;  %1389 = vst [vmem:[%s8938_s27 + $0x2f0] sm:$0xff] %v1388_v30 }
 0x106   : > { %1391 = vst [vmem:[%s8938_s27 + $0x2f8] sm:$0xff] %v1390_v31  ;;  %v1392_v32 = vld [vmem:[%s8933_s14 + $0xc00] sm:$0xff] }
 0x107   : > { %v1394_v33 = vld [vmem:[%s8933_s14 + $0xc20] sm:$0xff]  ;;  %1393 = vst [vmem:[%s8938_s27 + $0x300] sm:$0xff] %v1392_v32 }
 0x108   : > { %v1396_v34 = vld [vmem:[%s8933_s14 + $0xc40] sm:$0xff]  ;;  %1395 = vst [vmem:[%s8938_s27 + $0x308] sm:$0xff] %v1394_v33 }
 0x109   : > { %1397 = vst [vmem:[%s8938_s27 + $0x310] sm:$0xff] %v1396_v34  ;;  %v1398_v35 = vld [vmem:[%s8933_s14 + $0xc60] sm:$0xff] }
 0x10a   : > { %v1400_v36 = vld [vmem:[%s8933_s14 + $0xc80] sm:$0xff]  ;;  %1399 = vst [vmem:[%s8938_s27 + $0x318] sm:$0xff] %v1398_v35 }
 0x10b   : > { %v1402_v37 = vld [vmem:[%s8933_s14 + $0xca0] sm:$0xff]  ;;  %1401 = vst [vmem:[%s8938_s27 + $0x320] sm:$0xff] %v1400_v36 }
 0x10c   : > { %1403 = vst [vmem:[%s8938_s27 + $0x328] sm:$0xff] %v1402_v37  ;;  %v1404_v38 = vld [vmem:[%s8933_s14 + $0xcc0] sm:$0xff] }
 0x10d   : > { %v1406_v39 = vld [vmem:[%s8933_s14 + $0xce0] sm:$0xff]  ;;  %1405 = vst [vmem:[%s8938_s27 + $0x330] sm:$0xff] %v1404_v38 }
 0x10e   : > { %v1408_v40 = vld [vmem:[%s8933_s14 + $0xd00] sm:$0xff]  ;;  %1407 = vst [vmem:[%s8938_s27 + $0x338] sm:$0xff] %v1406_v39 }
 0x10f   : > { %1409 = vst [vmem:[%s8938_s27 + $0x340] sm:$0xff] %v1408_v40  ;;  %v1410_v41 = vld [vmem:[%s8933_s14 + $0xd20] sm:$0xff] }
 0x110   : > { %v1412_v42 = vld [vmem:[%s8933_s14 + $0xd40] sm:$0xff]  ;;  %1411 = vst [vmem:[%s8938_s27 + $0x348] sm:$0xff] %v1410_v41 }
 0x111   : > { %v1414_v43 = vld [vmem:[%s8933_s14 + $0xd60] sm:$0xff]  ;;  %1413 = vst [vmem:[%s8938_s27 + $0x350] sm:$0xff] %v1412_v42 }
 0x112   : > { %1415 = vst [vmem:[%s8938_s27 + $0x358] sm:$0xff] %v1414_v43  ;;  %v1416_v44 = vld [vmem:[%s8933_s14 + $0xd80] sm:$0xff] }
 0x113   : > { %v1418_v45 = vld [vmem:[%s8933_s14 + $0xda0] sm:$0xff]  ;;  %1417 = vst [vmem:[%s8938_s27 + $0x360] sm:$0xff] %v1416_v44 }
 0x114   : > { %v1420_v46 = vld [vmem:[%s8933_s14 + $0xdc0] sm:$0xff]  ;;  %1419 = vst [vmem:[%s8938_s27 + $0x368] sm:$0xff] %v1418_v45 }
 0x115   : > { %1421 = vst [vmem:[%s8938_s27 + $0x370] sm:$0xff] %v1420_v46  ;;  %v1422_v47 = vld [vmem:[%s8933_s14 + $0xde0] sm:$0xff] }
 0x116   : > { %v1424_v48 = vld [vmem:[%s8933_s14 + $0xe00] sm:$0xff]  ;;  %1423 = vst [vmem:[%s8938_s27 + $0x378] sm:$0xff] %v1422_v47 }
 0x117   : > { %v1426_v49 = vld [vmem:[%s8933_s14 + $0xe20] sm:$0xff]  ;;  %1425 = vst [vmem:[%s8938_s27 + $0x380] sm:$0xff] %v1424_v48 }
 0x118   : > { %1427 = vst [vmem:[%s8938_s27 + $0x388] sm:$0xff] %v1426_v49  ;;  %v1428_v50 = vld [vmem:[%s8933_s14 + $0xe40] sm:$0xff] }
 0x119   : > { %v1430_v51 = vld [vmem:[%s8933_s14 + $0xe60] sm:$0xff]  ;;  %1429 = vst [vmem:[%s8938_s27 + $0x390] sm:$0xff] %v1428_v50 }
 0x11a   : > { %v1432_v52 = vld [vmem:[%s8933_s14 + $0xe80] sm:$0xff]  ;;  %1431 = vst [vmem:[%s8938_s27 + $0x398] sm:$0xff] %v1430_v51 }
 0x11b   : > { %1433 = vst [vmem:[%s8938_s27 + $0x3a0] sm:$0xff] %v1432_v52  ;;  %v1434_v53 = vld [vmem:[%s8933_s14 + $0xea0] sm:$0xff] }
 0x11c   : > { %v1436_v54 = vld [vmem:[%s8933_s14 + $0xec0] sm:$0xff]  ;;  %1435 = vst [vmem:[%s8938_s27 + $0x3a8] sm:$0xff] %v1434_v53 }
 0x11d   : > { %v1438_v55 = vld [vmem:[%s8933_s14 + $0xee0] sm:$0xff]  ;;  %1437 = vst [vmem:[%s8938_s27 + $0x3b0] sm:$0xff] %v1436_v54 }
 0x11e   : > { %1439 = vst [vmem:[%s8938_s27 + $0x3b8] sm:$0xff] %v1438_v55  ;;  %v1440_v56 = vld [vmem:[%s8933_s14 + $0xf00] sm:$0xff] }
 0x11f   : > { %v1442_v57 = vld [vmem:[%s8933_s14 + $0xf20] sm:$0xff]  ;;  %1441 = vst [vmem:[%s8938_s27 + $0x3c0] sm:$0xff] %v1440_v56 }
 0x120   : > { %v1444_v58 = vld [vmem:[%s8933_s14 + $0xf40] sm:$0xff]  ;;  %1443 = vst [vmem:[%s8938_s27 + $0x3c8] sm:$0xff] %v1442_v57 }
 0x121   : > { %1445 = vst [vmem:[%s8938_s27 + $0x3d0] sm:$0xff] %v1444_v58  ;;  %v1446_v59 = vld [vmem:[%s8933_s14 + $0xf60] sm:$0xff] }
 0x122   : > { %v1448_v60 = vld [vmem:[%s8933_s14 + $0xf80] sm:$0xff]  ;;  %1447 = vst [vmem:[%s8938_s27 + $0x3d8] sm:$0xff] %v1446_v59 }
 0x123   : > { %v1450_v61 = vld [vmem:[%s8933_s14 + $0xfa0] sm:$0xff]  ;;  %1449 = vst [vmem:[%s8938_s27 + $0x3e0] sm:$0xff] %v1448_v60 }
 0x124   : > { %1451 = vst [vmem:[%s8938_s27 + $0x3e8] sm:$0xff] %v1450_v61  ;;  %v1452_v62 = vld [vmem:[%s8933_s14 + $0xfc0] sm:$0xff] }
 0x125   : > { %v1454_v63 = vld [vmem:[%s8933_s14 + $0xfe0] sm:$0xff]  ;;  %1453 = vst [vmem:[%s8938_s27 + $0x3f0] sm:$0xff] %v1452_v62 }
 0x126   : > { %1455 = vst [vmem:[%s8938_s27 + $0x3f8] sm:$0xff] %v1454_v63 }
 0x127 PF: > { %p7259_p10 = scmp.ge.s32.totalorder %s8540_s20, 1  ;;  %p1504_p11 = scmp.lt.s32.totalorder %s8540_s20, 5 }
 0x129   : > { %p1505_p12 = pnand %p7259_p10, %p1504_p11 }
 0x12b   : > { %1508 = sbr.rel (%p1505_p12) target bundleno = 2710 (0xa96), region = 128 }
 0x132   : > { %s9196_s15 = sand.u32 1, %s8532_s18   ;;  %s10737_s0 = sld [smem:[#allocation32_spill]]  ;;  %vm8543_vm0 = vmmov 0   ;;  %vm3553_vm1 = vcmask 523264   ;;  %vm3630_vm2 = vcmask 64512  }
 0x133   : > { %s10738_s1 = sld [smem:[#allocation33_spill]]  ;;  %s7260_s30 = sshll.u32 %s9196_s15, 10 }
 0x134   : > { %s9205_s12 = scalar_lea.vmem [#allocation4], %s7260_s30  ;;  %s9208_s13 = scalar_lea.vmem [#allocation5], %s7260_s30 }
 0x135   : > { %v8006_v4 = vld [vmem:[%s9205_s12 + $0x4] ss:$8 sps:$4 sm:$0xff]   ;;  %v8010_v6 = vld [vmem:[%s9205_s12] ss:$8 sps:$4 sm:$0xff]   ;;  %v8012_v8 = vld [vmem:[%s9205_s12 + $0x14] ss:$8 sps:$4 sm:$0xff]  }
 0x136   : > { %v8008_v5 = vld [vmem:[%s9208_s13 + $0x4] ss:$8 sps:$4 sm:$0xff]   ;;  %2437 = vmatprep.subr.bf16.mxu0 %v8006_v4  ;;  %v8011_v7 = vld [vmem:[%s9208_s13] ss:$8 sps:$4 sm:$0xff]   ;;  %v8014_v9 = vld [vmem:[%s9208_s13 + $0x14] ss:$8 sps:$4 sm:$0xff]  }
 0x137   : > { %3389 = vmatprep.subr.bf16.mxu1 %v8008_v5  ;;  %2438 = vmatpush1.bf16.msra.mxu0 %v8010_v6  ;;  %v8016_v10 = vld [vmem:[%s9205_s12 + $0x10] ss:$8 sps:$4 sm:$0xff]   ;;  %v8018_v12 = vld [vmem:[%s9205_s12 + $0x24] ss:$8 sps:$4 sm:$0xff]   ;;  %v8022_v14 = vld [vmem:[%s9205_s12 + $0x20] ss:$8 sps:$4 sm:$0xff]  }
 0x138   : > { %v1634_v0 = vld [vmem:[%s10737_s0 + $0x8] sm:$0xff]  ;;  %3390 = vmatpush1.bf16.msra.mxu1 %v8011_v7  ;;  %2439 = vmatprep.subr.bf16.mxu0 %v8012_v8  ;;  %v8017_v11 = vld [vmem:[%s9208_s13 + $0x10] ss:$8 sps:$4 sm:$0xff]   ;;  %v8024_v16 = vld [vmem:[%s9205_s12 + $0x34] ss:$8 sps:$4 sm:$0xff]   ;;  %s8544_s25 = smov 64  }
 0x139   : > { %v1642_v1 = vld [vmem:[%s10738_s1 + $0x8] sm:$0xff]  ;;  %v1650_v2 = vpack.c.bf16 %v1634_v0, %v1634_v0  ;;  %3391 = vmatprep.subr.bf16.mxu1 %v8014_v9  ;;  %v8026_v17 = vld [vmem:[%s9208_s13 + $0x34] ss:$8 sps:$4 sm:$0xff]   ;;  %v8028_v18 = vld [vmem:[%s9205_s12 + $0x30] ss:$8 sps:$4 sm:$0xff]  }
 0x13a   : > { %v2602_v3 = vpack.c.bf16 %v1642_v1, %v1642_v1  ;;  %v8020_v13 = vld [vmem:[%s9208_s13 + $0x24] ss:$8 sps:$4 sm:$0xff]   ;;  %v8023_v15 = vld [vmem:[%s9208_s13 + $0x20] ss:$8 sps:$4 sm:$0xff]   ;;  %v8029_v19 = vld [vmem:[%s9208_s13 + $0x30] ss:$8 sps:$4 sm:$0xff]  }
 0x13b   : > { %2469 = vmatprep.mubr.bf16.mxu0 %v1650_v2  ;;  %2440 = vmatpush1.bf16.msra.mxu0 %v8016_v10  ;;  %v8030_v20 = vld [vmem:[%s9205_s12 + $0x44] ss:$8 sps:$4 sm:$0xff]   ;;  %v8034_v22 = vld [vmem:[%s9205_s12 + $0x40] ss:$8 sps:$4 sm:$0xff]   ;;  %v8036_v24 = vld [vmem:[%s9205_s12 + $0x54] ss:$8 sps:$4 sm:$0xff]  }
 0x13c   : > { %3421 = vmatprep.mubr.bf16.mxu1 %v2602_v3  ;;  %3392 = vmatpush1.bf16.msra.mxu1 %v8017_v11  ;;  %v8032_v21 = vld [vmem:[%s9208_s13 + $0x44] ss:$8 sps:$4 sm:$0xff]   ;;  %v8035_v23 = vld [vmem:[%s9208_s13 + $0x40] ss:$8 sps:$4 sm:$0xff]   ;;  %v8038_v25 = vld [vmem:[%s9208_s13 + $0x54] ss:$8 sps:$4 sm:$0xff]  }
 0x13d   : > { %2441 = vmatprep.subr.bf16.mxu0 %v8018_v12  ;;  %3393 = vmatprep.subr.bf16.mxu1 %v8020_v13  ;;  %v8040_v26 = vld [vmem:[%s9205_s12 + $0x50] ss:$8 sps:$4 sm:$0xff]   ;;  %v8042_v28 = vld [vmem:[%s9205_s12 + $0x64] ss:$8 sps:$4 sm:$0xff]   ;;  %v8046_v30 = vld [vmem:[%s9205_s12 + $0x60] ss:$8 sps:$4 sm:$0xff]  }
 0x13e   : > { %v8041_v27 = vld [vmem:[%s9208_s13 + $0x50] ss:$8 sps:$4 sm:$0xff]   ;;  %v8044_v29 = vld [vmem:[%s9208_s13 + $0x64] ss:$8 sps:$4 sm:$0xff]   ;;  %v8047_v31 = vld [vmem:[%s9208_s13 + $0x60] ss:$8 sps:$4 sm:$0xff]  }
 0x13f   : > { %2442 = vmatpush1.bf16.msra.mxu0 %v8022_v14  ;;  %v8048_v32 = vld [vmem:[%s9205_s12 + $0x74] ss:$8 sps:$4 sm:$0xff]   ;;  %v8052_v34 = vld [vmem:[%s9205_s12 + $0x70] ss:$8 sps:$4 sm:$0xff]   ;;  %v8054_v36 = vld [vmem:[%s9205_s12 + $0x84] ss:$8 sps:$4 sm:$0xff]  }
 0x140   : > { %3394 = vmatpush1.bf16.msra.mxu1 %v8023_v15  ;;  %2443 = vmatprep.subr.bf16.mxu0 %v8024_v16  ;;  %v8050_v33 = vld [vmem:[%s9208_s13 + $0x74] ss:$8 sps:$4 sm:$0xff]   ;;  %v8053_v35 = vld [vmem:[%s9208_s13 + $0x70] ss:$8 sps:$4 sm:$0xff]   ;;  %v8056_v37 = vld [vmem:[%s9208_s13 + $0x84] ss:$8 sps:$4 sm:$0xff]  }
 0x141   : > { %3395 = vmatprep.subr.bf16.mxu1 %v8026_v17  ;;  %v8058_v38 = vld [vmem:[%s9205_s12 + $0x80] ss:$8 sps:$4 sm:$0xff]   ;;  %v8060_v40 = vld [vmem:[%s9205_s12 + $0x94] ss:$8 sps:$4 sm:$0xff]   ;;  %v8064_v42 = vld [vmem:[%s9205_s12 + $0x90] ss:$8 sps:$4 sm:$0xff]  }
 0x142   : > { %v8059_v39 = vld [vmem:[%s9208_s13 + $0x80] ss:$8 sps:$4 sm:$0xff]   ;;  %v8062_v41 = vld [vmem:[%s9208_s13 + $0x94] ss:$8 sps:$4 sm:$0xff]   ;;  %v8065_v43 = vld [vmem:[%s9208_s13 + $0x90] ss:$8 sps:$4 sm:$0xff]  }
 0x143   : > { %2444 = vmatpush1.bf16.msra.mxu0 %v8028_v18  ;;  %v8066_v44 = vld [vmem:[%s9205_s12 + $0xa4] ss:$8 sps:$4 sm:$0xff]   ;;  %v8070_v46 = vld [vmem:[%s9205_s12 + $0xa0] ss:$8 sps:$4 sm:$0xff]   ;;  %v8072_v48 = vld [vmem:[%s9205_s12 + $0xb4] ss:$8 sps:$4 sm:$0xff]  }
 0x144   : > { %3396 = vmatpush1.bf16.msra.mxu1 %v8029_v19  ;;  %2445 = vmatprep.subr.bf16.mxu0 %v8030_v20  ;;  %v8068_v45 = vld [vmem:[%s9208_s13 + $0xa4] ss:$8 sps:$4 sm:$0xff]   ;;  %v8071_v47 = vld [vmem:[%s9208_s13 + $0xa0] ss:$8 sps:$4 sm:$0xff]   ;;  %v8074_v49 = vld [vmem:[%s9208_s13 + $0xb4] ss:$8 sps:$4 sm:$0xff]  }
 0x145   : > { %3397 = vmatprep.subr.bf16.mxu1 %v8032_v21  ;;  %v8076_v50 = vld [vmem:[%s9205_s12 + $0xb0] ss:$8 sps:$4 sm:$0xff]   ;;  %v8078_v52 = vld [vmem:[%s9205_s12 + $0xc4] ss:$8 sps:$4 sm:$0xff]   ;;  %v8082_v54 = vld [vmem:[%s9205_s12 + $0xc0] ss:$8 sps:$4 sm:$0xff]  }
 0x146   : > { %v8077_v51 = vld [vmem:[%s9208_s13 + $0xb0] ss:$8 sps:$4 sm:$0xff]   ;;  %v8080_v53 = vld [vmem:[%s9208_s13 + $0xc4] ss:$8 sps:$4 sm:$0xff]   ;;  %v8083_v55 = vld [vmem:[%s9208_s13 + $0xc0] ss:$8 sps:$4 sm:$0xff]  }
 0x147   : > { %2446 = vmatpush1.bf16.msra.mxu0 %v8034_v22  ;;  %v8084_v56 = vld [vmem:[%s9205_s12 + $0xd4] ss:$8 sps:$4 sm:$0xff]   ;;  %v8088_v58 = vld [vmem:[%s9205_s12 + $0xd0] ss:$8 sps:$4 sm:$0xff]   ;;  %v8090_v60 = vld [vmem:[%s9205_s12 + $0xe4] ss:$8 sps:$4 sm:$0xff]  }
 0x148   : > { %3398 = vmatpush1.bf16.msra.mxu1 %v8035_v23  ;;  %2447 = vmatprep.subr.bf16.mxu0 %v8036_v24  ;;  %v8086_v57 = vld [vmem:[%s9208_s13 + $0xd4] ss:$8 sps:$4 sm:$0xff]   ;;  %v8089_v59 = vld [vmem:[%s9208_s13 + $0xd0] ss:$8 sps:$4 sm:$0xff]   ;;  %v8092_v61 = vld [vmem:[%s9208_s13 + $0xe4] ss:$8 sps:$4 sm:$0xff]  }
 0x149   : > { %3399 = vmatprep.subr.bf16.mxu1 %v8038_v25  ;;  %v8094_v62 = vld [vmem:[%s9205_s12 + $0xe0] ss:$8 sps:$4 sm:$0xff]   ;;  %v8096_v0 = vld [vmem:[%s9205_s12 + $0xf4] ss:$8 sps:$4 sm:$0xff]   ;;  %v8100_v4 = vld [vmem:[%s9205_s12 + $0xf0] ss:$8 sps:$4 sm:$0xff]  }
 0x14a   : > { %v8095_v63 = vld [vmem:[%s9208_s13 + $0xe0] ss:$8 sps:$4 sm:$0xff]   ;;  %v8098_v1 = vld [vmem:[%s9208_s13 + $0xf4] ss:$8 sps:$4 sm:$0xff]   ;;  %v8101_v5 = vld [vmem:[%s9208_s13 + $0xf0] ss:$8 sps:$4 sm:$0xff]  }
 0x14b   : > { %2448 = vmatpush1.bf16.msra.mxu0 %v8040_v26  ;;  %v1633_v2 = vld [vmem:[%s10737_s0] sm:$0xff]  ;;  %v8110_v12 = vld [vmem:[%s9205_s12 + $0x114] ss:$8 sps:$4 sm:$0xff]   ;;  %v8108_v14 = vld [vmem:[%s9205_s12 + $0x110] ss:$8 sps:$4 sm:$0xff]  }
 0x14c   : > { %3400 = vmatpush1.bf16.msra.mxu1 %v8041_v27  ;;  %2449 = vmatprep.subr.bf16.mxu0 %v8042_v28  ;;  %v1641_v3 = vld [vmem:[%s10738_s1] sm:$0xff]  ;;  %v1649_v10 = vpack.c.bf16 %v1633_v2, %v1633_v2  ;;  %v8113_v13 = vld [vmem:[%s9208_s13 + $0x114] ss:$8 sps:$4 sm:$0xff]   ;;  %v8111_v15 = vld [vmem:[%s9208_s13 + $0x110] ss:$8 sps:$4 sm:$0xff]  }
 0x14d   : > { %3401 = vmatprep.subr.bf16.mxu1 %v8044_v29  ;;  %v8104_v6 = vld [vmem:[%s9205_s12 + $0x104] ss:$8 sps:$4 sm:$0xff]   ;;  %v8102_v8 = vld [vmem:[%s9205_s12 + $0x100] ss:$8 sps:$4 sm:$0xff]   ;;  %v2601_v11 = vpack.c.bf16 %v1641_v3, %v1641_v3  ;;  %v8122_v20 = vld [vmem:[%s9205_s12 + $0x134] ss:$8 sps:$4 sm:$0xff]  }
 0x14e   : > { %v8107_v7 = vld [vmem:[%s9208_s13 + $0x104] ss:$8 sps:$4 sm:$0xff]   ;;  %v8105_v9 = vld [vmem:[%s9208_s13 + $0x100] ss:$8 sps:$4 sm:$0xff]   ;;  %v8125_v21 = vld [vmem:[%s9208_s13 + $0x134] ss:$8 sps:$4 sm:$0xff]  }
 0x14f   : > { %2450 = vmatpush1.bf16.msra.mxu0 %v8046_v30  ;;  %v8116_v16 = vld [vmem:[%s9205_s12 + $0x124] ss:$8 sps:$4 sm:$0xff]   ;;  %v8114_v18 = vld [vmem:[%s9205_s12 + $0x120] ss:$8 sps:$4 sm:$0xff]   ;;  %v8120_v22 = vld [vmem:[%s9205_s12 + $0x130] ss:$8 sps:$4 sm:$0xff]  }
 0x150   : > { %3402 = vmatpush1.bf16.msra.mxu1 %v8047_v31  ;;  %2451 = vmatprep.subr.bf16.mxu0 %v8048_v32  ;;  %v8119_v17 = vld [vmem:[%s9208_s13 + $0x124] ss:$8 sps:$4 sm:$0xff]   ;;  %v8117_v19 = vld [vmem:[%s9208_s13 + $0x120] ss:$8 sps:$4 sm:$0xff]   ;;  %v8123_v23 = vld [vmem:[%s9208_s13 + $0x130] ss:$8 sps:$4 sm:$0xff]  }
 0x151   : > { %3403 = vmatprep.subr.bf16.mxu1 %v8050_v33  ;;  %v8128_v24 = vld [vmem:[%s9205_s12 + $0x144] ss:$8 sps:$4 sm:$0xff]   ;;  %v8126_v26 = vld [vmem:[%s9205_s12 + $0x140] ss:$8 sps:$4 sm:$0xff]   ;;  %v8134_v28 = vld [vmem:[%s9205_s12 + $0x154] ss:$8 sps:$4 sm:$0xff]  }
 0x152   : > { %v8131_v25 = vld [vmem:[%s9208_s13 + $0x144] ss:$8 sps:$4 sm:$0xff]   ;;  %v8129_v27 = vld [vmem:[%s9208_s13 + $0x140] ss:$8 sps:$4 sm:$0xff]   ;;  %v8137_v29 = vld [vmem:[%s9208_s13 + $0x154] ss:$8 sps:$4 sm:$0xff]  }
 0x153   : > { %2452 = vmatpush1.bf16.msra.mxu0 %v8052_v34  ;;  %v8132_v30 = vld [vmem:[%s9205_s12 + $0x150] ss:$8 sps:$4 sm:$0xff]   ;;  %v8140_v32 = vld [vmem:[%s9205_s12 + $0x164] ss:$8 sps:$4 sm:$0xff]  }
 0x154   : > { %3404 = vmatpush1.bf16.msra.mxu1 %v8053_v35  ;;  %2453 = vmatprep.subr.bf16.mxu0 %v8054_v36  ;;  %v8135_v31 = vld [vmem:[%s9208_s13 + $0x150] ss:$8 sps:$4 sm:$0xff]   ;;  %v8143_v33 = vld [vmem:[%s9208_s13 + $0x164] ss:$8 sps:$4 sm:$0xff]  }
 0x155   : > { %3405 = vmatprep.subr.bf16.mxu1 %v8056_v37  ;;  %v1636_v34 = vld [vmem:[%s10737_s0 + $0x18] sm:$0xff]  ;;  %v8138_v37 = vld [vmem:[%s9205_s12 + $0x160] ss:$8 sps:$4 sm:$0xff]  }
 0x156   : > { %v1652_v35 = vpack.c.bf16 %v1636_v34, %v1636_v34  ;;  %v1644_v36 = vld [vmem:[%s10738_s1 + $0x18] sm:$0xff] }
 0x157   : > { %2454 = vmatpush1.bf16.msra.mxu0 %v8058_v38  ;;  %v8141_v38 = vld [vmem:[%s9208_s13 + $0x160] ss:$8 sps:$4 sm:$0xff]   ;;  %v8180_v2 = vld [vmem:[%s9205_s12 + $0x1d0] ss:$8 sps:$4 sm:$0xff]  }
 0x158   : > { %3406 = vmatpush1.bf16.msra.mxu1 %v8059_v39  ;;  %2455 = vmatprep.subr.bf16.mxu0 %v8060_v40  ;;  %v8146_v39 = vld [vmem:[%s9205_s12 + $0x174] ss:$8 sps:$4 sm:$0xff]   ;;  %v2604_v40 = vpack.c.bf16 %v1644_v36, %v1644_v36  ;;  %v8183_v3 = vld [vmem:[%s9208_s13 + $0x1d0] ss:$8 sps:$4 sm:$0xff]   ;;  %v8224_v36 = vld [vmem:[%s9205_s12 + $0x244] ss:$8 sps:$4 sm:$0xff]  }
 0x159   : > { %3407 = vmatprep.subr.bf16.mxu1 %v8062_v41  ;;  %v8149_v41 = vld [vmem:[%s9208_s13 + $0x174] ss:$8 sps:$4 sm:$0xff]   ;;  %v8216_v34 = vld [vmem:[%s9205_s12 + $0x230] ss:$8 sps:$4 sm:$0xff]  }
 0x15b   : > { %2456 = vmatpush1.bf16.msra.mxu0 %v8064_v42  ;;  %v8144_v42 = vld [vmem:[%s9205_s12 + $0x170] ss:$8 sps:$4 sm:$0xff]  }
 0x15c   : > { %3408 = vmatpush1.bf16.msra.mxu1 %v8065_v43  ;;  %2457 = vmatprep.subr.bf16.mxu0 %v8066_v44  ;;  %v8147_v43 = vld [vmem:[%s9208_s13 + $0x170] ss:$8 sps:$4 sm:$0xff]   ;;  %v8152_v44 = vld [vmem:[%s9205_s12 + $0x184] ss:$8 sps:$4 sm:$0xff]  }
 0x15d   : > { %3409 = vmatprep.subr.bf16.mxu1 %v8068_v45  ;;  %v8155_v45 = vld [vmem:[%s9208_s13 + $0x184] ss:$8 sps:$4 sm:$0xff]  }
 0x15f   : > { %2458 = vmatpush1.bf16.msra.mxu0 %v8070_v46  ;;  %v8150_v46 = vld [vmem:[%s9205_s12 + $0x180] ss:$8 sps:$4 sm:$0xff]  }
 0x160   : > { %3410 = vmatpush1.bf16.msra.mxu1 %v8071_v47  ;;  %2459 = vmatprep.subr.bf16.mxu0 %v8072_v48  ;;  %v8153_v47 = vld [vmem:[%s9208_s13 + $0x180] ss:$8 sps:$4 sm:$0xff]   ;;  %v8158_v48 = vld [vmem:[%s9205_s12 + $0x194] ss:$8 sps:$4 sm:$0xff]  }
 0x161   : > { %3411 = vmatprep.subr.bf16.mxu1 %v8074_v49  ;;  %v8161_v49 = vld [vmem:[%s9208_s13 + $0x194] ss:$8 sps:$4 sm:$0xff]  }
 0x163   : > { %2460 = vmatpush1.bf16.msra.mxu0 %v8076_v50  ;;  %v8156_v50 = vld [vmem:[%s9205_s12 + $0x190] ss:$8 sps:$4 sm:$0xff]  }
 0x164   : > { %3412 = vmatpush1.bf16.msra.mxu1 %v8077_v51  ;;  %2461 = vmatprep.subr.bf16.mxu0 %v8078_v52  ;;  %v8159_v51 = vld [vmem:[%s9208_s13 + $0x190] ss:$8 sps:$4 sm:$0xff]   ;;  %v8164_v52 = vld [vmem:[%s9205_s12 + $0x1a4] ss:$8 sps:$4 sm:$0xff]  }
 0x165   : > { %3413 = vmatprep.subr.bf16.mxu1 %v8080_v53  ;;  %v8167_v53 = vld [vmem:[%s9208_s13 + $0x1a4] ss:$8 sps:$4 sm:$0xff]  }
 0x167   : > { %2462 = vmatpush1.bf16.msra.mxu0 %v8082_v54  ;;  %v8162_v54 = vld [vmem:[%s9205_s12 + $0x1a0] ss:$8 sps:$4 sm:$0xff]  }
 0x168   : > { %3414 = vmatpush1.bf16.msra.mxu1 %v8083_v55  ;;  %2463 = vmatprep.subr.bf16.mxu0 %v8084_v56  ;;  %v8165_v55 = vld [vmem:[%s9208_s13 + $0x1a0] ss:$8 sps:$4 sm:$0xff]   ;;  %v8170_v56 = vld [vmem:[%s9205_s12 + $0x1b4] ss:$8 sps:$4 sm:$0xff]  }
 0x169   : > { %3415 = vmatprep.subr.bf16.mxu1 %v8086_v57  ;;  %v8173_v57 = vld [vmem:[%s9208_s13 + $0x1b4] ss:$8 sps:$4 sm:$0xff]  }
 0x16b   : > { %2464 = vmatpush1.bf16.msra.mxu0 %v8088_v58  ;;  %v8168_v58 = vld [vmem:[%s9205_s12 + $0x1b0] ss:$8 sps:$4 sm:$0xff]  }
 0x16c   : > { %3416 = vmatpush1.bf16.msra.mxu1 %v8089_v59  ;;  %2465 = vmatprep.subr.bf16.mxu0 %v8090_v60  ;;  %v8171_v59 = vld [vmem:[%s9208_s13 + $0x1b0] ss:$8 sps:$4 sm:$0xff]   ;;  %v8176_v60 = vld [vmem:[%s9205_s12 + $0x1c4] ss:$8 sps:$4 sm:$0xff]  }
 0x16d   : > { %3417 = vmatprep.subr.bf16.mxu1 %v8092_v61  ;;  %v8179_v61 = vld [vmem:[%s9208_s13 + $0x1c4] ss:$8 sps:$4 sm:$0xff]  }
 0x16f   : > { %2466 = vmatpush1.bf16.msra.mxu0 %v8094_v62  ;;  %v8174_v62 = vld [vmem:[%s9205_s12 + $0x1c0] ss:$8 sps:$4 sm:$0xff]  }
 0x170   : > { %3418 = vmatpush1.bf16.msra.mxu1 %v8095_v63  ;;  %2467 = vmatprep.subr.bf16.mxu0 %v8096_v0  ;;  %v8177_v63 = vld [vmem:[%s9208_s13 + $0x1c0] ss:$8 sps:$4 sm:$0xff]   ;;  %v8182_v0 = vld [vmem:[%s9205_s12 + $0x1d4] ss:$8 sps:$4 sm:$0xff]  }
 0x171   : > { %3419 = vmatprep.subr.bf16.mxu1 %v8098_v1  ;;  %v8185_v1 = vld [vmem:[%s9208_s13 + $0x1d4] ss:$8 sps:$4 sm:$0xff]  }
 0x173   : > { %2468 = vmatpush1.bf16.msra.mxu0 %v8100_v4  ;;  %v8188_v4 = vld [vmem:[%s9205_s12 + $0x1e4] ss:$8 sps:$4 sm:$0xff]  }
 0x174   : > { %3420 = vmatpush1.bf16.msra.mxu1 %v8101_v5  ;;  %2478 = vmatprep.subr.bf16.mxu0 %v8104_v6  ;;  %v8191_v5 = vld [vmem:[%s9208_s13 + $0x1e4] ss:$8 sps:$4 sm:$0xff]   ;;  %v8186_v6 = vld [vmem:[%s9205_s12 + $0x1e0] ss:$8 sps:$4 sm:$0xff]  }
 0x175   : > { %3430 = vmatprep.subr.bf16.mxu1 %v8107_v7  ;;  %v8189_v7 = vld [vmem:[%s9208_s13 + $0x1e0] ss:$8 sps:$4 sm:$0xff]  }
 0x176   : > { %2470 = vmatmul.mubr.bf16.vlgmr.msra.gmra.mrb[0].mxu0 %v1649_v10  ;;  %v8192_v10 = vld [vmem:[%s9205_s12 + $0x1f0] ss:$8 sps:$4 sm:$0xff]  }
 0x177   : > { %3422 = vmatmul.mubr.bf16.vlgmr.msra.gmra.mrb[0].mxu1 %v2601_v11  ;;  %2479 = vmatpush1.bf16.msra.mxu0 %v8102_v8  ;;  %v8194_v8 = vld [vmem:[%s9205_s12 + $0x1f4] ss:$8 sps:$4 sm:$0xff]   ;;  %v8195_v11 = vld [vmem:[%s9208_s13 + $0x1f0] ss:$8 sps:$4 sm:$0xff]  }
 0x178   : > { %3431 = vmatpush1.bf16.msra.mxu1 %v8105_v9  ;;  %2480 = vmatprep.subr.bf16.mxu0 %v8110_v12  ;;  %v8197_v9 = vld [vmem:[%s9208_s13 + $0x1f4] ss:$8 sps:$4 sm:$0xff]   ;;  %v8200_v12 = vld [vmem:[%s9205_s12 + $0x204] ss:$8 sps:$4 sm:$0xff]  }
 0x179   : > { %3432 = vmatprep.subr.bf16.mxu1 %v8113_v13  ;;  %2510 = vmatprep.mubr.bf16.mxu0 %v1652_v35  ;;  %v1635_v13 = vld [vmem:[%s10737_s0 + $0x10] sm:$0xff] }
 0x17a   : > { %3462 = vmatprep.mubr.bf16.mxu1 %v2604_v40  ;;  %v8219_v35 = vld [vmem:[%s9208_s13 + $0x230] ss:$8 sps:$4 sm:$0xff]   ;;  %v8230_v40 = vld [vmem:[%s9205_s12 + $0x254] ss:$8 sps:$4 sm:$0xff]  }
 0x17b   : > { %2481 = vmatpush1.bf16.msra.mxu0 %v8108_v14  ;;  %v9356_v14 = vld [vmem:[%s10738_s1 + $0x10] sm:$0xff] }
 0x17c   : > { %3433 = vmatpush1.bf16.msra.mxu1 %v8111_v15  ;;  %2482 = vmatprep.subr.bf16.mxu0 %v8116_v16  ;;  %v8203_v15 = vld [vmem:[%s9208_s13 + $0x204] ss:$8 sps:$4 sm:$0xff]   ;;  %v8198_v16 = vld [vmem:[%s9205_s12 + $0x200] ss:$8 sps:$4 sm:$0xff]  }
 0x17d   : > { %3434 = vmatprep.subr.bf16.mxu1 %v8119_v17  ;;  %v8201_v17 = vld [vmem:[%s9208_s13 + $0x200] ss:$8 sps:$4 sm:$0xff]  }
 0x17f   : > { %2483 = vmatpush1.bf16.msra.mxu0 %v8114_v18  ;;  %v1651_v18 = vpack.c.bf16 %v1635_v13, %v1635_v13  ;;  %v8287_v13 = vld [vmem:[%s9208_s13 + $0x2e4] ss:$8 sps:$4 sm:$0xff]  }
 0x180   : > { %3435 = vmatpush1.bf16.msra.mxu1 %v8117_v19  ;;  %2484 = vmatprep.subr.bf16.mxu0 %v8122_v20  ;;  %v2603_v19 = vpack.c.bf16 %v9356_v14, %v9356_v14  ;;  %v8206_v20 = vld [vmem:[%s9205_s12 + $0x214] ss:$8 sps:$4 sm:$0xff]  }
 0x181   : > { %3436 = vmatprep.subr.bf16.mxu1 %v8125_v21  ;;  %v8209_v21 = vld [vmem:[%s9208_s13 + $0x214] ss:$8 sps:$4 sm:$0xff]  }
 0x183   : > { %2485 = vmatpush1.bf16.msra.mxu0 %v8120_v22  ;;  %v1638_v22 = vld [vmem:[%s10737_s0 + $0x28] sm:$0xff] }
 0x184   : > { %3437 = vmatpush1.bf16.msra.mxu1 %v8123_v23  ;;  %2486 = vmatprep.subr.bf16.mxu0 %v8128_v24  ;;  %v1654_v23 = vpack.c.bf16 %v1638_v22, %v1638_v22  ;;  %v9371_v24 = vld [vmem:[%s10738_s1 + $0x28] sm:$0xff]  ;;  %v9441_v22 = vld [vmem:[%s10738_s1 + $0x20] sm:$0xff] }
 0x185   : > { %3438 = vmatprep.subr.bf16.mxu1 %v8131_v25  ;;  %v8204_v25 = vld [vmem:[%s9205_s12 + $0x210] ss:$8 sps:$4 sm:$0xff]  }
 0x187   : > { %2487 = vmatpush1.bf16.msra.mxu0 %v8126_v26  ;;  %v8207_v26 = vld [vmem:[%s9208_s13 + $0x210] ss:$8 sps:$4 sm:$0xff]  }
 0x188   : > { %3439 = vmatpush1.bf16.msra.mxu1 %v8129_v27  ;;  %2488 = vmatprep.subr.bf16.mxu0 %v8134_v28  ;;  %v8212_v27 = vld [vmem:[%s9205_s12 + $0x224] ss:$8 sps:$4 sm:$0xff]   ;;  %v2606_v28 = vpack.c.bf16 %v9371_v24, %v9371_v24 }
 0x189   : > { %3440 = vmatprep.subr.bf16.mxu1 %v8137_v29  ;;  %v8215_v29 = vld [vmem:[%s9208_s13 + $0x224] ss:$8 sps:$4 sm:$0xff]  }
 0x18b   : > { %2489 = vmatpush1.bf16.msra.mxu0 %v8132_v30  ;;  %v8210_v30 = vld [vmem:[%s9205_s12 + $0x220] ss:$8 sps:$4 sm:$0xff]  }
 0x18c   : > { %3441 = vmatpush1.bf16.msra.mxu1 %v8135_v31  ;;  %2490 = vmatprep.subr.bf16.mxu0 %v8140_v32  ;;  %v8213_v31 = vld [vmem:[%s9208_s13 + $0x220] ss:$8 sps:$4 sm:$0xff]   ;;  %v8218_v32 = vld [vmem:[%s9205_s12 + $0x234] ss:$8 sps:$4 sm:$0xff]  }
 0x18d   : > { %3442 = vmatprep.subr.bf16.mxu1 %v8143_v33  ;;  %v8221_v33 = vld [vmem:[%s9208_s13 + $0x234] ss:$8 sps:$4 sm:$0xff]  }
 0x18f   : > { %2491 = vmatpush1.bf16.msra.mxu0 %v8138_v37  ;;  %v8227_v37 = vld [vmem:[%s9208_s13 + $0x244] ss:$8 sps:$4 sm:$0xff]  }
 0x190   : > { %3443 = vmatpush1.bf16.msra.mxu1 %v8141_v38  ;;  %2492 = vmatprep.subr.bf16.mxu0 %v8146_v39  ;;  %v8222_v38 = vld [vmem:[%s9205_s12 + $0x240] ss:$8 sps:$4 sm:$0xff]  }
 0x191   : > { %3444 = vmatprep.subr.bf16.mxu1 %v8149_v41  ;;  %v8225_v39 = vld [vmem:[%s9208_s13 + $0x240] ss:$8 sps:$4 sm:$0xff]   ;;  %v8233_v41 = vld [vmem:[%s9208_s13 + $0x254] ss:$8 sps:$4 sm:$0xff]  }
 0x193   : > { %2493 = vmatpush1.bf16.msra.mxu0 %v8144_v42  ;;  %v8228_v42 = vld [vmem:[%s9205_s12 + $0x250] ss:$8 sps:$4 sm:$0xff]  }
 0x194   : > { %3445 = vmatpush1.bf16.msra.mxu1 %v8147_v43  ;;  %2494 = vmatprep.subr.bf16.mxu0 %v8152_v44  ;;  %v8231_v43 = vld [vmem:[%s9208_s13 + $0x250] ss:$8 sps:$4 sm:$0xff]   ;;  %v8236_v44 = vld [vmem:[%s9205_s12 + $0x264] ss:$8 sps:$4 sm:$0xff]  }
 0x195   : > { %3446 = vmatprep.subr.bf16.mxu1 %v8155_v45  ;;  %v8239_v45 = vld [vmem:[%s9208_s13 + $0x264] ss:$8 sps:$4 sm:$0xff]  }
 0x197   : > { %2495 = vmatpush1.bf16.msra.mxu0 %v8150_v46  ;;  %v8234_v46 = vld [vmem:[%s9205_s12 + $0x260] ss:$8 sps:$4 sm:$0xff]  }
 0x198   : > { %3447 = vmatpush1.bf16.msra.mxu1 %v8153_v47  ;;  %2496 = vmatprep.subr.bf16.mxu0 %v8158_v48  ;;  %v8237_v47 = vld [vmem:[%s9208_s13 + $0x260] ss:$8 sps:$4 sm:$0xff]   ;;  %v8242_v48 = vld [vmem:[%s9205_s12 + $0x274] ss:$8 sps:$4 sm:$0xff]  }
 0x199   : > { %3448 = vmatprep.subr.bf16.mxu1 %v8161_v49  ;;  %v8245_v49 = vld [vmem:[%s9208_s13 + $0x274] ss:$8 sps:$4 sm:$0xff]  }
 0x19b   : > { %2497 = vmatpush1.bf16.msra.mxu0 %v8156_v50  ;;  %v8240_v50 = vld [vmem:[%s9205_s12 + $0x270] ss:$8 sps:$4 sm:$0xff]  }
 0x19c   : > { %3449 = vmatpush1.bf16.msra.mxu1 %v8159_v51  ;;  %2498 = vmatprep.subr.bf16.mxu0 %v8164_v52  ;;  %v8243_v51 = vld [vmem:[%s9208_s13 + $0x270] ss:$8 sps:$4 sm:$0xff]   ;;  %v8248_v52 = vld [vmem:[%s9205_s12 + $0x284] ss:$8 sps:$4 sm:$0xff]  }
 0x19d   : > { %3450 = vmatprep.subr.bf16.mxu1 %v8167_v53  ;;  %v8251_v53 = vld [vmem:[%s9208_s13 + $0x284] ss:$8 sps:$4 sm:$0xff]  }
 0x19f   : > { %2499 = vmatpush1.bf16.msra.mxu0 %v8162_v54  ;;  %v8246_v54 = vld [vmem:[%s9205_s12 + $0x280] ss:$8 sps:$4 sm:$0xff]  }
 0x1a0   : > { %3451 = vmatpush1.bf16.msra.mxu1 %v8165_v55  ;;  %2500 = vmatprep.subr.bf16.mxu0 %v8170_v56  ;;  %v8249_v55 = vld [vmem:[%s9208_s13 + $0x280] ss:$8 sps:$4 sm:$0xff]   ;;  %v8254_v56 = vld [vmem:[%s9205_s12 + $0x294] ss:$8 sps:$4 sm:$0xff]  }
 0x1a1   : > { %3452 = vmatprep.subr.bf16.mxu1 %v8173_v57  ;;  %v8257_v57 = vld [vmem:[%s9208_s13 + $0x294] ss:$8 sps:$4 sm:$0xff]  }
 0x1a3   : > { %2501 = vmatpush1.bf16.msra.mxu0 %v8168_v58  ;;  %v8252_v58 = vld [vmem:[%s9205_s12 + $0x290] ss:$8 sps:$4 sm:$0xff]  }
 0x1a4   : > { %3453 = vmatpush1.bf16.msra.mxu1 %v8171_v59  ;;  %2502 = vmatprep.subr.bf16.mxu0 %v8176_v60  ;;  %v8255_v59 = vld [vmem:[%s9208_s13 + $0x290] ss:$8 sps:$4 sm:$0xff]   ;;  %v8260_v60 = vld [vmem:[%s9205_s12 + $0x2a4] ss:$8 sps:$4 sm:$0xff]  }
 0x1a5   : > { %3454 = vmatprep.subr.bf16.mxu1 %v8179_v61  ;;  %v8263_v61 = vld [vmem:[%s9208_s13 + $0x2a4] ss:$8 sps:$4 sm:$0xff]  }
 0x1a7   : > { %2503 = vmatpush1.bf16.msra.mxu0 %v8174_v62  ;;  %v8258_v62 = vld [vmem:[%s9205_s12 + $0x2a0] ss:$8 sps:$4 sm:$0xff]  }
 0x1a8   : > { %3455 = vmatpush1.bf16.msra.mxu1 %v8177_v63  ;;  %2504 = vmatprep.subr.bf16.mxu0 %v8182_v0  ;;  %v8261_v63 = vld [vmem:[%s9208_s13 + $0x2a0] ss:$8 sps:$4 sm:$0xff]   ;;  %v8266_v0 = vld [vmem:[%s9205_s12 + $0x2b4] ss:$8 sps:$4 sm:$0xff]  }
 0x1a9   : > { %3456 = vmatprep.subr.bf16.mxu1 %v8185_v1  ;;  %v8269_v1 = vld [vmem:[%s9208_s13 + $0x2b4] ss:$8 sps:$4 sm:$0xff]  }
 0x1ab   : > { %2505 = vmatpush1.bf16.msra.mxu0 %v8180_v2  ;;  %v8264_v2 = vld [vmem:[%s9205_s12 + $0x2b0] ss:$8 sps:$4 sm:$0xff]  }
 0x1ac   : > { %3457 = vmatpush1.bf16.msra.mxu1 %v8183_v3  ;;  %2506 = vmatprep.subr.bf16.mxu0 %v8188_v4  ;;  %v8267_v3 = vld [vmem:[%s9208_s13 + $0x2b0] ss:$8 sps:$4 sm:$0xff]   ;;  %v8272_v4 = vld [vmem:[%s9205_s12 + $0x2c4] ss:$8 sps:$4 sm:$0xff]  }
 0x1ad   : > { %3458 = vmatprep.subr.bf16.mxu1 %v8191_v5  ;;  %v8275_v5 = vld [vmem:[%s9208_s13 + $0x2c4] ss:$8 sps:$4 sm:$0xff]  }
 0x1af   : > { %2507 = vmatpush1.bf16.msra.mxu0 %v8186_v6  ;;  %v8270_v6 = vld [vmem:[%s9205_s12 + $0x2c0] ss:$8 sps:$4 sm:$0xff]  }
 0x1b0   : > { %3459 = vmatpush1.bf16.msra.mxu1 %v8189_v7  ;;  %2508 = vmatprep.subr.bf16.mxu0 %v8194_v8  ;;  %v8273_v7 = vld [vmem:[%s9208_s13 + $0x2c0] ss:$8 sps:$4 sm:$0xff]   ;;  %v8278_v8 = vld [vmem:[%s9205_s12 + $0x2d4] ss:$8 sps:$4 sm:$0xff]  }
 0x1b1   : > { %3460 = vmatprep.subr.bf16.mxu1 %v8197_v9  ;;  %v8281_v9 = vld [vmem:[%s9208_s13 + $0x2d4] ss:$8 sps:$4 sm:$0xff]  }
 0x1b3   : > { %2509 = vmatpush1.bf16.msra.mxu0 %v8192_v10  ;;  %v8276_v10 = vld [vmem:[%s9205_s12 + $0x2d0] ss:$8 sps:$4 sm:$0xff]  }
 0x1b4   : > { %3461 = vmatpush1.bf16.msra.mxu1 %v8195_v11  ;;  %2519 = vmatprep.subr.bf16.mxu0 %v8200_v12  ;;  %v8279_v11 = vld [vmem:[%s9208_s13 + $0x2d0] ss:$8 sps:$4 sm:$0xff]   ;;  %v8284_v12 = vld [vmem:[%s9205_s12 + $0x2e4] ss:$8 sps:$4 sm:$0xff]  }
 0x1b5   : > { %3471 = vmatprep.subr.bf16.mxu1 %v8203_v15  ;;  %v8282_v15 = vld [vmem:[%s9205_s12 + $0x2e0] ss:$8 sps:$4 sm:$0xff]  }
 0x1b6   : > { %2511 = vmatmul.mubr.bf16.vlgmr.msra.gmra.mrb[0].mxu0 %v1651_v18  ;;  %v8293_v18 = vld [vmem:[%s9208_s13 + $0x2f4] ss:$8 sps:$4 sm:$0xff]  }
 0x1b7   : > { %3463 = vmatmul.mubr.bf16.vlgmr.msra.gmra.mrb[0].mxu1 %v2603_v19  ;;  %2520 = vmatpush1.bf16.msra.mxu0 %v8198_v16  ;;  %v8285_v16 = vld [vmem:[%s9208_s13 + $0x2e0] ss:$8 sps:$4 sm:$0xff]   ;;  %v8288_v19 = vld [vmem:[%s9205_s12 + $0x2f0] ss:$8 sps:$4 sm:$0xff]  }
 0x1b8   : > { %3472 = vmatpush1.bf16.msra.mxu1 %v8201_v17  ;;  %2521 = vmatprep.subr.bf16.mxu0 %v8206_v20  ;;  %v8290_v17 = vld [vmem:[%s9205_s12 + $0x2f4] ss:$8 sps:$4 sm:$0xff]   ;;  %v8291_v20 = vld [vmem:[%s9208_s13 + $0x2f0] ss:$8 sps:$4 sm:$0xff]  }
 0x1b9   : > { %3473 = vmatprep.subr.bf16.mxu1 %v8209_v21  ;;  %2551 = vmatprep.mubr.bf16.mxu0 %v1654_v23  ;;  %v9436_v21 = vld [vmem:[%s10737_s0 + $0x20] sm:$0xff] }
 0x1ba   : > { %3503 = vmatprep.mubr.bf16.mxu1 %v2606_v28  ;;  %v8296_v23 = vld [vmem:[%s9205_s12 + $0x304] ss:$8 sps:$4 sm:$0xff]   ;;  %v9452_v28 = vld [vmem:[%s10737_s0 + $0x38] sm:$0xff] }
 0x1bb   : > { %2522 = vmatpush1.bf16.msra.mxu0 %v8204_v25  ;;  %v8299_v25 = vld [vmem:[%s9208_s13 + $0x304] ss:$8 sps:$4 sm:$0xff]  }
 0x1bc   : > { %3474 = vmatpush1.bf16.msra.mxu1 %v8207_v26  ;;  %2523 = vmatprep.subr.bf16.mxu0 %v8212_v27  ;;  %v1653_v26 = vpack.c.bf16 %v9436_v21, %v9436_v21  ;;  %v2605_v27 = vpack.c.bf16 %v9441_v22, %v9441_v22 }
 0x1bd   : > { %3475 = vmatprep.subr.bf16.mxu1 %v8215_v29  ;;  %v9457_v29 = vld [vmem:[%s10738_s1 + $0x38] sm:$0xff] }
 0x1bf   : > { %2524 = vmatpush1.bf16.msra.mxu0 %v8210_v30  ;;  %v8294_v30 = vld [vmem:[%s9205_s12 + $0x300] ss:$8 sps:$4 sm:$0xff]  }
 0x1c0   : > { %3476 = vmatpush1.bf16.msra.mxu1 %v8213_v31  ;;  %2525 = vmatprep.subr.bf16.mxu0 %v8218_v32  ;;  %v8297_v31 = vld [vmem:[%s9208_s13 + $0x300] ss:$8 sps:$4 sm:$0xff]   ;;  %v8302_v32 = vld [vmem:[%s9205_s12 + $0x314] ss:$8 sps:$4 sm:$0xff]  }
 0x1c1   : > { %3477 = vmatprep.subr.bf16.mxu1 %v8221_v33  ;;  %v8305_v33 = vld [vmem:[%s9208_s13 + $0x314] ss:$8 sps:$4 sm:$0xff]  }
 0x1c3   : > { %2526 = vmatpush1.bf16.msra.mxu0 %v8216_v34  ;;  %v1656_v34 = vpack.c.bf16 %v9452_v28, %v9452_v28 }
 0x1c4   : > { %3478 = vmatpush1.bf16.msra.mxu1 %v8219_v35  ;;  %2527 = vmatprep.subr.bf16.mxu0 %v8224_v36  ;;  %v2608_v35 = vpack.c.bf16 %v9457_v29, %v9457_v29  ;;  %v8300_v36 = vld [vmem:[%s9205_s12 + $0x310] ss:$8 sps:$4 sm:$0xff]  }
 0x1c5   : > { %3479 = vmatprep.subr.bf16.mxu1 %v8227_v37  ;;  %v8303_v37 = vld [vmem:[%s9208_s13 + $0x310] ss:$8 sps:$4 sm:$0xff]  }
 0x1c7   : > { %2528 = vmatpush1.bf16.msra.mxu0 %v8222_v38  ;;  %v8308_v38 = vld [vmem:[%s9205_s12 + $0x324] ss:$8 sps:$4 sm:$0xff]  }
 0x1c8   : > { %3480 = vmatpush1.bf16.msra.mxu1 %v8225_v39  ;;  %2529 = vmatprep.subr.bf16.mxu0 %v8230_v40  ;;  %v8311_v39 = vld [vmem:[%s9208_s13 + $0x324] ss:$8 sps:$4 sm:$0xff]   ;;  %v8306_v40 = vld [vmem:[%s9205_s12 + $0x320] ss:$8 sps:$4 sm:$0xff]  }
 0x1c9   : > { %3481 = vmatprep.subr.bf16.mxu1 %v8233_v41  ;;  %v8309_v41 = vld [vmem:[%s9208_s13 + $0x320] ss:$8 sps:$4 sm:$0xff]  }
 0x1cb   : > { %2530 = vmatpush1.bf16.msra.mxu0 %v8228_v42  ;;  %v8314_v42 = vld [vmem:[%s9205_s12 + $0x334] ss:$8 sps:$4 sm:$0xff]  }
 0x1cc   : > { %3482 = vmatpush1.bf16.msra.mxu1 %v8231_v43  ;;  %2531 = vmatprep.subr.bf16.mxu0 %v8236_v44  ;;  %v8317_v43 = vld [vmem:[%s9208_s13 + $0x334] ss:$8 sps:$4 sm:$0xff]   ;;  %v8312_v44 = vld [vmem:[%s9205_s12 + $0x330] ss:$8 sps:$4 sm:$0xff]  }
 0x1cd   : > { %3483 = vmatprep.subr.bf16.mxu1 %v8239_v45  ;;  %v8315_v45 = vld [vmem:[%s9208_s13 + $0x330] ss:$8 sps:$4 sm:$0xff]  }
 0x1cf   : > { %2532 = vmatpush1.bf16.msra.mxu0 %v8234_v46  ;;  %v8320_v46 = vld [vmem:[%s9205_s12 + $0x344] ss:$8 sps:$4 sm:$0xff]  }
 0x1d0   : > { %3484 = vmatpush1.bf16.msra.mxu1 %v8237_v47  ;;  %2533 = vmatprep.subr.bf16.mxu0 %v8242_v48  ;;  %v8323_v47 = vld [vmem:[%s9208_s13 + $0x344] ss:$8 sps:$4 sm:$0xff]   ;;  %v8318_v48 = vld [vmem:[%s9205_s12 + $0x340] ss:$8 sps:$4 sm:$0xff]  }
 0x1d1   : > { %3485 = vmatprep.subr.bf16.mxu1 %v8245_v49  ;;  %v8321_v49 = vld [vmem:[%s9208_s13 + $0x340] ss:$8 sps:$4 sm:$0xff]  }
 0x1d3   : > { %2534 = vmatpush1.bf16.msra.mxu0 %v8240_v50  ;;  %v8326_v50 = vld [vmem:[%s9205_s12 + $0x354] ss:$8 sps:$4 sm:$0xff]  }
 0x1d4   : > { %3486 = vmatpush1.bf16.msra.mxu1 %v8243_v51  ;;  %2535 = vmatprep.subr.bf16.mxu0 %v8248_v52  ;;  %v8329_v51 = vld [vmem:[%s9208_s13 + $0x354] ss:$8 sps:$4 sm:$0xff]   ;;  %v8324_v52 = vld [vmem:[%s9205_s12 + $0x350] ss:$8 sps:$4 sm:$0xff]  }
 0x1d5   : > { %3487 = vmatprep.subr.bf16.mxu1 %v8251_v53  ;;  %v8327_v53 = vld [vmem:[%s9208_s13 + $0x350] ss:$8 sps:$4 sm:$0xff]  }
 0x1d7   : > { %2536 = vmatpush1.bf16.msra.mxu0 %v8246_v54  ;;  %v8332_v54 = vld [vmem:[%s9205_s12 + $0x364] ss:$8 sps:$4 sm:$0xff]  }
 0x1d8   : > { %3488 = vmatpush1.bf16.msra.mxu1 %v8249_v55  ;;  %2537 = vmatprep.subr.bf16.mxu0 %v8254_v56  ;;  %v8335_v55 = vld [vmem:[%s9208_s13 + $0x364] ss:$8 sps:$4 sm:$0xff]   ;;  %v8330_v56 = vld [vmem:[%s9205_s12 + $0x360] ss:$8 sps:$4 sm:$0xff]  }
 0x1d9   : > { %3489 = vmatprep.subr.bf16.mxu1 %v8257_v57  ;;  %v8333_v57 = vld [vmem:[%s9208_s13 + $0x360] ss:$8 sps:$4 sm:$0xff]  }
 0x1db   : > { %2538 = vmatpush1.bf16.msra.mxu0 %v8252_v58  ;;  %v8338_v58 = vld [vmem:[%s9205_s12 + $0x374] ss:$8 sps:$4 sm:$0xff]  }
 0x1dc   : > { %3490 = vmatpush1.bf16.msra.mxu1 %v8255_v59  ;;  %2539 = vmatprep.subr.bf16.mxu0 %v8260_v60  ;;  %v8341_v59 = vld [vmem:[%s9208_s13 + $0x374] ss:$8 sps:$4 sm:$0xff]   ;;  %v8336_v60 = vld [vmem:[%s9205_s12 + $0x370] ss:$8 sps:$4 sm:$0xff]  }
 0x1dd   : > { %3491 = vmatprep.subr.bf16.mxu1 %v8263_v61  ;;  %v8339_v61 = vld [vmem:[%s9208_s13 + $0x370] ss:$8 sps:$4 sm:$0xff]  }
 0x1df   : > { %2540 = vmatpush1.bf16.msra.mxu0 %v8258_v62  ;;  %v8344_v62 = vld [vmem:[%s9205_s12 + $0x384] ss:$8 sps:$4 sm:$0xff]  }
 0x1e0   : > { %3492 = vmatpush1.bf16.msra.mxu1 %v8261_v63  ;;  %2541 = vmatprep.subr.bf16.mxu0 %v8266_v0  ;;  %v8347_v63 = vld [vmem:[%s9208_s13 + $0x384] ss:$8 sps:$4 sm:$0xff]   ;;  %v8342_v0 = vld [vmem:[%s9205_s12 + $0x380] ss:$8 sps:$4 sm:$0xff]  }
 0x1e1   : > { %3493 = vmatprep.subr.bf16.mxu1 %v8269_v1  ;;  %v8345_v1 = vld [vmem:[%s9208_s13 + $0x380] ss:$8 sps:$4 sm:$0xff]  }
 0x1e3   : > { %2542 = vmatpush1.bf16.msra.mxu0 %v8264_v2  ;;  %v8350_v2 = vld [vmem:[%s9205_s12 + $0x394] ss:$8 sps:$4 sm:$0xff]  }
 0x1e4   : > { %3494 = vmatpush1.bf16.msra.mxu1 %v8267_v3  ;;  %2543 = vmatprep.subr.bf16.mxu0 %v8272_v4  ;;  %v8353_v3 = vld [vmem:[%s9208_s13 + $0x394] ss:$8 sps:$4 sm:$0xff]   ;;  %v8348_v4 = vld [vmem:[%s9205_s12 + $0x390] ss:$8 sps:$4 sm:$0xff]  }
 0x1e5   : > { %3495 = vmatprep.subr.bf16.mxu1 %v8275_v5  ;;  %v8351_v5 = vld [vmem:[%s9208_s13 + $0x390] ss:$8 sps:$4 sm:$0xff]  }
 0x1e7   : > { %2544 = vmatpush1.bf16.msra.mxu0 %v8270_v6  ;;  %v8356_v6 = vld [vmem:[%s9205_s12 + $0x3a4] ss:$8 sps:$4 sm:$0xff]  }
 0x1e8   : > { %3496 = vmatpush1.bf16.msra.mxu1 %v8273_v7  ;;  %2545 = vmatprep.subr.bf16.mxu0 %v8278_v8  ;;  %v8359_v7 = vld [vmem:[%s9208_s13 + $0x3a4] ss:$8 sps:$4 sm:$0xff]   ;;  %v8354_v8 = vld [vmem:[%s9205_s12 + $0x3a0] ss:$8 sps:$4 sm:$0xff]  }
 0x1e9   : > { %3497 = vmatprep.subr.bf16.mxu1 %v8281_v9  ;;  %v8357_v9 = vld [vmem:[%s9208_s13 + $0x3a0] ss:$8 sps:$4 sm:$0xff]  }
 0x1eb   : > { %2546 = vmatpush1.bf16.msra.mxu0 %v8276_v10  ;;  %v8362_v10 = vld [vmem:[%s9205_s12 + $0x3b4] ss:$8 sps:$4 sm:$0xff]  }
 0x1ec   : > { %3498 = vmatpush1.bf16.msra.mxu1 %v8279_v11  ;;  %2547 = vmatprep.subr.bf16.mxu0 %v8284_v12  ;;  %v8365_v11 = vld [vmem:[%s9208_s13 + $0x3b4] ss:$8 sps:$4 sm:$0xff]   ;;  %v8360_v12 = vld [vmem:[%s9205_s12 + $0x3b0] ss:$8 sps:$4 sm:$0xff]  }
 0x1ed   : > { %3499 = vmatprep.subr.bf16.mxu1 %v8287_v13  ;;  %v8363_v13 = vld [vmem:[%s9208_s13 + $0x3b0] ss:$8 sps:$4 sm:$0xff]  }
 0x1ef   : > { %2548 = vmatpush1.bf16.msra.mxu0 %v8282_v15  ;;  %v8368_v15 = vld [vmem:[%s9205_s12 + $0x3c4] ss:$8 sps:$4 sm:$0xff]  }
 0x1f0   : > { %3500 = vmatpush1.bf16.msra.mxu1 %v8285_v16  ;;  %2549 = vmatprep.subr.bf16.mxu0 %v8290_v17  ;;  %v8371_v16 = vld [vmem:[%s9208_s13 + $0x3c4] ss:$8 sps:$4 sm:$0xff]   ;;  %v8366_v17 = vld [vmem:[%s9205_s12 + $0x3c0] ss:$8 sps:$4 sm:$0xff]  }
 0x1f1   : > { %3501 = vmatprep.subr.bf16.mxu1 %v8293_v18  ;;  %v8369_v18 = vld [vmem:[%s9208_s13 + $0x3c0] ss:$8 sps:$4 sm:$0xff]  }
 0x1f3   : > { %2550 = vmatpush1.bf16.msra.mxu0 %v8288_v19  ;;  %v8374_v19 = vld [vmem:[%s9205_s12 + $0x3d4] ss:$8 sps:$4 sm:$0xff]  }
 0x1f4   : > { %3502 = vmatpush1.bf16.msra.mxu1 %v8291_v20  ;;  %2560 = vmatprep.subr.bf16.mxu0 %v8296_v23  ;;  %v8377_v20 = vld [vmem:[%s9208_s13 + $0x3d4] ss:$8 sps:$4 sm:$0xff]   ;;  %v8372_v23 = vld [vmem:[%s9205_s12 + $0x3d0] ss:$8 sps:$4 sm:$0xff]  }
 0x1f5   : > { %3512 = vmatprep.subr.bf16.mxu1 %v8299_v25  ;;  %v8375_v25 = vld [vmem:[%s9208_s13 + $0x3d0] ss:$8 sps:$4 sm:$0xff]  }
 0x1f6   : > { %2552 = vmatmul.mubr.bf16.vlgmr.msra.gmra.mrb[0].mxu0 %v1653_v26  ;;  %v8380_v26 = vld [vmem:[%s9205_s12 + $0x3e4] ss:$8 sps:$4 sm:$0xff]  }
 0x1f7   : > { %3504 = vmatmul.mubr.bf16.vlgmr.msra.gmra.mrb[0].mxu1 %v2605_v27  ;;  %2561 = vmatpush1.bf16.msra.mxu0 %v8294_v30  ;;  %v8383_v27 = vld [vmem:[%s9208_s13 + $0x3e4] ss:$8 sps:$4 sm:$0xff]   ;;  %v8378_v30 = vld [vmem:[%s9205_s12 + $0x3e0] ss:$8 sps:$4 sm:$0xff]  }
 0x1f8   : > { %3513 = vmatpush1.bf16.msra.mxu1 %v8297_v31  ;;  %2562 = vmatprep.subr.bf16.mxu0 %v8302_v32  ;;  %v8381_v31 = vld [vmem:[%s9208_s13 + $0x3e0] ss:$8 sps:$4 sm:$0xff]   ;;  %v8386_v32 = vld [vmem:[%s9205_s12 + $0x3f4] ss:$8 sps:$4 sm:$0xff]  }
 0x1f9   : > { %3514 = vmatprep.subr.bf16.mxu1 %v8305_v33  ;;  %2592 = vmatprep.mubr.bf16.mxu0 %v1656_v34  ;;  %v8389_v33 = vld [vmem:[%s9208_s13 + $0x3f4] ss:$8 sps:$4 sm:$0xff]   ;;  %v8384_v34 = vld [vmem:[%s9205_s12 + $0x3f0] ss:$8 sps:$4 sm:$0xff]   ;;  %s7264_s12 = sshll.u32 %s8628_s21, 1 }
 0x1fa   : > { %3544 = vmatprep.mubr.bf16.mxu1 %v2608_v35  ;;  %v8387_v35 = vld [vmem:[%s9208_s13 + $0x3f0] ss:$8 sps:$4 sm:$0xff]   ;;  %p1596_p13 = scmp.lt.s32.totalorder %s7264_s12, 7 }
 0x1fb   : > { %2563 = vmatpush1.bf16.msra.mxu0 %v8300_v36  ;;  %v9528_v36 = vld [vmem:[%s10737_s0 + $0x30] sm:$0xff] }
 0x1fc   : > { %3515 = vmatpush1.bf16.msra.mxu1 %v8303_v37  ;;  %2564 = vmatprep.subr.bf16.mxu0 %v8308_v38  ;;  %v9533_v37 = vld [vmem:[%s10738_s1 + $0x30] sm:$0xff]  ;;  %v1655_v38 = vpack.c.bf16 %v9528_v36, %v9528_v36  ;;  %s10785_s12 = smov (!%p1596_p13, %s7264_s12), 7 }
 0x1fd   : > { %3516 = vmatprep.subr.bf16.mxu1 %v8311_v39  ;;  %v2607_v39 = vpack.c.bf16 %v9533_v37, %v9533_v37  ;;  %s1604_s27 = scalar_lea.vmem %s10718_s5, %s10785_s12  ;;  %s1598_s24 = scalar_lea.vmem %s10716_s3, %s10785_s12 }
 0x1fe   : > { %s10582_s16 = scalar_lea.vmem %s10722_s9, %s10785_s12 }
 0x1ff   : > { %2565 = vmatpush1.bf16.msra.mxu0 %v8306_v40  ;;  %v8542_v40 = vmov 0.0  }
 0x200   : > { %3517 = vmatpush1.bf16.msra.mxu1 %v8309_v41  ;;  %2566 = vmatprep.subr.bf16.mxu0 %v8314_v42  ;;  %v1787_v41 = vlaneseq }
 0x201   : > { %3518 = vmatprep.subr.bf16.mxu1 %v8317_v43 }
 0x202   : > { %v1788_v42 = vshrl.u32 %v1787_v41, 7 }
 0x203   : > { %2567 = vmatpush1.bf16.msra.mxu0 %v8312_v44  ;;  %v2737_v44 = vld [vmem:[%s1604_s27] sm:$0x3] }
 0x204   : > { %3519 = vmatpush1.bf16.msra.mxu1 %v8315_v45  ;;  %2568 = vmatprep.subr.bf16.mxu0 %v8320_v46  ;;  %v9552_v43 = vsub.s32 0, %v1788_v42  ;;  %v9558_v45 = vsub.s32 1, %v1788_v42  ;;  %v1785_v46 = vld [vmem:[%s1598_s24] sm:$0x3]  ;;  %s7266_s24 = sshll.u32 %s8628_s21, 2 }
 0x205   : > { %3520 = vmatprep.subr.bf16.mxu1 %v8323_v47  ;;  %p1607_p0 = scmp.lt.s32.totalorder %s7266_s24, 15 }
 0x206   : > { %10739 = vst [vmem:[#allocation12_spill] sm:$0xff] %v9552_v43  ;;  %10740 = vst [vmem:[#allocation13_spill] sm:$0xff] %v9558_v45  ;;  %v2742_v47 = vrot.slane %v2737_v44, %v9552_v43 }
 0x207   : > { %2569 = vmatpush1.bf16.msra.mxu0 %v8318_v48  ;;  %v2746_v48 = vrot.slane %v2737_v44, %v9558_v45  ;;  %s10787_s24 = smov (!%p1607_p0, %s7266_s24), 15 }
 0x208   : > { %3521 = vmatpush1.bf16.msra.mxu1 %v8321_v49  ;;  %2570 = vmatprep.subr.bf16.mxu0 %v8326_v50  ;;  %v1790_v49 = vrot.slane %v1785_v46, %v9552_v43  ;;  %s7267_s30 = sshll.u32 %s10787_s24, 3  ;;  %s7804_s22 = sshll.u32 %s10787_s24, 8 }
 0x209   : > { %3522 = vmatprep.subr.bf16.mxu1 %v8329_v51  ;;  %s9605_s27 = scalar_lea.vmem %s10719_s6, %s7267_s30  ;;  %s9622_s13 = scalar_lea.vmem %s10720_s7, %s7267_s30 }
 0x20a   : > { %s9738_s14 = scalar_lea.vmem %s10721_s8, %s7804_s22  ;;  %s7262_s22 = sshll.u32 %s9196_s15, 4 }
 0x20b   : > { %2571 = vmatpush1.bf16.msra.mxu0 %v8324_v52  ;;  %s10620_s12 = scalar_lea.vmem [#allocation8], %s7262_s22  ;;  %s10729_s30 = sshll.u32 %s8628_s21, 8 }
 0x20c   : > { %3523 = vmatpush1.bf16.msra.mxu1 %v8327_v53  ;;  %2572 = vmatprep.subr.bf16.mxu0 %v8332_v54 }
 0x20d   : > { %3524 = vmatprep.subr.bf16.mxu1 %v8335_v55  ;;  %v1794_v55 = vrot.slane %v1785_v46, %v9558_v45  ;;  %v7624_v45 = vld [vmem:[%s9738_s14 + $0x1b0] sm:$0xff] }
 0x20f   : > { %2573 = vmatpush1.bf16.msra.mxu0 %v8330_v56 }
 0x210   : > { %3525 = vmatpush1.bf16.msra.mxu1 %v8333_v57  ;;  %2574 = vmatprep.subr.bf16.mxu0 %v8338_v58 }
 0x211   : > { %3526 = vmatprep.subr.bf16.mxu1 %v8341_v59 }
 0x213   : > { %2575 = vmatpush1.bf16.msra.mxu0 %v8336_v60 }
 0x214   : > { %3527 = vmatpush1.bf16.msra.mxu1 %v8339_v61  ;;  %2576 = vmatprep.subr.bf16.mxu0 %v8344_v62 }
 0x215   : > { %3528 = vmatprep.subr.bf16.mxu1 %v8347_v63  ;;  %v8438_v63 = vld [vmem:[%s10738_s1 + $0x8] sm:$0xff] }
 0x217   : > { %2577 = vmatpush1.bf16.msra.mxu0 %v8342_v0  ;;  %v8439_v0 = vld [vmem:[%s10738_s1] sm:$0xff] }
 0x218   : > { %3529 = vmatpush1.bf16.msra.mxu1 %v8345_v1  ;;  %2578 = vmatprep.subr.bf16.mxu0 %v8350_v2 }
 0x219   : > { %3530 = vmatprep.subr.bf16.mxu1 %v8353_v3 }
 0x21b   : > { %2579 = vmatpush1.bf16.msra.mxu0 %v8348_v4  ;;  %v8440_v4 = vld [vmem:[%s10738_s1 + $0x18] sm:$0xff]  ;;  %s8545_s1 = smov [#allocation6]  }
 0x21c   : > { %3531 = vmatpush1.bf16.msra.mxu1 %v8351_v5  ;;  %2580 = vmatprep.subr.bf16.mxu0 %v8356_v6  ;;  %v4001_v6 = vld [vmem:[%s9605_s27 + $0x10] sm:$0xff]  ;;  %s8450_s24 = sshll.u32 %s8545_s1, 4  ;;  %s8451_s24 = int_to_ptr.vmem [resolvable:$false] %s8450_s24 }
 0x21d   : > { %3532 = vmatprep.subr.bf16.mxu1 %v8359_v7 }
 0x21f   : > { %2581 = vmatpush1.bf16.msra.mxu0 %v8354_v8 }
 0x220   : > { %3533 = vmatpush1.bf16.msra.mxu1 %v8357_v9  ;;  %2582 = vmatprep.subr.bf16.mxu0 %v8362_v10 }
 0x221   : > { %3534 = vmatprep.subr.bf16.mxu1 %v8365_v11 }
 0x223   : > { %2583 = vmatpush1.bf16.msra.mxu0 %v8360_v12 }
 0x224   : > { %3535 = vmatpush1.bf16.msra.mxu1 %v8363_v13  ;;  %2584 = vmatprep.subr.bf16.mxu0 %v8368_v15 }
 0x225   : > { %3536 = vmatprep.subr.bf16.mxu1 %v8371_v16 }
 0x227   : > { %2585 = vmatpush1.bf16.msra.mxu0 %v8366_v17 }
 0x228   : > { %3537 = vmatpush1.bf16.msra.mxu1 %v8369_v18  ;;  %2586 = vmatprep.subr.bf16.mxu0 %v8374_v19 }
 0x229   : > { %3538 = vmatprep.subr.bf16.mxu1 %v8377_v20 }
 0x22b   : > { %2587 = vmatpush1.bf16.msra.mxu0 %v8372_v23 }
 0x22c   : > { %3539 = vmatpush1.bf16.msra.mxu1 %v8375_v25  ;;  %2588 = vmatprep.subr.bf16.mxu0 %v8380_v26  ;;  %v4000_v25 = vld [vmem:[%s9605_s27 + $0x8] sm:$0xff] }
 0x22d   : > { %3540 = vmatprep.subr.bf16.mxu1 %v8383_v27  ;;  %v4004_v26 = vmax.f32 %v4000_v25, 1e-06  ;;  %v4067_v27 = vld [vmem:[%s9622_s13] sm:$0xff]  ;;  %v4070_v25 = vld [vmem:[%s9622_s13 + $0x18] sm:$0xff] }
 0x22f   : > { %2589 = vmatpush1.bf16.msra.mxu0 %v8378_v30 }
 0x230   : > { %3541 = vmatpush1.bf16.msra.mxu1 %v8381_v31  ;;  %2590 = vmatprep.subr.bf16.mxu0 %v8386_v32  ;;  %v4071_v32 = vmax.f32 %v4067_v27, 1e-06 }
 0x231   : > { %3542 = vmatprep.subr.bf16.mxu1 %v8389_v33 }
 0x233   : > { %2591 = vmatpush1.bf16.msra.mxu0 %v8384_v34 }
 0x234   : > { %3543 = vmatpush1.bf16.msra.mxu1 %v8387_v35  ;;  %7815 = vmatprep.subr.mxu0 %v8542_v40 }
 0x235   : > { %7820 = vmatprep.subr.mxu1 %v8542_v40 }
 0x236   : > { %2593 = vmatmul.mubr.bf16.vlgmr.msra.gmra.mrb[0].mxu0 %v1655_v38 }
 0x237   : > { %3545 = vmatmul.mubr.bf16.vlgmr.msra.gmra.mrb[0].mxu1 %v2607_v39  ;;  %7817 = vmatprep.mubr.msk.f32.mxu0 %vm8543_vm0, %v8542_v40 }
 0x238   : > { %7822 = vmatprep.mubr.msk.f32.mxu1 %vm8543_vm0, %v8542_v40 }
 0x309   : > { %v2594_v50 = vpop.f32.mrb[0].mxu0 }
 0x30a   : > { %v3546_v51 = vpop.f32.mrb[0].mxu1  ;;  %v2596_v53 = vpop.f32.mrb[1].mxu0  ;;  %v7835_v61 = vadd.f32 %v2594_v50, %v1790_v49 }
 0x30b   : > { %v7837_v52 = vadd.f32 %v3546_v51, %v2742_v47  ;;  %v3548_v54 = vpop.f32.mrb[1].mxu1  ;;  %v2598_v57 = vpop.f32.mrb[2].mxu0  ;;  %v7836_v62 = vadd.f32 %v2596_v53, %v1794_v55 }
 0x30c   : > { %v7838_v56 = vadd.f32 %v3548_v54, %v2746_v48  ;;  %v3550_v58 = vpop.f32.mrb[2].mxu1  ;;  %v2599_v60 = vpop.f32.mrb[3].mxu0  ;;  %v4002_v54 = vld [vmem:[%s9605_s27 + $0x18] sm:$0xff] }
 0x30d   : > { %v3551_v59 = vpop.f32.mrb[3].mxu1  ;;  %3667 = vrot.lane.b32.xlu0 %v7837_v52, %s8544_s25  ;;  %7816 = vmatpush3.xpose.msk.msra.mxu0 %vm3553_vm1, %v7837_v52  ;;  %v4006_v55 = vmax.f32 %v4002_v54, 1e-06 }
 0x30e   : > { %3889 = vrot.lane.b32.xlu1 %v7838_v56, %s8544_s25  ;;  %7825 = vmatprep.subr.mxu0 %v8542_v40 }
 0x310   : > { %7818 = vmatmul.mubr.msk.f32.vlgmr.msra.gmra.mrb[4].mxu0 %vm3553_vm1, %v7835_v61 }
 0x311   : > { %3665 = vrot.lane.b32.xlu0 %v7835_v61, %s8544_s25  ;;  %7826 = vmatpush3.xpose.msk.msra.mxu0 %vm3553_vm1, %v7838_v56 }
 0x312   : > { %3887 = vrot.lane.b32.xlu1 %v7836_v62, %s8544_s25  ;;  %7827 = vmatprep.mubr.msk.f32.mxu0 %vm8543_vm0, %v8542_v40 }
 0x313   : > { %4147 = vmatprep.subr.mxu0 %v8438_v63  ;;  %v4069_v63 = vld [vmem:[%s9622_s13 + $0x10] sm:$0xff] }
 0x314   : > { %7828 = vmatmul.mubr.msk.f32.vlgmr.msra.gmra.mrb[6].mxu0 %vm3553_vm1, %v7836_v62 }
 0x315   : > { %4148 = vmatpush1.msra.mxu0 %v8439_v0  ;;  %4211 = vmatprep.mubr.f32.mxu0 %v8542_v40  ;;  %v4073_v0 = vmax.f32 %v4069_v63, 1e-06 }
 0x316   : > { %4325 = vmatprep.subr.mxu0 %v9371_v24 }
 0x37f   : > { %v3668_v1 = vpop.permute.xlu0 %3667 }
 0x380   : > { %7821 = vmatpush3.xpose.msk.msra.mxu1 %vm3553_vm1, %v3668_v1  ;;  %v3890_v2 = vpop.permute.xlu1 %3889 }
 0x381   : > { %7830 = vmatprep.subr.mxu1 %v8542_v40 }
 0x383   : > { %v3666_v3 = vpop.permute.xlu0 %3665 }
 0x384   : > { %7823 = vmatmul.mubr.msk.f32.vlgmr.msra.gmra.mrb[4].mxu1 %vm3553_vm1, %v3666_v3  ;;  %v3888_v24 = vpop.permute.xlu1 %3887  ;;  %v4068_v3 = vld [vmem:[%s9622_s13 + $0x8] sm:$0xff]  ;;  %s10594_s13 = scalar_lea.vmem [#allocation6], %s7262_s22  ;;  %s7039_s22 = scalar_lea.sflag [#allocation7], %s9196_s15 }
 0x385   : > { %7831 = vmatpush3.xpose.msk.msra.mxu1 %vm3553_vm1, %v3890_v2  ;;  %7832 = vmatprep.mubr.msk.f32.mxu1 %vm8543_vm0, %v8542_v40 }
 0x386   : > { %4236 = vmatprep.subr.mxu1 %v8440_v4 }
 0x388   : > { %7833 = vmatmul.mubr.msk.f32.vlgmr.msra.gmra.mrb[6].mxu1 %vm3553_vm1, %v3888_v24  ;;  %v4072_v24 = vmax.f32 %v4068_v3, 1e-06 }
 0x389   : > { %4237 = vmatpush1.msra.mxu1 %v9356_v14  ;;  %4300 = vmatprep.mubr.f32.mxu1 %v8542_v40  ;;  %v3999_v14 = vld [vmem:[%s9605_s27] sm:$0xff]  ;;  %s8452_s27 = scalar_lea.vmem %s8451_s24, 512 }
 0x38a   : > { %4414 = vmatprep.subr.mxu1 %v9457_v29  ;;  %v4003_v5 = vmax.f32 %v3999_v14, 1e-06  ;;  %v4005_v29 = vmax.f32 %v4001_v6, 1e-06 }
 0x38c   : > { %8390 = vlog2.f32 %v4003_v5 }
 0x38d   : > { %8392 = vlog2.f32 %v4005_v29 }
 0x38e   : > { %8394 = vlog2.f32 %v4004_v26  ;;  %v4074_v26 = vmax.f32 %v4070_v25, 1e-06  ;;  %v4871_v25 = vld [vmem:[%s9738_s14] sm:$0xff] }
 0x38f   : > { %8396 = vlog2.f32 %v4071_v32 }
 0x396   : > { %v8391_v9 = vpop.eup %8390 }
 0x397   : > { %v4008_v12 = vmul.f32 0.6931472, %v8391_v9  ;;  %v8393_v13 = vpop.eup %8392 }
 0x398   : > { %v4012_v17 = vmul.f32 0.6931472, %v8393_v13  ;;  %v8395_v33 = vpop.eup %8394 }
 0x399   : > { %v4010_v38 = vmul.f32 0.6931472, %v8395_v33  ;;  %v8397_v46 = vpop.eup %8396 }
 0x39a   : > { %v4076_v47 = vmul.f32 0.6931472, %v8397_v46 }
 0x3e3   : > { %v3626_v7 = vpop.f32.mrb[4].mxu0 }
 0x3e4   : > { %3631 = vst.msk [vmem:[#allocation2] sm:$0xff] %vm3630_vm2, %v3626_v7  ;;  %3632 = vxpose.xlu0.b32.start.end [1/1] (short) (narrow) %v3626_v7, 8  ;;  %v7819_v8 = vpop.f32.mrb[5].mxu0 }
 0x3e7   : > { %v3849_v10 = vpop.f32.mrb[6].mxu0 }
 0x3e8   : > { %3853 = vst.msk [vmem:[#allocation2 + $0x10] sm:$0xff] %vm3630_vm2, %v3849_v10  ;;  %v7829_v11 = vpop.f32.mrb[7].mxu0 }
 0x3eb   : > { %v4015_v15 = vld [vmem:[#allocation2] sm:$0xff] }
 0x3ec   : > { %v4019_v16 = vadd.f32 %v4015_v15, %v4008_v12 }
 0x3ee   : > { %v4023_v18 = vsel %vm3630_vm2, %v4019_v16, -inf }
 0x3ef   : > { %4024 = vmax.xlane.f32.xlu1 %v4023_v18  ;;  %v4017_v19 = vld [vmem:[#allocation2 + $0x10] sm:$0xff] }
 0x3f0   : > { %v9612_v20 = vadd.f32 %v4017_v19, %v4012_v17  ;;  %v8441_v19 = vld [vmem:[%s10737_s0 + $0x8] sm:$0xff] }
 0x3f2   : > { %v4029_v23 = vsel %vm3630_vm2, %v9612_v20, -inf }
 0x3f3   : > { %4030 = vmax.xlane.f32.xlu1 %v4029_v23  ;;  %v8442_v23 = vld [vmem:[%s10737_s0 + $0x18] sm:$0xff] }
 0x457   : > { %v3739_v30 = vpop.f32.mrb[4].mxu1 }
 0x458   : > { %3743 = vst.msk [vmem:[#allocation2 + $0x8] sm:$0xff] %vm3630_vm2, %v3739_v30  ;;  %v7824_v31 = vpop.f32.mrb[5].mxu1 }
 0x45b   : > { %v3961_v34 = vpop.f32.mrb[6].mxu1 }
 0x45c   : > { %3965 = vst.msk [vmem:[#allocation2 + $0x18] sm:$0xff] %vm3630_vm2, %v3961_v34  ;;  %v7834_v35 = vpop.f32.mrb[7].mxu1 }
 0x45f   : > { %v4016_v39 = vld [vmem:[#allocation2 + $0x8] sm:$0xff] }
 0x460   : > { %v9627_v41 = vadd.f32 %v4016_v39, %v4010_v38 }
 0x462   : > { %v4026_v42 = vsel %vm3630_vm2, %v9627_v41, -inf }
 0x463   : > { %4027 = vmax.xlane.f32.xlu0 %v4026_v42  ;;  %v4018_v60 = vld [vmem:[#allocation2 + $0x18] sm:$0xff] }
 0x464   : > { %v3648_v44 = vpop.trf.xlu0 }
 0x465   : > { %3664 = vst.msk [vmem:[#allocation3] sm:$0xff] %vm3630_vm2, %v3648_v44 }
 0x46c   : > { %v4083_v48 = vld [vmem:[#allocation3] sm:$0xff] }
 0x46d   : > { %v9632_v49 = vadd.f32 %v4083_v48, %v4076_v47 }
 0x46f   : > { %v4091_v50 = vsel %vm3630_vm2, %v9632_v49, -inf }
 0x470   : > { %4092 = vmax.xlane.f32.xlu1 %v4091_v50 }
 0x47c   : > { %v4025_v51 = vpop.xlane.xlu1 %4024 }
 0x47d   : > { %v4035_v52 = vsub.f32 %v4019_v16, %v4025_v51 }
 0x47f   : > { %v4039_v53 = vmul.f32 1.442695, %v4035_v52 }
 0x480   : > { %v4031_v6 = vpop.xlane.xlu1 %4030 }
 0x481   : > { %8398 = vpow2.f32 %v4039_v53 }
 0x482   : > { %8400 = vlog2.f32 %v4006_v55 }
 0x483   : > { %8402 = vlog2.f32 %v4073_v0 }
 0x484   : > { %8404 = vlog2.f32 %v4072_v24 }
 0x48b   : > { %v8399_v56 = vpop.eup %8398 }
 0x48c   : > { %v4047_v57 = vsel %vm3630_vm2, %v8399_v56, 0.0  ;;  %v8401_v58 = vpop.eup %8400 }
 0x48d   : > { %v4014_v59 = vmul.f32 0.6931472, %v8401_v58  ;;  %v8403_v4 = vpop.eup %8402 }
 0x48e   : > { %v4080_v14 = vmul.f32 0.6931472, %v8403_v4 }
 0x48f   : > { %v4022_v61 = vadd.f32 %v4018_v60, %v4014_v59 }
 0x490   : > { %3854 = vxpose.xlu0.b32.start.end [1/1] (short) (narrow) %v3849_v10, 8  ;;  %v8405_v10 = vpop.eup %8404 }
 0x491   : > { %v4032_v62 = vsel %vm3630_vm2, %v4022_v61, -inf  ;;  %v4078_v11 = vmul.f32 0.6931472, %v8405_v10 }
 0x4a3   : > { %3744 = vxpose.xlu1.b32.start.end [1/1] (short) (narrow) %v3739_v30, 8 }
 0x4bd   : > { %4048 = vadd.xlane.f32.xlu0 %v4047_v57 }
 0x4ca   : > { %4033 = vmax.xlane.f32.xlu1 %v4032_v62 }
 0x4f0   : > { %v4028_v1 = vpop.xlane.xlu0 %4027 }
 0x4f1   : > { %v4036_v27 = vsub.f32 %v9627_v41, %v4028_v1 }
 0x4f3   : > { %v4041_v31 = vmul.f32 1.442695, %v4036_v27 }
 0x4fd   : > { %3966 = vxpose.xlu1.b32.start.end [1/1] (short) (narrow) %v3961_v34, 8  ;;  %v4093_v7 = vpop.xlane.xlu1 %4092 }
 0x4fe   : > { %v4103_v38 = vsub.f32 %v9632_v49, %v4093_v7 }
 0x500   : > { %v4107_v46 = vmul.f32 1.442695, %v4103_v38  ;;  %v4879_v38 = vld [vmem:[%s9738_s14 + $0x40] sm:$0xff] }
 0x510   : > { %v3870_v2 = vpop.trf.xlu0 }
 0x511   : > { %3886 = vst.msk [vmem:[#allocation3 + $0x10] sm:$0xff] %vm3630_vm2, %v3870_v2 }
 0x518   : > { %v4085_v5 = vld [vmem:[#allocation3 + $0x10] sm:$0xff] }
 0x519   : > { %v9642_v29 = vadd.f32 %v4085_v5, %v4080_v14 }
 0x51b   : > { %v4097_v8 = vsel %vm3630_vm2, %v9642_v29, -inf }
 0x523   : > { %v3760_v9 = vpop.trf.xlu1 }
 0x524   : > { %3776 = vst.msk [vmem:[#allocation3 + $0x8] sm:$0xff] %vm3630_vm2, %v3760_v9  ;;  %4098 = vmax.xlane.f32.xlu1 %v4097_v8 }
 0x52b   : > { %v4084_v12 = vld [vmem:[#allocation3 + $0x8] sm:$0xff] }
 0x52c   : > { %v4088_v13 = vadd.f32 %v4084_v12, %v4078_v11 }
 0x52e   : > { %v4094_v15 = vsel %vm3630_vm2, %v4088_v13, -inf }
 0x52f   : > { %4095 = vmax.xlane.f32.xlu1 %v4094_v15 }
 0x54a   : > { %v4049_v16 = vpop.xlane.xlu0 %4048 }
 0x54b   : > { %8406 = vrcp.f32 %v4049_v16 }
 0x54c   : > { %8408 = vlog2.f32 %v4074_v26  ;;  %v4875_v26 = vld [vmem:[%s9738_s14 + $0x20] sm:$0xff] }
 0x54d   : > { %8410 = vpow2.f32 %v4041_v31  ;;  %v7570_v27 = vcombine.low %v4871_v25, %v4875_v26 }
 0x555   : > { %v8407_v17 = vpop.eup %8406 }
 0x556   : > { %v9648_v18 = vmul.f32 %v8407_v17, %v8399_v56  ;;  %v8409_v32 = vpop.eup %8408  ;;  %v8443_v17 = vld [vmem:[%s10737_s0] sm:$0xff] }
 0x557   : > { %v4034_v30 = vpop.xlane.xlu1 %4033  ;;  %v4082_v35 = vmul.f32 0.6931472, %v8409_v32 }
 0x558   : > { %7538 = vmatmul.mubr.msk.f32.vlgmr.msra.gmra.mrb[8].mxu0 %vm3630_vm2, %v9648_v18  ;;  %7542 = vmatmul.mubr.msk.f32.vlgmr.msra.gmra.mrb[8].mxu1 %vm3630_vm2, %v9648_v18  ;;  %v4038_v34 = vsub.f32 %v4022_v61, %v4034_v30  ;;  %v7571_v30 = vcombine.high %v4871_v25, %v4875_v26 }
 0x559   : > { %4217 = vmatprep.mubr.f32.mxu0 %v8542_v40  ;;  %4306 = vmatprep.mubr.f32.mxu1 %v8542_v40 }
 0x55a   : > { %4326 = vmatpush1.msra.mxu0 %v9441_v22  ;;  %4415 = vmatpush1.msra.mxu1 %v9533_v37  ;;  %v4037_v22 = vsub.f32 %v9612_v20, %v4031_v6  ;;  %v4045_v39 = vmul.f32 1.442695, %v4038_v34  ;;  %v8411_v20 = vpop.eup %8410 }
 0x55b   : > { %4515 = vmatprep.subr.mxu0 %v8441_v19  ;;  %4604 = vmatprep.subr.mxu1 %v8442_v23  ;;  %v4050_v47 = vsel %vm3630_vm2, %v8411_v20, 0.0  ;;  %v8444_v19 = vld [vmem:[%s10737_s0 + $0x10] sm:$0xff]  ;;  %v8445_v23 = vld [vmem:[%s10737_s0 + $0x28] sm:$0xff] }
 0x55c   : > { %v4043_v33 = vmul.f32 1.442695, %v4037_v22 }
 0x55e   : > { %8412 = vpow2.f32 %v4043_v33 }
 0x55f   : > { %8414 = vpow2.f32 %v4045_v39  ;;  %v4883_v39 = vld [vmem:[%s9738_s14 + $0x60] sm:$0xff] }
 0x560   : > { %8416 = vpow2.f32 %v4107_v46  ;;  %v4891_v46 = vld [vmem:[%s9738_s14 + $0xa0] sm:$0xff] }
 0x568   : > { %v8413_v48 = vpop.eup %8412 }
 0x569   : > { %v4053_v50 = vsel %vm3630_vm2, %v8413_v48, 0.0  ;;  %v8415_v51 = vpop.eup %8414 }
 0x56a   : > { %v4056_v49 = vsel %vm3630_vm2, %v8415_v51, 0.0  ;;  %v9673_v52 = vpop.eup %8416 }
 0x56b   : > { %v4115_v53 = vsel %vm3630_vm2, %v9673_v52, 0.0 }
 0x57d   : > { %v3982_v37 = vpop.trf.xlu1 }
 0x57e   : > { %3998 = vst.msk [vmem:[#allocation3 + $0x18] sm:$0xff] %vm3630_vm2, %v3982_v37 }
 0x585   : > { %v4086_v42 = vld [vmem:[#allocation3 + $0x18] sm:$0xff] }
 0x586   : > { %v4090_v44 = vadd.f32 %v4086_v42, %v4082_v35  ;;  %v7579_v42 = vcombine.high %v4879_v38, %v4883_v39 }
 0x588   : > { %v4100_v41 = vsel %vm3630_vm2, %v4090_v44, -inf }
 0x589   : > { %4101 = vmax.xlane.f32.xlu1 %v4100_v41  ;;  %v7578_v41 = vcombine.low %v4879_v38, %v4883_v39 }
 0x58d   : > { %4051 = vadd.xlane.f32.xlu1 %v4050_v47 }
 0x591   : > { %4054 = vadd.xlane.f32.xlu1 %v4053_v50  ;;  %v4899_v50 = vld [vmem:[%s9738_s14 + $0xe0] sm:$0xff] }
 0x595   : > { %4057 = vadd.xlane.f32.xlu1 %v4056_v49 }
 0x599   : > { %4116 = vadd.xlane.f32.xlu1 %v4115_v53 }
 0x5b1   : > { %v4099_v54 = vpop.xlane.xlu1 %4098 }
 0x5b2   : > { %v4105_v55 = vsub.f32 %v9642_v29, %v4099_v54 }
 0x5b4   : > { %v4111_v56 = vmul.f32 1.442695, %v4105_v55  ;;  %v4880_v55 = vld [vmem:[%s9738_s14 + $0x48] sm:$0xff] }
 0x5b6   : > { %8418 = vpow2.f32 %v4111_v56  ;;  %v4884_v56 = vld [vmem:[%s9738_s14 + $0x68] sm:$0xff] }
 0x5bc   : > { %v4096_v57 = vpop.xlane.xlu1 %4095 }
 0x5bd   : > { %v4104_v58 = vsub.f32 %v4088_v13, %v4096_v57 }
 0x5bf   : > { %v4109_v59 = vmul.f32 1.442695, %v4104_v58 }
 0x5c0   : > { %v9678_v60 = vpop.eup %8418 }
 0x5c1   : > { %8420 = vpow2.f32 %v4109_v59  ;;  %v4121_v61 = vsel %vm3630_vm2, %v9678_v60, 0.0  ;;  %v9798_v59 = vcombine.high %v4880_v55, %v4884_v56 }
 0x5c2   : > { %4122 = vadd.xlane.f32.xlu1 %v4121_v61  ;;  %v4888_v61 = vld [vmem:[%s9738_s14 + $0x88] sm:$0xff] }
 0x5cb   : > { %v9682_v62 = vpop.eup %8420 }
 0x5cc   : > { %v4118_v63 = vsel %vm3630_vm2, %v9682_v62, 0.0 }
 0x5cd   : > { %4119 = vadd.xlane.f32.xlu0 %v4118_v63  ;;  %v9806_v63 = vcombine.low %v4880_v55, %v4884_v56 }
 0x616   : > { %v4102_v0 = vpop.xlane.xlu1 %4101 }
 0x617   : > { %v4106_v1 = vsub.f32 %v4090_v44, %v4102_v0  ;;  %v4887_v44 = vld [vmem:[%s9738_s14 + $0x80] sm:$0xff] }
 0x619   : > { %v4113_v2 = vmul.f32 1.442695, %v4106_v1  ;;  %v4896_v1 = vld [vmem:[%s9738_s14 + $0xc8] sm:$0xff] }
 0x61a   : > { %v4052_v3 = vpop.xlane.xlu1 %4051 }
 0x61b   : > { %8422 = vpow2.f32 %v4113_v2  ;;  %v4900_v2 = vld [vmem:[%s9738_s14 + $0xe8] sm:$0xff] }
 0x61c   : > { %8424 = vrcp.f32 %v4052_v3 }
 0x61e   : > { %v4055_v4 = vpop.xlane.xlu1 %4054 }
 0x61f   : > { %8426 = vrcp.f32 %v4055_v4  ;;  %v9816_v4 = vcombine.high %v4896_v1, %v4900_v2 }
 0x622   : > { %v4058_v24 = vpop.xlane.xlu1 %4057 }
 0x623   : > { %8428 = vrcp.f32 %v4058_v24  ;;  %v4873_v24 = vld [vmem:[%s9738_s14 + $0x10] sm:$0xff] }
 0x625   : > { %v9686_v14 = vpop.eup %8422 }
 0x626   : > { %v8425_v5 = vpop.eup %8424  ;;  %v4124_v6 = vsel %vm3630_vm2, %v9686_v14, 0.0  ;;  %v4117_v16 = vpop.xlane.xlu1 %4116 }
 0x627   : > { %4125 = vadd.xlane.f32.xlu0 %v4124_v6  ;;  %v4062_v29 = vmul.f32 %v8425_v5, %v8411_v20  ;;  %8430 = vrcp.f32 %v4117_v16  ;;  %v7587_v20 = vcombine.high %v4887_v44, %v4891_v46  ;;  %v9822_v5 = vcombine.low %v4896_v1, %v4900_v2  ;;  %v4881_v16 = vld [vmem:[%s9738_s14 + $0x50] sm:$0xff] }
 0x629   : > { %v8427_v7 = vpop.eup %8426  ;;  %7539 = vmatmul.mubr.msk.f32.gmra.mrb[10].mxu0 %vm3630_vm2, %v4062_v29  ;;  %7543 = vmatmul.mubr.msk.f32.gmra.mrb[10].mxu1 %vm3630_vm2, %v4062_v29 }
 0x62a   : > { %4223 = vmatprep.mubr.f32.mxu0 %v8542_v40  ;;  %4312 = vmatprep.mubr.f32.mxu1 %v8542_v40  ;;  %v4064_v8 = vmul.f32 %v8427_v7, %v8413_v48  ;;  %v4895_v48 = vld [vmem:[%s9738_s14 + $0xc0] sm:$0xff] }
 0x62b   : > { %v9694_v9 = vpop.f32.mrb[8].mxu0  ;;  %v9696_v10 = vpop.f32.mrb[8].mxu1  ;;  %v7595_v49 = vcombine.high %v4895_v48, %v4899_v50  ;;  %v7594_v53 = vcombine.low %v4895_v48, %v4899_v50 }
 0x62c   : > { %v9698_v11 = vpop.f32.mrb[9].mxu0  ;;  %v9700_v12 = vpop.f32.mrb[9].mxu1  ;;  %v4903_v58 = vpack.c.bf16 %v9694_v9, %v9694_v9 }
 0x62d   : > { %v8429_v13 = vpop.eup %8428  ;;  %7540 = vmatmul.mubr.msk.f32.gmra.mrb[12].mxu0 %vm3630_vm2, %v4064_v8  ;;  %7544 = vmatmul.mubr.msk.f32.gmra.mrb[12].mxu1 %vm3630_vm2, %v4064_v8  ;;  %v4904_v47 = vpack.c.bf16 %v9698_v11, %v9698_v11 }
 0x62e   : > { %4229 = vmatprep.mubr.f32.mxu0 %v8542_v40  ;;  %4318 = vmatprep.mubr.f32.mxu1 %v8542_v40  ;;  %v4066_v15 = vmul.f32 %v8429_v13, %v8415_v51  ;;  %v7586_v51 = vcombine.low %v4887_v44, %v4891_v46 }
 0x631   : > { %7541 = vmatmul.mubr.msk.f32.gmra.mrb[14].mxu0 %vm3630_vm2, %v4066_v15  ;;  %7545 = vmatmul.mubr.msk.f32.gmra.mrb[14].mxu1 %vm3630_vm2, %v4066_v15 }
 0x632   : > { %4389 = vmatprep.mubr.f32.mxu0 %v8542_v40  ;;  %4478 = vmatprep.mubr.f32.mxu1 %v8542_v40 }
 0x635   : > { %7546 = vmatmul.mubr.msk.f32.vlgmr.msra.gmra.mrb[16].mxu0 %vm3630_vm2, %v9648_v18  ;;  %7550 = vmatmul.mubr.msk.f32.vlgmr.msra.gmra.mrb[16].mxu1 %vm3630_vm2, %v9648_v18  ;;  %v8431_v18 = vpop.eup %8430 }
 0x636   : > { %4395 = vmatprep.mubr.f32.mxu0 %v8542_v40  ;;  %4484 = vmatprep.mubr.f32.mxu1 %v8542_v40 }
 0x637   : > { %4516 = vmatpush1.msra.mxu0 %v8443_v17  ;;  %4605 = vmatpush1.msra.mxu1 %v8444_v19  ;;  %v4885_v17 = vld [vmem:[%s9738_s14 + $0x70] sm:$0xff] }
 0x638   : > { %4693 = vmatprep.subr.mxu0 %v8445_v23  ;;  %4782 = vmatprep.subr.mxu1 %v9452_v28  ;;  %v4128_v28 = vmul.f32 %v8431_v18, %v9673_v52  ;;  %v4876_v52 = vld [vmem:[%s9738_s14 + $0x28] sm:$0xff]  ;;  %v4905_v23 = vpack.c.bf16 %v9696_v10, %v9696_v10  ;;  %v9854_v25 = vcombine.high %v4881_v16, %v4885_v17 }
 0x639   : > { %7547 = vmatmul.mubr.msk.f32.gmra.mrb[18].mxu0 %vm3630_vm2, %v4062_v29  ;;  %7551 = vmatmul.mubr.msk.f32.gmra.mrb[18].mxu1 %vm3630_vm2, %v4062_v29 }
 0x63a   : > { %4401 = vmatprep.mubr.f32.mxu0 %v8542_v40  ;;  %4490 = vmatprep.mubr.f32.mxu1 %v8542_v40 }
 0x63d   : > { %7548 = vmatmul.mubr.msk.f32.gmra.mrb[20].mxu0 %vm3630_vm2, %v4064_v8  ;;  %7552 = vmatmul.mubr.msk.f32.gmra.mrb[20].mxu1 %vm3630_vm2, %v4064_v8 }
 0x63e   : > { %4407 = vmatprep.mubr.f32.mxu0 %v8542_v40  ;;  %4496 = vmatprep.mubr.f32.mxu1 %v8542_v40 }
 0x641   : > { %7549 = vmatmul.mubr.msk.f32.gmra.mrb[22].mxu0 %vm3630_vm2, %v4066_v15  ;;  %7553 = vmatmul.mubr.msk.f32.gmra.mrb[22].mxu1 %vm3630_vm2, %v4066_v15 }
 0x642   : > { %4579 = vmatprep.mubr.f32.mxu0 %v8542_v40  ;;  %4668 = vmatprep.mubr.f32.mxu1 %v8542_v40 }
 0x645   : > { %7554 = vmatmul.mubr.msk.f32.vlgmr.msra.gmra.mrb[24].mxu0 %vm3630_vm2, %v4128_v28  ;;  %7558 = vmatmul.mubr.msk.f32.vlgmr.msra.gmra.mrb[24].mxu1 %vm3630_vm2, %v4128_v28 }
 0x646   : > { %4585 = vmatprep.mubr.f32.mxu0 %v8542_v40  ;;  %4674 = vmatprep.mubr.f32.mxu1 %v8542_v40 }
 0x647   : > { %4694 = vmatpush1.msra.mxu0 %v9436_v21  ;;  %4783 = vmatpush1.msra.mxu1 %v9528_v36 }
 0x648   : > { %5071 = vmatprep.subr.bf16.mxu0 %v7571_v30  ;;  %5239 = vmatprep.subr.bf16.mxu1 %v7571_v30 }
 0x64f   : > { %v4123_v22 = vpop.xlane.xlu1 %4122 }
 0x65a   : > { %v4120_v31 = vpop.xlane.xlu0 %4119 }
 0x65b   : > { %8432 = vrcp.f32 %v4120_v31 }
 0x65c   : > { %8434 = vrcp.f32 %v4123_v22 }
 0x665   : > { %v8433_v37 = vpop.eup %8432 }
 0x666   : > { %v4130_v32 = vmul.f32 %v8433_v37, %v9682_v62  ;;  %v8435_v33 = vpop.eup %8434  ;;  %v4892_v62 = vld [vmem:[%s9738_s14 + $0xa8] sm:$0xff]  ;;  %v4889_v37 = vld [vmem:[%s9738_s14 + $0x90] sm:$0xff] }
 0x667   : > { %v4132_v21 = vmul.f32 %v8435_v33, %v9678_v60  ;;  %v4906_v60 = vpack.c.bf16 %v9700_v12, %v9700_v12  ;;  %v9808_v0 = vcombine.high %v4888_v61, %v4892_v62  ;;  %v9814_v3 = vcombine.low %v4888_v61, %v4892_v62 }
 0x668   : > { %7555 = vmatmul.mubr.msk.f32.gmra.mrb[26].mxu0 %vm3630_vm2, %v4130_v32  ;;  %7559 = vmatmul.mubr.msk.f32.gmra.mrb[26].mxu1 %vm3630_vm2, %v4130_v32 }
 0x669   : > { %4591 = vmatprep.mubr.f32.mxu0 %v8542_v40  ;;  %4680 = vmatprep.mubr.f32.mxu1 %v8542_v40 }
 0x66c   : > { %7556 = vmatmul.mubr.msk.f32.gmra.mrb[28].mxu0 %vm3630_vm2, %v4132_v21  ;;  %7560 = vmatmul.mubr.msk.f32.gmra.mrb[28].mxu1 %vm3630_vm2, %v4132_v21 }
 0x66d   : > { %4597 = vmatprep.mubr.f32.mxu0 %v8542_v40  ;;  %4686 = vmatprep.mubr.f32.mxu1 %v8542_v40 }
 0x6b4   : > { %v4126_v36 = vpop.xlane.xlu0 %4125 }
 0x6b5   : > { %8436 = vrcp.f32 %v4126_v36 }
 0x6bf   : > { %v8437_v34 = vpop.eup %8436 }
 0x6c0   : > { %v4134_v35 = vmul.f32 %v8437_v34, %v9686_v14  ;;  %v4877_v14 = vld [vmem:[%s9738_s14 + $0x30] sm:$0xff] }
 0x6c1   : > { %v9828_v7 = vcombine.high %v4873_v24, %v4877_v14  ;;  %v9846_v19 = vcombine.low %v4873_v24, %v4877_v14  ;;  %v4882_v14 = vld [vmem:[%s9738_s14 + $0x58] sm:$0xff] }
 0x6c2   : > { %7557 = vmatmul.mubr.msk.f32.gmra.mrb[30].mxu0 %vm3630_vm2, %v4134_v35  ;;  %7561 = vmatmul.mubr.msk.f32.gmra.mrb[30].mxu1 %vm3630_vm2, %v4134_v35 }
 0x6c3   : > { %4757 = vmatprep.mubr.f32.mxu0 %v8542_v40  ;;  %4846 = vmatprep.mubr.f32.mxu1 %v8542_v40 }
 0x6c6   : > { %7562 = vmatmul.mubr.msk.f32.vlgmr.msra.gmra.mrb[32].mxu0 %vm3630_vm2, %v4128_v28  ;;  %7566 = vmatmul.mubr.msk.f32.vlgmr.msra.gmra.mrb[32].mxu1 %vm3630_vm2, %v4128_v28 }
 0x6c7   : > { %5072 = vmatpush1.bf16.xpose.msra.mxu0 %v7570_v27  ;;  %4763 = vmatprep.mubr.f32.mxu0 %v8542_v40 }
 0x6c8   : > { %4852 = vmatprep.mubr.f32.mxu1 %v8542_v40  ;;  %5073 = vmatprep.subr.bf16.mxu0 %v7579_v42 }
 0x6c9   : > { %5240 = vmatpush1.bf16.xpose.msra.mxu1 %v7570_v27 }
 0x6ca   : > { %7563 = vmatmul.mubr.msk.f32.gmra.mrb[34].mxu0 %vm3630_vm2, %v4130_v32  ;;  %7567 = vmatmul.mubr.msk.f32.gmra.mrb[34].mxu1 %vm3630_vm2, %v4130_v32  ;;  %v4893_v32 = vld [vmem:[%s9738_s14 + $0xb0] sm:$0xff] }
 0x6cb   : > { %4769 = vmatprep.mubr.f32.mxu0 %v8542_v40  ;;  %4858 = vmatprep.mubr.f32.mxu1 %v8542_v40  ;;  %v9890_v48 = vcombine.low %v4889_v37, %v4893_v32 }
 0x6cc   : > { %5241 = vmatprep.subr.bf16.mxu1 %v7579_v42 }
 0x6ce   : > { %7564 = vmatmul.mubr.msk.f32.gmra.mrb[36].mxu0 %vm3630_vm2, %v4132_v21  ;;  %7568 = vmatmul.mubr.msk.f32.gmra.mrb[36].mxu1 %vm3630_vm2, %v4132_v21  ;;  %v9866_v21 = vcombine.low %v4881_v16, %v4885_v17  ;;  %v4886_v16 = vld [vmem:[%s9738_s14 + $0x78] sm:$0xff] }
 0x6cf   : > { %5074 = vmatpush1.bf16.xpose.msra.mxu0 %v7578_v41  ;;  %4775 = vmatprep.mubr.f32.mxu0 %v8542_v40 }
 0x6d0   : > { %4864 = vmatprep.mubr.f32.mxu1 %v8542_v40  ;;  %5075 = vmatprep.subr.bf16.mxu0 %v7587_v20  ;;  %v4872_v40 = vld [vmem:[%s9738_s14 + $0x8] sm:$0xff] }
 0x6d1   : > { %5242 = vmatpush1.bf16.xpose.msra.mxu1 %v7578_v41  ;;  %v7573_v54 = vcombine.high %v4872_v40, %v4876_v52  ;;  %v9794_v57 = vcombine.low %v4872_v40, %v4876_v52 }
 0x6d2   : > { %7565 = vmatmul.mubr.msk.f32.gmra.mrb[38].mxu0 %vm3630_vm2, %v4134_v35  ;;  %7569 = vmatmul.mubr.msk.f32.gmra.mrb[38].mxu1 %vm3630_vm2, %v4134_v35  ;;  %v9872_v35 = vcombine.high %v4889_v37, %v4893_v32 }
 0x6d3   : > { %5103 = vmatprep.mubr.bf16.mxu0 %v4904_v47  ;;  %5243 = vmatprep.subr.bf16.mxu1 %v7587_v20  ;;  %v4897_v20 = vld [vmem:[%s9738_s14 + $0xd0] sm:$0xff] }
 0x6d4   : > { %v4901_v47 = vld [vmem:[%s9738_s14 + $0xf0] sm:$0xff] }
 0x6d5   : > { %v9906_v1 = vcombine.low %v4897_v20, %v4901_v47 }
 0x6d7   : > { %5076 = vmatpush1.bf16.xpose.msra.mxu0 %v7586_v51 }
 0x6d8   : > { %5077 = vmatprep.subr.bf16.mxu0 %v7595_v49 }
 0x6d9   : > { %5244 = vmatpush1.bf16.xpose.msra.mxu1 %v7586_v51 }
 0x6da   : > { %5245 = vmatprep.subr.bf16.mxu1 %v7595_v49  ;;  %v9896_v49 = vcombine.high %v4897_v20, %v4901_v47  ;;  %v7606_v20 = vld [vmem:[%s9738_s14 + $0x120] sm:$0xff] }
 0x6df   : > { %5078 = vmatpush1.bf16.xpose.msra.mxu0 %v7594_v53 }
 0x6e0   : > { %5111 = vmatprep.subr.bf16.mxu0 %v7573_v54 }
 0x6e1   : > { %5246 = vmatpush1.bf16.xpose.msra.mxu1 %v7594_v53 }
 0x6e2   : > { %5279 = vmatprep.subr.bf16.mxu1 %v7573_v54 }
 0x6e6   : > { %5104 = vmatmul.mubr.bf16.vlgmr.msra.gmra.mrb[40].mxu0 %v4903_v58  ;;  %v4874_v58 = vld [vmem:[%s9738_s14 + $0x18] sm:$0xff] }
 0x6e7   : > { %5112 = vmatpush1.bf16.xpose.msra.mxu0 %v9794_v57  ;;  %5143 = vmatprep.mubr.bf16.mxu0 %v4906_v60  ;;  %v4878_v60 = vld [vmem:[%s9738_s14 + $0x38] sm:$0xff] }
 0x6e8   : > { %5113 = vmatprep.subr.bf16.mxu0 %v9798_v59  ;;  %v9908_v24 = vcombine.high %v4874_v58, %v4878_v60  ;;  %v9916_v17 = vcombine.low %v4874_v58, %v4878_v60 }
 0x6ef   : > { %5114 = vmatpush1.bf16.xpose.msra.mxu0 %v9806_v63 }
 0x6f0   : > { %5115 = vmatprep.subr.bf16.mxu0 %v9808_v0 }
 0x6f7   : > { %5116 = vmatpush1.bf16.xpose.msra.mxu0 %v9814_v3 }
 0x6f8   : > { %5117 = vmatprep.subr.bf16.mxu0 %v9816_v4 }
 0x6fc   : > { %v9824_v6 = vpop.f32.mrb[10].mxu0  ;;  %v9826_v29 = vpop.f32.mrb[10].mxu1 }
 0x6fd   : > { %v9830_v8 = vpop.f32.mrb[11].mxu0  ;;  %v9832_v9 = vpop.f32.mrb[11].mxu1 }
 0x6ff   : > { %5118 = vmatpush1.bf16.xpose.msra.mxu0 %v9822_v5 }
 0x700   : > { %v9835_v11 = vpop.f32.mrb[12].mxu0  ;;  %v9837_v12 = vpop.f32.mrb[12].mxu1  ;;  %5151 = vmatprep.subr.bf16.mxu0 %v9828_v7 }
 0x701   : > { %v9840_v13 = vpop.f32.mrb[13].mxu0  ;;  %v9842_v15 = vpop.f32.mrb[13].mxu1 }
 0x704   : > { %v9850_v18 = vpop.f32.mrb[14].mxu0  ;;  %v9852_v28 = vpop.f32.mrb[14].mxu1 }
 0x705   : > { %10741 = vst [vmem:[#allocation14_spill] sm:$0xff] %v9850_v18  ;;  %10742 = vst [vmem:[#allocation15_spill] sm:$0xff] %v9852_v28  ;;  %v9856_v26 = vpop.f32.mrb[15].mxu0  ;;  %v9858_v27 = vpop.f32.mrb[15].mxu1  ;;  %v7609_v28 = vld [vmem:[%s9738_s14 + $0x138] sm:$0xff] }
 0x706   : > { %10743 = vst [vmem:[#allocation16_spill] sm:$0xff] %v9858_v27  ;;  %5144 = vmatmul.mubr.bf16.vlgmr.msra.gmra.mrb[40].mxu0 %v4905_v23 }
 0x707   : > { %5152 = vmatpush1.bf16.xpose.msra.mxu0 %v9846_v19 }
 0x708   : > { %v4391_v30 = vpop.f32.mrb[16].mxu0  ;;  %v9861_v22 = vpop.f32.mrb[16].mxu1  ;;  %5153 = vmatprep.subr.bf16.mxu0 %v9854_v25 }
 0x709   : > { %v4393_v31 = vpop.f32.mrb[17].mxu0  ;;  %v4482_v10 = vpop.f32.mrb[17].mxu1  ;;  %v4907_v23 = vpack.c.bf16 %v4391_v30, %v4391_v30  ;;  %v9926_v30 = vcombine.low %v4882_v14, %v4886_v16 }
 0x70a   : > { %v4908_v33 = vpack.c.bf16 %v4393_v31, %v4393_v31  ;;  %v9918_v31 = vcombine.high %v4882_v14, %v4886_v16  ;;  %v4910_v37 = vpack.c.bf16 %v4482_v10, %v4482_v10 }
 0x70c   : > { %v9868_v36 = vpop.f32.mrb[18].mxu0  ;;  %v9870_v34 = vpop.f32.mrb[18].mxu1  ;;  %5183 = vmatprep.mubr.bf16.mxu0 %v4908_v33 }
 0x70d   : > { %v9874_v38 = vpop.f32.mrb[19].mxu0  ;;  %v9876_v39 = vpop.f32.mrb[19].mxu1 }
 0x70f   : > { %5154 = vmatpush1.bf16.xpose.msra.mxu0 %v9866_v21 }
 0x710   : > { %v9879_v42 = vpop.f32.mrb[20].mxu0  ;;  %v9881_v44 = vpop.f32.mrb[20].mxu1  ;;  %5155 = vmatprep.subr.bf16.mxu0 %v9872_v35 }
 0x711   : > { %v9884_v46 = vpop.f32.mrb[21].mxu0  ;;  %v9886_v41 = vpop.f32.mrb[21].mxu1 }
 0x714   : > { %v9892_v50 = vpop.f32.mrb[22].mxu0  ;;  %v9894_v51 = vpop.f32.mrb[22].mxu1 }
 0x715   : > { %10744 = vst [vmem:[#allocation17_spill] sm:$0xff] %v9892_v50  ;;  %10745 = vst [vmem:[#allocation18_spill] sm:$0xff] %v9894_v51  ;;  %v9898_v40 = vpop.f32.mrb[23].mxu0  ;;  %v9900_v52 = vpop.f32.mrb[23].mxu1 }
 0x716   : > { %10746 = vst [vmem:[#allocation19_spill] sm:$0xff] %v9898_v40  ;;  %10747 = vst [vmem:[#allocation20_spill] sm:$0xff] %v9900_v52 }
 0x717   : > { %5156 = vmatpush1.bf16.xpose.msra.mxu0 %v9890_v48 }
 0x718   : > { %v4581_v53 = vpop.f32.mrb[24].mxu0  ;;  %v4670_v54 = vpop.f32.mrb[24].mxu1  ;;  %5157 = vmatprep.subr.bf16.mxu0 %v9896_v49 }
 0x719   : > { %v4583_v55 = vpop.f32.mrb[25].mxu0  ;;  %v4672_v56 = vpop.f32.mrb[25].mxu1  ;;  %v5231_v62 = vpack.c.bf16 %v4581_v53, %v4581_v53  ;;  %v5233_v47 = vpack.c.bf16 %v4670_v54, %v4670_v54 }
 0x71a   : > { %v5232_v61 = vpack.c.bf16 %v4583_v55, %v4583_v55  ;;  %v5234_v2 = vpack.c.bf16 %v4672_v56, %v4672_v56 }
 0x71c   : > { %5271 = vmatprep.mubr.bf16.mxu1 %v5232_v61 }
 0x71d   : > { %5272 = vmatmul.mubr.bf16.vlgmr.msra.gmra.mrb[40].mxu1 %v5231_v62  ;;  %v7610_v62 = vld [vmem:[%s9738_s14 + $0x140] sm:$0xff] }
 0x71e   : > { %5280 = vmatpush1.bf16.xpose.msra.mxu1 %v9794_v57  ;;  %5311 = vmatprep.mubr.bf16.mxu1 %v5234_v2  ;;  %v4890_v57 = vld [vmem:[%s9738_s14 + $0x98] sm:$0xff]  ;;  %v7614_v2 = vld [vmem:[%s9738_s14 + $0x160] sm:$0xff] }
 0x71f   : > { %5158 = vmatpush1.bf16.xpose.msra.mxu0 %v9906_v1  ;;  %5281 = vmatprep.subr.bf16.mxu1 %v9798_v59  ;;  %v4894_v59 = vld [vmem:[%s9738_s14 + $0xb8] sm:$0xff]  ;;  %v9976_v16 = vcombine.high %v7610_v62, %v7614_v2 }
 0x720   : > { %5191 = vmatprep.subr.bf16.mxu0 %v9908_v24  ;;  %v9928_v32 = vcombine.high %v4890_v57, %v4894_v59  ;;  %v9936_v10 = vcombine.low %v4890_v57, %v4894_v59 }
 0x726   : > { %5282 = vmatpush1.bf16.xpose.msra.mxu1 %v9806_v63  ;;  %5184 = vmatmul.mubr.bf16.vlgmr.msra.gmra.mrb[40].mxu0 %v4907_v23  ;;  %v4898_v63 = vld [vmem:[%s9738_s14 + $0xd8] sm:$0xff]  ;;  %v7618_v23 = vld [vmem:[%s9738_s14 + $0x180] sm:$0xff] }
 0x727   : > { %5192 = vmatpush1.bf16.xpose.msra.mxu0 %v9916_v17  ;;  %5223 = vmatprep.mubr.bf16.mxu0 %v4910_v37  ;;  %v9986_v37 = vcombine.low %v7610_v62, %v7614_v2  ;;  %v5435_v62 = vpack.c.bf16 %v9832_v9, %v9832_v9  ;;  %v7619_v2 = vld [vmem:[%s9738_s14 + $0x188] sm:$0xff] }
 0x728   : > { %5283 = vmatprep.subr.bf16.mxu1 %v9808_v0  ;;  %5193 = vmatprep.subr.bf16.mxu0 %v9918_v31  ;;  %v4902_v0 = vld [vmem:[%s9738_s14 + $0xf8] sm:$0xff]  ;;  %v7631_v9 = vld [vmem:[%s9738_s14 + $0x1e8] sm:$0xff] }
 0x729   : > { %v9938_v33 = vcombine.high %v4898_v63, %v4902_v0  ;;  %v9950_v55 = vcombine.low %v4898_v63, %v4902_v0 }
 0x72e   : > { %5284 = vmatpush1.bf16.xpose.msra.mxu1 %v9814_v3  ;;  %v7602_v3 = vld [vmem:[%s9738_s14 + $0x100] sm:$0xff] }
 0x72f   : > { %5194 = vmatpush1.bf16.xpose.msra.mxu0 %v9926_v30  ;;  %5285 = vmatprep.subr.bf16.mxu1 %v9816_v4  ;;  %v9956_v58 = vcombine.high %v7602_v3, %v7606_v20  ;;  %v9972_v14 = vcombine.low %v7602_v3, %v7606_v20  ;;  %v7611_v3 = vld [vmem:[%s9738_s14 + $0x148] sm:$0xff] }
 0x730   : > { %5195 = vmatprep.subr.bf16.mxu0 %v9928_v32 }
 0x736   : > { %5286 = vmatpush1.bf16.xpose.msra.mxu1 %v9822_v5 }
 0x737   : > { %5196 = vmatpush1.bf16.xpose.msra.mxu0 %v9936_v10  ;;  %5319 = vmatprep.subr.bf16.mxu1 %v9828_v7 }
 0x738   : > { %5197 = vmatprep.subr.bf16.mxu0 %v9938_v33 }
 0x73b   : > { %v9946_v4 = vpop.f32.mrb[26].mxu0  ;;  %v9948_v53 = vpop.f32.mrb[26].mxu1 }
 0x73c   : > { %v9952_v56 = vpop.f32.mrb[27].mxu0  ;;  %v9954_v5 = vpop.f32.mrb[27].mxu1 }
 0x73d   : > { %5312 = vmatmul.mubr.bf16.vlgmr.msra.gmra.mrb[40].mxu1 %v5233_v47 }
 0x73e   : > { %5320 = vmatpush1.bf16.xpose.msra.mxu1 %v9846_v19  ;;  %v4909_v19 = vpack.c.bf16 %v9861_v22, %v9861_v22  ;;  %v7622_v22 = vld [vmem:[%s9738_s14 + $0x1a0] sm:$0xff] }
 0x73f   : > { %5198 = vmatpush1.bf16.xpose.msra.mxu0 %v9950_v55  ;;  %v9960_v7 = vpop.f32.mrb[28].mxu0  ;;  %v9962_v54 = vpop.f32.mrb[28].mxu1  ;;  %5321 = vmatprep.subr.bf16.mxu1 %v9854_v25  ;;  %v5433_v25 = vpack.c.bf16 %v9830_v8, %v9830_v8  ;;  %v9988_v57 = vcombine.high %v7618_v23, %v7622_v22  ;;  %v7626_v8 = vld [vmem:[%s9738_s14 + $0x1c0] sm:$0xff] }
 0x740   : > { %10748 = vst [vmem:[#allocation21_spill] sm:$0xff] %v9960_v7  ;;  %10749 = vst [vmem:[#allocation22_spill] sm:$0xff] %v9962_v54  ;;  %v9965_v60 = vpop.f32.mrb[29].mxu0  ;;  %v9967_v61 = vpop.f32.mrb[29].mxu1  ;;  %5600 = vmatprep.subr.bf16.mxu0 %v9956_v58 }
 0x741   : > { %10750 = vst [vmem:[#allocation23_spill] sm:$0xff] %v9967_v61 }
 0x746   : > { %5224 = vmatmul.mubr.bf16.vlgmr.msra.gmra.mrb[40].mxu0 %v4909_v19  ;;  %5322 = vmatpush1.bf16.xpose.msra.mxu1 %v9866_v21  ;;  %v7630_v21 = vld [vmem:[%s9738_s14 + $0x1e0] sm:$0xff]  ;;  %v7623_v19 = vld [vmem:[%s9738_s14 + $0x1a8] sm:$0xff] }
 0x747   : > { %5601 = vmatpush1.bf16.xpose.msra.mxu0 %v9972_v14  ;;  %5632 = vmatprep.mubr.bf16.mxu0 %v5433_v25  ;;  %v9998_v59 = vcombine.high %v7626_v8, %v7630_v21  ;;  %v10006_v63 = vcombine.low %v7626_v8, %v7630_v21  ;;  %v7604_v21 = vld [vmem:[%s9738_s14 + $0x110] sm:$0xff] }
 0x748   : > { %5602 = vmatprep.subr.bf16.mxu0 %v9976_v16  ;;  %5323 = vmatprep.subr.bf16.mxu1 %v9872_v35  ;;  %v9996_v35 = vcombine.low %v7618_v23, %v7622_v22  ;;  %v10028_v23 = vcombine.high %v7619_v2, %v7623_v19  ;;  %v10034_v22 = vcombine.low %v7619_v2, %v7623_v19 }
 0x749   : > { %v5434_v2 = vpack.c.bf16 %v9826_v29, %v9826_v29  ;;  %v7628_v29 = vld [vmem:[%s9738_s14 + $0x1d0] sm:$0xff] }
 0x74e   : > { %5324 = vmatpush1.bf16.xpose.msra.mxu1 %v9890_v48  ;;  %v7603_v48 = vld [vmem:[%s9738_s14 + $0x108] sm:$0xff] }
 0x74f   : > { %5603 = vmatpush1.bf16.xpose.msra.mxu0 %v9986_v37  ;;  %5325 = vmatprep.subr.bf16.mxu1 %v9896_v49  ;;  %v7607_v49 = vld [vmem:[%s9738_s14 + $0x128] sm:$0xff] }
 0x750   : > { %5604 = vmatprep.subr.bf16.mxu0 %v9988_v57  ;;  %v10008_v0 = vcombine.high %v7603_v48, %v7607_v49  ;;  %v10014_v20 = vcombine.low %v7603_v48, %v7607_v49  ;;  %v7608_v48 = vld [vmem:[%s9738_s14 + $0x130] sm:$0xff] }
 0x756   : > { %5326 = vmatpush1.bf16.xpose.msra.mxu1 %v9906_v1  ;;  %v7615_v1 = vld [vmem:[%s9738_s14 + $0x168] sm:$0xff] }
 0x757   : > { %5605 = vmatpush1.bf16.xpose.msra.mxu0 %v9996_v35  ;;  %5359 = vmatprep.subr.bf16.mxu1 %v9908_v24  ;;  %v5432_v24 = vpack.c.bf16 %v9824_v6, %v9824_v6  ;;  %v10018_v47 = vcombine.high %v7611_v3, %v7615_v1  ;;  %v10026_v25 = vcombine.low %v7611_v3, %v7615_v1  ;;  %v7627_v6 = vld [vmem:[%s9738_s14 + $0x1c8] sm:$0xff]  ;;  %v7612_v1 = vld [vmem:[%s9738_s14 + $0x150] sm:$0xff] }
 0x758   : > { %5606 = vmatprep.subr.bf16.mxu0 %v9998_v59  ;;  %v10036_v8 = vcombine.high %v7627_v6, %v7631_v9  ;;  %v10042_v49 = vcombine.low %v7627_v6, %v7631_v9  ;;  %v10044_v3 = vcombine.high %v7604_v21, %v7608_v48  ;;  %v5437_v6 = vpack.c.bf16 %v9874_v38, %v9874_v38  ;;  %v7620_v9 = vld [vmem:[%s9738_s14 + $0x190] sm:$0xff] }
 0x759   : > { %v7632_v38 = vld [vmem:[%s9738_s14 + $0x1f0] sm:$0xff] }
 0x75a   : > { %v10088_v27 = vcombine.low %v7628_v29, %v7632_v38 }
 0x75f   : > { %5607 = vmatpush1.bf16.xpose.msra.mxu0 %v10006_v63 }
 0x760   : > { %5640 = vmatprep.subr.bf16.mxu0 %v10008_v0 }
 0x766   : > { %5633 = vmatmul.mubr.bf16.vlgmr.msra.gmra.mrb[44].mxu0 %v5432_v24  ;;  %v7616_v24 = vld [vmem:[%s9738_s14 + $0x170] sm:$0xff] }
 0x767   : > { %5641 = vmatpush1.bf16.xpose.msra.mxu0 %v10014_v20  ;;  %5672 = vmatprep.mubr.bf16.mxu0 %v5435_v62  ;;  %v10050_v62 = vcombine.low %v7604_v21, %v7608_v48  ;;  %v10054_v19 = vcombine.high %v7612_v1, %v7616_v24  ;;  %v10062_v43 = vcombine.low %v7612_v1, %v7616_v24 }
 0x768   : > { %5642 = vmatprep.subr.bf16.mxu0 %v10018_v47  ;;  %v10064_v21 = vcombine.high %v7620_v9, %v7624_v45  ;;  %v10070_v48 = vcombine.low %v7620_v9, %v7624_v45  ;;  %v7605_v9 = vld [vmem:[%s9738_s14 + $0x118] sm:$0xff] }
 0x76f   : > { %5643 = vmatpush1.bf16.xpose.msra.mxu0 %v10026_v25 }
 0x770   : > { %5644 = vmatprep.subr.bf16.mxu0 %v10028_v23 }
 0x777   : > { %5645 = vmatpush1.bf16.xpose.msra.mxu0 %v10034_v22 }
 0x778   : > { %5646 = vmatprep.subr.bf16.mxu0 %v10036_v8 }
 0x77f   : > { %5647 = vmatpush1.bf16.xpose.msra.mxu0 %v10042_v49 }
 0x780   : > { %5680 = vmatprep.subr.bf16.mxu0 %v10044_v3 }
 0x786   : > { %5673 = vmatmul.mubr.bf16.vlgmr.msra.gmra.mrb[44].mxu0 %v5434_v2  ;;  %v10072_v2 = vcombine.high %v7628_v29, %v7632_v38  ;;  %v7613_v38 = vld [vmem:[%s9738_s14 + $0x158] sm:$0xff] }
 0x787   : > { %5681 = vmatpush1.bf16.xpose.msra.mxu0 %v10050_v62  ;;  %5712 = vmatprep.mubr.bf16.mxu0 %v5437_v6 }
 0x788   : > { %5682 = vmatprep.subr.bf16.mxu0 %v10054_v19 }
 0x78f   : > { %5683 = vmatpush1.bf16.xpose.msra.mxu0 %v10062_v43 }
 0x790   : > { %5684 = vmatprep.subr.bf16.mxu0 %v10064_v21 }
 0x795   : > { %v10074_v6 = vpop.f32.mrb[30].mxu0  ;;  %v10076_v51 = vpop.f32.mrb[30].mxu1 }
 0x796   : > { %10751 = vst [vmem:[#allocation24_spill] sm:$0xff] %v10074_v6  ;;  %10752 = vst [vmem:[#allocation25_spill] sm:$0xff] %v10076_v51  ;;  %v10078_v1 = vpop.f32.mrb[31].mxu0  ;;  %v10080_v24 = vpop.f32.mrb[31].mxu1 }
 0x797   : > { %10753 = vst [vmem:[#allocation26_spill] sm:$0xff] %v10078_v1  ;;  %10754 = vst [vmem:[#allocation27_spill] sm:$0xff] %v10080_v24  ;;  %5685 = vmatpush1.bf16.xpose.msra.mxu0 %v10070_v48  ;;  %v10094_v24 = vcombine.high %v7605_v9, %v7609_v28 }
 0x798   : > { %5686 = vmatprep.subr.bf16.mxu0 %v10072_v2 }
 0x799   : > { %v4759_v52 = vpop.f32.mrb[32].mxu0  ;;  %v10084_v50 = vpop.f32.mrb[32].mxu1 }
 0x79a   : > { %v4761_v40 = vpop.f32.mrb[33].mxu0  ;;  %v4850_v45 = vpop.f32.mrb[33].mxu1  ;;  %v5235_v6 = vpack.c.bf16 %v4759_v52, %v4759_v52 }
 0x79b   : > { %v5236_v54 = vpack.c.bf16 %v4761_v40, %v4761_v40  ;;  %v5238_v18 = vpack.c.bf16 %v4850_v45, %v4850_v45 }
 0x79d   : > { %v10090_v51 = vpop.f32.mrb[34].mxu0  ;;  %v10092_v1 = vpop.f32.mrb[34].mxu1  ;;  %5351 = vmatprep.mubr.bf16.mxu1 %v5236_v54 }
 0x79e   : > { %v10096_v61 = vpop.f32.mrb[35].mxu0  ;;  %v10098_v7 = vpop.f32.mrb[35].mxu1  ;;  %5352 = vmatmul.mubr.bf16.vlgmr.msra.gmra.mrb[40].mxu1 %v5235_v6  ;;  %v7617_v6 = vld [vmem:[%s9738_s14 + $0x178] sm:$0xff] }
 0x79f   : > { %5360 = vmatpush1.bf16.xpose.msra.mxu1 %v9916_v17  ;;  %5687 = vmatpush1.bf16.xpose.msra.mxu0 %v10088_v27  ;;  %v10114_v17 = vcombine.low %v7605_v9, %v7609_v28  ;;  %v7621_v28 = vld [vmem:[%s9738_s14 + $0x198] sm:$0xff] }
 0x7a0   : > { %5391 = vmatprep.mubr.bf16.mxu1 %v5238_v18  ;;  %5361 = vmatprep.subr.bf16.mxu1 %v9918_v31  ;;  %v5436_v18 = vpack.c.bf16 %v9868_v36, %v9868_v36  ;;  %v7625_v36 = vld [vmem:[%s9738_s14 + $0x1b8] sm:$0xff] }
 0x7a1   : > { %v10103_v40 = vpop.f32.mrb[36].mxu0  ;;  %v10105_v52 = vpop.f32.mrb[36].mxu1  ;;  %5720 = vmatprep.subr.bf16.mxu0 %v10094_v24  ;;  %v10138_v9 = vcombine.high %v7621_v28, %v7625_v36 }
 0x7a2   : > { %10755 = vst [vmem:[#allocation28_spill] sm:$0xff] %v10103_v40  ;;  %10756 = vst [vmem:[#allocation29_spill] sm:$0xff] %v10105_v52  ;;  %v10108_v54 = vpop.f32.mrb[37].mxu0  ;;  %v10110_v29 = vpop.f32.mrb[37].mxu1  ;;  %v10122_v52 = vcombine.high %v7613_v38, %v7617_v6  ;;  %v5439_v40 = vpack.c.bf16 %v9876_v39, %v9876_v39  ;;  %v10136_v39 = vcombine.low %v7613_v38, %v7617_v6 }
 0x7a3   : > { %10757 = vst [vmem:[#allocation30_spill] sm:$0xff] %v10108_v54  ;;  %10758 = vst [vmem:[#allocation31_spill] sm:$0xff] %v10110_v29  ;;  %v5237_v6 = vpack.c.bf16 %v10084_v50, %v10084_v50 }
 0x7a5   : > { %v10118_v31 = vpop.f32.mrb[38].mxu0  ;;  %v10120_v45 = vpop.f32.mrb[38].mxu1 }
 0x7a6   : > { %5713 = vmatmul.mubr.bf16.vlgmr.msra.gmra.mrb[44].mxu0 %v5436_v18  ;;  %v10126_v29 = vpop.f32.mrb[39].mxu0  ;;  %v10128_v54 = vpop.f32.mrb[39].mxu1 }
 0x7a7   : > { %5362 = vmatpush1.bf16.xpose.msra.mxu1 %v9926_v30  ;;  %5721 = vmatpush1.bf16.xpose.msra.mxu0 %v10114_v17  ;;  %v7629_v30 = vld [vmem:[%s9738_s14 + $0x1d8] sm:$0xff] }
 0x7a8   : > { %5752 = vmatprep.mubr.bf16.mxu0 %v5439_v40  ;;  %5363 = vmatprep.subr.bf16.mxu1 %v9928_v32  ;;  %v7633_v32 = vld [vmem:[%s9738_s14 + $0x1f8] sm:$0xff]  ;;  %v10146_v40 = vcombine.low %v7621_v28, %v7625_v36  ;;  %v7678_v36 = vld [vmem:[%s9738_s14 + $0x260] sm:$0xff] }
 0x7a9   : > { %5722 = vmatprep.subr.bf16.mxu0 %v10122_v52  ;;  %v10148_v18 = vcombine.high %v7629_v30, %v7633_v32  ;;  %v10156_v38 = vcombine.low %v7629_v30, %v7633_v32  ;;  %v5438_v30 = vpack.c.bf16 %v9870_v34, %v9870_v34  ;;  %v7686_v34 = vld [vmem:[%s9738_s14 + $0x2a0] sm:$0xff] }
 0x7af   : > { %5364 = vmatpush1.bf16.xpose.msra.mxu1 %v9936_v10  ;;  %5723 = vmatpush1.bf16.xpose.msra.mxu0 %v10136_v39  ;;  %v7666_v10 = vld [vmem:[%s9738_s14 + $0x200] sm:$0xff] }
 0x7b0   : > { %5365 = vmatprep.subr.bf16.mxu1 %v9938_v33  ;;  %5724 = vmatprep.subr.bf16.mxu0 %v10138_v9  ;;  %v7670_v33 = vld [vmem:[%s9738_s14 + $0x220] sm:$0xff] }
 0x7b1   : > { %v10160_v28 = vcombine.high %v7666_v10, %v7670_v33  ;;  %v10170_v50 = vcombine.low %v7666_v10, %v7670_v33 }
 0x7b7   : > { %5366 = vmatpush1.bf16.xpose.msra.mxu1 %v9950_v55  ;;  %5725 = vmatpush1.bf16.xpose.msra.mxu0 %v10146_v40  ;;  %v5761_v55 = vpack.c.bf16 %v9952_v56, %v9952_v56 }
 0x7b8   : > { %5726 = vmatprep.subr.bf16.mxu0 %v10148_v18  ;;  %5768 = vmatprep.subr.bf16.mxu1 %v9956_v58  ;;  %v7674_v58 = vld [vmem:[%s9738_s14 + $0x240] sm:$0xff] }
 0x7b9   : > { %v10174_v56 = vcombine.high %v7674_v58, %v7678_v36  ;;  %v10184_v32 = vcombine.low %v7674_v58, %v7678_v36  ;;  %v5763_v58 = vpack.c.bf16 %v9954_v5, %v9954_v5  ;;  %v5961_v5 = vpack.c.bf16 %v9835_v11, %v9835_v11  ;;  %v7687_v11 = vld [vmem:[%s9738_s14 + $0x2a8] sm:$0xff] }
 0x7be   : > { %5392 = vmatmul.mubr.bf16.vlgmr.msra.gmra.mrb[40].mxu1 %v5237_v6  ;;  %v5760_v6 = vpack.c.bf16 %v9946_v4, %v9946_v4  ;;  %v7675_v4 = vld [vmem:[%s9738_s14 + $0x248] sm:$0xff] }
 0x7bf   : > { %5727 = vmatpush1.bf16.xpose.msra.mxu0 %v10156_v38  ;;  %5769 = vmatpush1.bf16.xpose.msra.mxu1 %v9972_v14  ;;  %v5962_v14 = vpack.c.bf16 %v9840_v13, %v9840_v13  ;;  %v7690_v13 = vld [vmem:[%s9738_s14 + $0x2c0] sm:$0xff] }
 0x7c0   : > { %5800 = vmatprep.mubr.bf16.mxu1 %v5761_v55  ;;  %5770 = vmatprep.subr.bf16.mxu1 %v9976_v16  ;;  %v7682_v16 = vld [vmem:[%s9738_s14 + $0x280] sm:$0xff] }
 0x7c1   : > { %6129 = vmatprep.subr.bf16.mxu0 %v10160_v28  ;;  %v10186_v10 = vcombine.high %v7682_v16, %v7686_v34 }
 0x7c6   : > { %5753 = vmatmul.mubr.bf16.vlgmr.msra.gmra.mrb[44].mxu0 %v5438_v30 }
 0x7c7   : > { %5771 = vmatpush1.bf16.xpose.msra.mxu1 %v9986_v37  ;;  %6130 = vmatpush1.bf16.xpose.msra.mxu0 %v10170_v50  ;;  %v7694_v37 = vld [vmem:[%s9738_s14 + $0x2e0] sm:$0xff] }
 0x7c8   : > { %6161 = vmatprep.mubr.bf16.mxu0 %v5962_v14  ;;  %5772 = vmatprep.subr.bf16.mxu1 %v9988_v57  ;;  %v10194_v57 = vcombine.low %v7682_v16, %v7686_v34  ;;  %v10196_v33 = vcombine.high %v7690_v13, %v7694_v37  ;;  %v10206_v55 = vcombine.low %v7690_v13, %v7694_v37 }
 0x7c9   : > { %6131 = vmatprep.subr.bf16.mxu0 %v10174_v56  ;;  %v5762_v13 = vpack.c.bf16 %v9948_v53, %v9948_v53  ;;  %v7676_v53 = vld [vmem:[%s9738_s14 + $0x250] sm:$0xff] }
 0x7cf   : > { %5773 = vmatpush1.bf16.xpose.msra.mxu1 %v9996_v35  ;;  %6132 = vmatpush1.bf16.xpose.msra.mxu0 %v10184_v32  ;;  %v7667_v35 = vld [vmem:[%s9738_s14 + $0x208] sm:$0xff] }
 0x7d0   : > { %5774 = vmatprep.subr.bf16.mxu1 %v9998_v59  ;;  %6133 = vmatprep.subr.bf16.mxu0 %v10186_v10  ;;  %v7671_v59 = vld [vmem:[%s9738_s14 + $0x228] sm:$0xff] }
 0x7d1   : > { %v10210_v36 = vcombine.high %v7667_v35, %v7671_v59 }
 0x7d7   : > { %5775 = vmatpush1.bf16.xpose.msra.mxu1 %v10006_v63  ;;  %6134 = vmatpush1.bf16.xpose.msra.mxu0 %v10194_v57  ;;  %v7679_v63 = vld [vmem:[%s9738_s14 + $0x268] sm:$0xff] }
 0x7d8   : > { %5808 = vmatprep.subr.bf16.mxu1 %v10008_v0  ;;  %6135 = vmatprep.subr.bf16.mxu0 %v10196_v33  ;;  %v10218_v0 = vcombine.low %v7667_v35, %v7671_v59  ;;  %v10222_v30 = vcombine.high %v7675_v4, %v7679_v63  ;;  %v10232_v14 = vcombine.low %v7675_v4, %v7679_v63 }
 0x7d9   : > { %v5765_v35 = vpack.c.bf16 %v10096_v61, %v10096_v61  ;;  %v5963_v61 = vpack.c.bf16 %v9837_v12, %v9837_v12 }
 0x7de   : > { %5801 = vmatmul.mubr.bf16.vlgmr.msra.gmra.mrb[44].mxu1 %v5760_v6 }
 0x7df   : > { %5809 = vmatpush1.bf16.xpose.msra.mxu1 %v10014_v20  ;;  %5840 = vmatprep.mubr.bf16.mxu1 %v5763_v58  ;;  %v5964_v20 = vpack.c.bf16 %v9842_v15, %v9842_v15  ;;  %v7691_v15 = vld [vmem:[%s9738_s14 + $0x2c8] sm:$0xff]  ;;  %v7688_v58 = vld [vmem:[%s9738_s14 + $0x2b0] sm:$0xff] }
 0x7e0   : > { %6136 = vmatpush1.bf16.xpose.msra.mxu0 %v10206_v55  ;;  %5810 = vmatprep.subr.bf16.mxu1 %v10018_v47  ;;  %v7683_v47 = vld [vmem:[%s9738_s14 + $0x288] sm:$0xff] }
 0x7e1   : > { %6169 = vmatprep.subr.bf16.mxu0 %v10210_v36  ;;  %v10234_v16 = vcombine.high %v7683_v47, %v7687_v11 }
 0x7e7   : > { %6162 = vmatmul.mubr.bf16.vlgmr.msra.gmra.mrb[48].mxu0 %v5961_v5  ;;  %5811 = vmatpush1.bf16.xpose.msra.mxu1 %v10026_v25  ;;  %v7695_v25 = vld [vmem:[%s9738_s14 + $0x2e8] sm:$0xff] }
 0x7e8   : > { %6170 = vmatpush1.bf16.xpose.msra.mxu0 %v10218_v0  ;;  %6201 = vmatprep.mubr.bf16.mxu0 %v5964_v20  ;;  %v10244_v34 = vcombine.high %v7691_v15, %v7695_v25  ;;  %v10254_v37 = vcombine.low %v7691_v15, %v7695_v25  ;;  %v7673_v20 = vld [vmem:[%s9738_s14 + $0x238] sm:$0xff] }
 0x7e9   : > { %5812 = vmatprep.subr.bf16.mxu1 %v10028_v23  ;;  %6171 = vmatprep.subr.bf16.mxu0 %v10222_v30  ;;  %v10242_v23 = vcombine.low %v7683_v47, %v7687_v11  ;;  %v5764_v11 = vpack.c.bf16 %v10090_v51, %v10090_v51  ;;  %v7677_v51 = vld [vmem:[%s9738_s14 + $0x258] sm:$0xff] }
 0x7ef   : > { %5813 = vmatpush1.bf16.xpose.msra.mxu1 %v10034_v22  ;;  %v7668_v22 = vld [vmem:[%s9738_s14 + $0x210] sm:$0xff] }
 0x7f0   : > { %6172 = vmatpush1.bf16.xpose.msra.mxu0 %v10232_v14  ;;  %5814 = vmatprep.subr.bf16.mxu1 %v10036_v8  ;;  %v7672_v8 = vld [vmem:[%s9738_s14 + $0x230] sm:$0xff] }
 0x7f1   : > { %6173 = vmatprep.subr.bf16.mxu0 %v10234_v16  ;;  %v10258_v59 = vcombine.high %v7668_v22, %v7672_v8 }
 0x7f7   : > { %5815 = vmatpush1.bf16.xpose.msra.mxu1 %v10042_v49  ;;  %v7680_v49 = vld [vmem:[%s9738_s14 + $0x270] sm:$0xff] }
 0x7f8   : > { %6174 = vmatpush1.bf16.xpose.msra.mxu0 %v10242_v23  ;;  %5848 = vmatprep.subr.bf16.mxu1 %v10044_v3  ;;  %v10266_v3 = vcombine.low %v7668_v22, %v7672_v8  ;;  %v10270_v6 = vcombine.high %v7676_v53, %v7680_v49  ;;  %v10280_v12 = vcombine.low %v7676_v53, %v7680_v49  ;;  %v7681_v22 = vld [vmem:[%s9738_s14 + $0x278] sm:$0xff] }
 0x7f9   : > { %6175 = vmatprep.subr.bf16.mxu0 %v10244_v34 }
 0x7fe   : > { %5841 = vmatmul.mubr.bf16.vlgmr.msra.gmra.mrb[44].mxu1 %v5762_v13  ;;  %v10320_v13 = vcombine.high %v7677_v51, %v7681_v22 }
 0x7ff   : > { %5849 = vmatpush1.bf16.xpose.msra.mxu1 %v10050_v62  ;;  %5880 = vmatprep.mubr.bf16.mxu1 %v5765_v35  ;;  %v5966_v62 = vpack.c.bf16 %v9884_v46, %v9884_v46  ;;  %v7696_v46 = vld [vmem:[%s9738_s14 + $0x2f0] sm:$0xff]  ;;  %v10330_v35 = vcombine.low %v7677_v51, %v7681_v22 }
 0x800   : > { %6176 = vmatpush1.bf16.xpose.msra.mxu0 %v10254_v37  ;;  %5850 = vmatprep.subr.bf16.mxu1 %v10054_v19  ;;  %v7684_v19 = vld [vmem:[%s9738_s14 + $0x290] sm:$0xff] }
 0x801   : > { %6209 = vmatprep.subr.bf16.mxu0 %v10258_v59  ;;  %v10282_v4 = vcombine.high %v7684_v19, %v7688_v58 }
 0x807   : > { %6202 = vmatmul.mubr.bf16.vlgmr.msra.gmra.mrb[48].mxu0 %v5963_v61  ;;  %5851 = vmatpush1.bf16.xpose.msra.mxu1 %v10062_v43  ;;  %v7692_v43 = vld [vmem:[%s9738_s14 + $0x2d0] sm:$0xff]  ;;  %v5766_v61 = vpack.c.bf16 %v10092_v1, %v10092_v1  ;;  %v7738_v1 = vld [vmem:[%s9738_s14 + $0x340] sm:$0xff] }
 0x808   : > { %6210 = vmatpush1.bf16.xpose.msra.mxu0 %v10266_v3  ;;  %6241 = vmatprep.mubr.bf16.mxu0 %v5966_v62  ;;  %v10292_v63 = vcombine.high %v7692_v43, %v7696_v46  ;;  %v10304_v25 = vcombine.low %v7692_v43, %v7696_v46 }
 0x809   : > { %5852 = vmatprep.subr.bf16.mxu1 %v10064_v21  ;;  %6211 = vmatprep.subr.bf16.mxu0 %v10270_v6  ;;  %v10290_v21 = vcombine.low %v7684_v19, %v7688_v58  ;;  %v6290_v19 = vpack.c.bf16 %v9965_v60, %v9965_v60  ;;  %v5967_v60 = vpack.c.bf16 %v9881_v44, %v9881_v44  ;;  %v7750_v44 = vld [vmem:[%s9738_s14 + $0x3a0] sm:$0xff] }
 0x80f   : > { %5853 = vmatpush1.bf16.xpose.msra.mxu1 %v10070_v48 }
 0x810   : > { %6212 = vmatpush1.bf16.xpose.msra.mxu0 %v10280_v12  ;;  %5854 = vmatprep.subr.bf16.mxu1 %v10072_v2  ;;  %v7669_v2 = vld [vmem:[%s9738_s14 + $0x218] sm:$0xff] }
 0x811   : > { %6213 = vmatprep.subr.bf16.mxu0 %v10282_v4  ;;  %v10316_v8 = vcombine.low %v7669_v2, %v7673_v20 }
 0x817   : > { %5855 = vmatpush1.bf16.xpose.msra.mxu1 %v10088_v27  ;;  %v5767_v27 = vpack.c.bf16 %v10098_v7, %v10098_v7  ;;  %v5965_v7 = vpack.c.bf16 %v9879_v42, %v9879_v42  ;;  %v7689_v42 = vld [vmem:[%s9738_s14 + $0x2b8] sm:$0xff] }
 0x818   : > { %6214 = vmatpush1.bf16.xpose.msra.mxu0 %v10290_v21  ;;  %5888 = vmatprep.subr.bf16.mxu1 %v10094_v24  ;;  %v10308_v24 = vcombine.high %v7669_v2, %v7673_v20  ;;  %v10759_v20 = vld [vmem:[#allocation21_spill] sm:$0xff] }
 0x819   : > { %v10297_v5 = vpop.f32.mrb[40].mxu0  ;;  %6215 = vmatprep.subr.bf16.mxu0 %v10292_v63 }
 0x81a   : > { %v5227_v48 = vpop.f32.mrb[41].mxu0 }
 0x81b   : > { %v5228_v47 = vpop.f32.mrb[42].mxu0 }
 0x81c   : > { %v5229_v15 = vpop.f32.mrb[43].mxu0  ;;  %v6289_v47 = vpack.c.bf16 %v10759_v20, %v10759_v20  ;;  %v7752_v20 = vld [vmem:[%s9738_s14 + $0x3b0] sm:$0xff] }
 0x81d   : > { %v10760_v15 = vld [vmem:[#allocation23_spill] sm:$0xff] }
 0x81e   : > { %5881 = vmatmul.mubr.bf16.vlgmr.msra.gmra.mrb[44].mxu1 %v5764_v11 }
 0x81f   : > { %5889 = vmatpush1.bf16.xpose.msra.mxu1 %v10114_v17  ;;  %5920 = vmatprep.mubr.bf16.mxu1 %v5767_v27  ;;  %v5968_v17 = vpack.c.bf16 %v9886_v41, %v9886_v41  ;;  %v7693_v41 = vld [vmem:[%s9738_s14 + $0x2d8] sm:$0xff]  ;;  %v6292_v27 = vpack.c.bf16 %v10760_v15, %v10760_v15 }
 0x820   : > { %6216 = vmatpush1.bf16.xpose.msra.mxu0 %v10304_v25  ;;  %5890 = vmatprep.subr.bf16.mxu1 %v10122_v52  ;;  %v7685_v52 = vld [vmem:[%s9738_s14 + $0x298] sm:$0xff] }
 0x821   : > { %6249 = vmatprep.subr.bf16.mxu0 %v10308_v24  ;;  %v10332_v53 = vcombine.high %v7685_v52, %v7689_v42 }
 0x827   : > { %6242 = vmatmul.mubr.bf16.vlgmr.msra.gmra.mrb[48].mxu0 %v5965_v7  ;;  %5891 = vmatpush1.bf16.xpose.msra.mxu1 %v10136_v39  ;;  %v7697_v39 = vld [vmem:[%s9738_s14 + $0x2f8] sm:$0xff]  ;;  %v10761_v7 = vld [vmem:[#allocation14_spill] sm:$0xff] }
 0x828   : > { %6250 = vmatpush1.bf16.xpose.msra.mxu0 %v10316_v8  ;;  %6281 = vmatprep.mubr.bf16.mxu0 %v5968_v17  ;;  %v10342_v49 = vcombine.high %v7693_v41, %v7697_v39  ;;  %v10352_v62 = vcombine.low %v7693_v41, %v7697_v39  ;;  %v6490_v17 = vpack.c.bf16 %v10761_v7, %v10761_v7  ;;  %v7751_v41 = vld [vmem:[%s9738_s14 + $0x3a8] sm:$0xff] }
 0x829   : > { %5892 = vmatprep.subr.bf16.mxu1 %v10138_v9  ;;  %6251 = vmatprep.subr.bf16.mxu0 %v10320_v13  ;;  %v10340_v9 = vcombine.low %v7685_v52, %v7689_v42  ;;  %v10762_v42 = vld [vmem:[#allocation16_spill] sm:$0xff] }
 0x82f   : > { %5893 = vmatpush1.bf16.xpose.msra.mxu1 %v10146_v40  ;;  %v7730_v40 = vld [vmem:[%s9738_s14 + $0x300] sm:$0xff] }
 0x830   : > { %6252 = vmatpush1.bf16.xpose.msra.mxu0 %v10330_v35  ;;  %5894 = vmatprep.subr.bf16.mxu1 %v10148_v18  ;;  %v7734_v18 = vld [vmem:[%s9738_s14 + $0x320] sm:$0xff] }
 0x831   : > { %6253 = vmatprep.subr.bf16.mxu0 %v10332_v53  ;;  %v10356_v58 = vcombine.high %v7730_v40, %v7734_v18 }
 0x837   : > { %5895 = vmatpush1.bf16.xpose.msra.mxu1 %v10156_v38  ;;  %v7742_v38 = vld [vmem:[%s9738_s14 + $0x360] sm:$0xff] }
 0x838   : > { %6254 = vmatpush1.bf16.xpose.msra.mxu0 %v10340_v9  ;;  %6297 = vmatprep.subr.bf16.mxu1 %v10160_v28  ;;  %v10364_v28 = vcombine.low %v7730_v40, %v7734_v18  ;;  %v10368_v43 = vcombine.high %v7738_v1, %v7742_v38  ;;  %v10378_v46 = vcombine.low %v7738_v1, %v7742_v38 }
 0x839   : > { %6255 = vmatprep.subr.bf16.mxu0 %v10342_v49 }
 0x83e   : > { %5921 = vmatmul.mubr.bf16.vlgmr.msra.gmra.mrb[44].mxu1 %v5766_v61 }
 0x83f   : > { %6298 = vmatpush1.bf16.xpose.msra.mxu1 %v10170_v50  ;;  %6329 = vmatprep.mubr.bf16.mxu1 %v6290_v19  ;;  %v6491_v50 = vpack.c.bf16 %v9856_v26, %v9856_v26  ;;  %v7754_v26 = vld [vmem:[%s9738_s14 + $0x3c0] sm:$0xff]  ;;  %v10763_v19 = vld [vmem:[#allocation22_spill] sm:$0xff] }
 0x840   : > { %6256 = vmatpush1.bf16.xpose.msra.mxu0 %v10352_v62  ;;  %6299 = vmatprep.subr.bf16.mxu1 %v10174_v56  ;;  %v7746_v56 = vld [vmem:[%s9738_s14 + $0x380] sm:$0xff]  ;;  %v6291_v1 = vpack.c.bf16 %v10763_v19, %v10763_v19 }
 0x841   : > { %6658 = vmatprep.subr.bf16.mxu0 %v10356_v58  ;;  %v10380_v48 = vcombine.high %v7746_v56, %v7750_v44 }
 0x847   : > { %6282 = vmatmul.mubr.bf16.vlgmr.msra.gmra.mrb[48].mxu0 %v5967_v60  ;;  %6300 = vmatpush1.bf16.xpose.msra.mxu1 %v10184_v32  ;;  %v7758_v32 = vld [vmem:[%s9738_s14 + $0x3e0] sm:$0xff]  ;;  %v10764_v60 = vld [vmem:[#allocation30_spill] sm:$0xff] }
 0x848   : > { %6659 = vmatpush1.bf16.xpose.msra.mxu0 %v10364_v28  ;;  %6690 = vmatprep.mubr.bf16.mxu0 %v6491_v50  ;;  %v10390_v2 = vcombine.high %v7754_v26, %v7758_v32  ;;  %v10400_v11 = vcombine.low %v7754_v26, %v7758_v32  ;;  %v6294_v50 = vpack.c.bf16 %v10764_v60, %v10764_v60  ;;  %v10765_v26 = vld [vmem:[#allocation15_spill] sm:$0xff] }
 0x849   : > { %6301 = vmatprep.subr.bf16.mxu1 %v10186_v10  ;;  %6660 = vmatprep.subr.bf16.mxu0 %v10368_v43  ;;  %v10388_v10 = vcombine.low %v7746_v56, %v7750_v44  ;;  %v6492_v32 = vpack.c.bf16 %v10765_v26, %v10765_v26  ;;  %v7745_v60 = vld [vmem:[%s9738_s14 + $0x378] sm:$0xff] }
 0x84f   : > { %6302 = vmatpush1.bf16.xpose.msra.mxu1 %v10194_v57  ;;  %v7731_v57 = vld [vmem:[%s9738_s14 + $0x308] sm:$0xff] }
 0x850   : > { %6661 = vmatpush1.bf16.xpose.msra.mxu0 %v10378_v46  ;;  %6303 = vmatprep.subr.bf16.mxu1 %v10196_v33  ;;  %v7735_v33 = vld [vmem:[%s9738_s14 + $0x328] sm:$0xff] }
 0x851   : > { %6662 = vmatprep.subr.bf16.mxu0 %v10380_v48  ;;  %v10404_v51 = vcombine.high %v7731_v57, %v7735_v33  ;;  %v10412_v22 = vcombine.low %v7731_v57, %v7735_v33  ;;  %v10766_v33 = vld [vmem:[#allocation19_spill] sm:$0xff] }
 0x857   : > { %6304 = vmatpush1.bf16.xpose.msra.mxu1 %v10206_v55  ;;  %v7739_v55 = vld [vmem:[%s9738_s14 + $0x348] sm:$0xff] }
 0x858   : > { %6663 = vmatpush1.bf16.xpose.msra.mxu0 %v10388_v10  ;;  %6337 = vmatprep.subr.bf16.mxu1 %v10210_v36  ;;  %v7743_v36 = vld [vmem:[%s9738_s14 + $0x368] sm:$0xff] }
 0x859   : > { %6664 = vmatprep.subr.bf16.mxu0 %v10390_v2  ;;  %v10416_v52 = vcombine.high %v7739_v55, %v7743_v36  ;;  %v10426_v39 = vcombine.low %v7739_v55, %v7743_v36  ;;  %v7760_v55 = vld [vmem:[%s9738_s14 + $0x3f0] sm:$0xff] }
 0x85e   : > { %6330 = vmatmul.mubr.bf16.vlgmr.msra.gmra.mrb[48].mxu1 %v6289_v47 }
 0x85f   : > { %6338 = vmatpush1.bf16.xpose.msra.mxu1 %v10218_v0  ;;  %6369 = vmatprep.mubr.bf16.mxu1 %v6292_v27  ;;  %v6493_v0 = vpack.c.bf16 %v10762_v42, %v10762_v42  ;;  %v7756_v27 = vld [vmem:[%s9738_s14 + $0x3d0] sm:$0xff] }
 0x860   : > { %6665 = vmatpush1.bf16.xpose.msra.mxu0 %v10400_v11  ;;  %6339 = vmatprep.subr.bf16.mxu1 %v10222_v30  ;;  %v7747_v30 = vld [vmem:[%s9738_s14 + $0x388] sm:$0xff]  ;;  %v10488_v42 = vcombine.high %v7756_v27, %v7760_v55 }
 0x861   : > { %6698 = vmatprep.subr.bf16.mxu0 %v10404_v51  ;;  %v10428_v40 = vcombine.high %v7747_v30, %v7751_v41  ;;  %v10436_v18 = vcombine.low %v7747_v30, %v7751_v41  ;;  %v7737_v30 = vld [vmem:[%s9738_s14 + $0x338] sm:$0xff] }
 0x867   : > { %6691 = vmatmul.mubr.bf16.vlgmr.msra.gmra.mrb[52].mxu0 %v6490_v17  ;;  %6340 = vmatpush1.bf16.xpose.msra.mxu1 %v10232_v14  ;;  %v7755_v14 = vld [vmem:[%s9738_s14 + $0x3c8] sm:$0xff] }
 0x868   : > { %6699 = vmatpush1.bf16.xpose.msra.mxu0 %v10412_v22  ;;  %6730 = vmatprep.mubr.bf16.mxu0 %v6493_v0  ;;  %v7733_v0 = vld [vmem:[%s9738_s14 + $0x318] sm:$0xff] }
 0x869   : > { %6341 = vmatprep.subr.bf16.mxu1 %v10234_v16  ;;  %6700 = vmatprep.subr.bf16.mxu0 %v10416_v52  ;;  %v7759_v16 = vld [vmem:[%s9738_s14 + $0x3e8] sm:$0xff]  ;;  %v10503_v19 = vcombine.high %v7733_v0, %v7737_v30 }
 0x86a   : > { %v10438_v61 = vcombine.high %v7755_v14, %v7759_v16  ;;  %v10448_v38 = vcombine.low %v7755_v14, %v7759_v16  ;;  %v10767_v14 = vld [vmem:[#allocation28_spill] sm:$0xff] }
 0x86b   : > { %v6293_v16 = vpack.c.bf16 %v10767_v14, %v10767_v14 }
 0x86f   : > { %6342 = vmatpush1.bf16.xpose.msra.mxu1 %v10242_v23  ;;  %v7732_v23 = vld [vmem:[%s9738_s14 + $0x310] sm:$0xff] }
 0x870   : > { %6701 = vmatpush1.bf16.xpose.msra.mxu0 %v10426_v39  ;;  %6343 = vmatprep.subr.bf16.mxu1 %v10244_v34  ;;  %v7736_v34 = vld [vmem:[%s9738_s14 + $0x330] sm:$0xff] }
 0x871   : > { %6702 = vmatprep.subr.bf16.mxu0 %v10428_v40  ;;  %v10452_v56 = vcombine.high %v7732_v23, %v7736_v34  ;;  %v10460_v44 = vcombine.low %v7732_v23, %v7736_v34  ;;  %v10768_v34 = vld [vmem:[#allocation31_spill] sm:$0xff] }
 0x877   : > { %6344 = vmatpush1.bf16.xpose.msra.mxu1 %v10254_v37  ;;  %v7740_v37 = vld [vmem:[%s9738_s14 + $0x350] sm:$0xff] }
 0x878   : > { %6703 = vmatpush1.bf16.xpose.msra.mxu0 %v10436_v18  ;;  %6377 = vmatprep.subr.bf16.mxu1 %v10258_v59  ;;  %v7744_v59 = vld [vmem:[%s9738_s14 + $0x370] sm:$0xff] }
 0x879   : > { %6704 = vmatprep.subr.bf16.mxu0 %v10438_v61  ;;  %v10464_v57 = vcombine.high %v7740_v37, %v7744_v59  ;;  %v10474_v47 = vcombine.low %v7740_v37, %v7744_v59  ;;  %v10769_v37 = vld [vmem:[#allocation17_spill] sm:$0xff] }
 0x87a   : > { %v6494_v59 = vpack.c.bf16 %v10769_v37, %v10769_v37 }
 0x87e   : > { %6370 = vmatmul.mubr.bf16.vlgmr.msra.gmra.mrb[48].mxu1 %v6291_v1  ;;  %v7741_v1 = vld [vmem:[%s9738_s14 + $0x358] sm:$0xff] }
 0x87f   : > { %6378 = vmatpush1.bf16.xpose.msra.mxu1 %v10266_v3  ;;  %6409 = vmatprep.mubr.bf16.mxu1 %v6294_v50  ;;  %v6495_v3 = vpack.c.bf16 %v10766_v33, %v10766_v33  ;;  %v10511_v50 = vcombine.low %v7733_v0, %v7737_v30  ;;  %v10515_v26 = vcombine.high %v7741_v1, %v7745_v60  ;;  %v7753_v33 = vld [vmem:[%s9738_s14 + $0x3b8] sm:$0xff] }
 0x880   : > { %6705 = vmatpush1.bf16.xpose.msra.mxu0 %v10448_v38  ;;  %6379 = vmatprep.subr.bf16.mxu1 %v10270_v6  ;;  %v7748_v6 = vld [vmem:[%s9738_s14 + $0x390] sm:$0xff] }
 0x881   : > { %6738 = vmatprep.subr.bf16.mxu0 %v10452_v56  ;;  %v10476_v15 = vcombine.high %v7748_v6, %v7752_v20  ;;  %v10486_v17 = vcombine.low %v7748_v6, %v7752_v20  ;;  %v7761_v20 = vld [vmem:[%s9738_s14 + $0x3f8] sm:$0xff] }
 0x887   : > { %6731 = vmatmul.mubr.bf16.vlgmr.msra.gmra.mrb[52].mxu0 %v6492_v32  ;;  %6380 = vmatpush1.bf16.xpose.msra.mxu1 %v10280_v12  ;;  %v10770_v32 = vld [vmem:[#allocation20_spill] sm:$0xff] }
 0x888   : > { %6739 = vmatpush1.bf16.xpose.msra.mxu0 %v10460_v44  ;;  %6770 = vmatprep.mubr.bf16.mxu0 %v6495_v3  ;;  %v10525_v3 = vcombine.low %v7741_v1, %v7745_v60 }
 0x889   : > { %6381 = vmatprep.subr.bf16.mxu1 %v10282_v4  ;;  %6740 = vmatprep.subr.bf16.mxu0 %v10464_v57 }
 0x88f   : > { %6382 = vmatpush1.bf16.xpose.msra.mxu1 %v10290_v21 }
 0x890   : > { %6741 = vmatpush1.bf16.xpose.msra.mxu0 %v10474_v47  ;;  %6383 = vmatprep.subr.bf16.mxu1 %v10292_v63 }
 0x891   : > { %v10481_v12 = vpop.f32.mrb[40].mxu1  ;;  %6742 = vmatprep.subr.bf16.mxu0 %v10476_v15 }
 0x892   : > { %v5395_v4 = vpop.f32.mrb[41].mxu1 }
 0x893   : > { %v5396_v36 = vpop.f32.mrb[42].mxu1 }
 0x894   : > { %v5397_v7 = vpop.f32.mrb[43].mxu1 }
 0x897   : > { %6384 = vmatpush1.bf16.xpose.msra.mxu1 %v10304_v25  ;;  %v10499_v25 = vcombine.low %v7756_v27, %v7760_v55  ;;  %v10772_v55 = vld [vmem:[#allocation26_spill] sm:$0xff] }
 0x898   : > { %6743 = vmatpush1.bf16.xpose.msra.mxu0 %v10486_v17  ;;  %6417 = vmatprep.subr.bf16.mxu1 %v10308_v24  ;;  %v6296_v24 = vpack.c.bf16 %v10768_v34, %v10768_v34  ;;  %v6819_v36 = vpack.c.bf16 %v10772_v55, %v10772_v55 }
 0x899   : > { %v5754_v21 = vpop.f32.mrb[44].mxu0  ;;  %6744 = vmatprep.subr.bf16.mxu0 %v10488_v42 }
 0x89a   : > { %6987 = vrot.lane.b32.xlu1 %v5754_v21, %s8544_s25  ;;  %v5756_v63 = vpop.f32.mrb[45].mxu0 }
 0x89b   : > { %v5757_v41 = vpop.f32.mrb[46].mxu0 }
 0x89c   : > { %v5758_v23 = vpop.f32.mrb[47].mxu0 }
 0x89e   : > { %6410 = vmatmul.mubr.bf16.vlgmr.msra.gmra.mrb[48].mxu1 %v6293_v16 }
 0x89f   : > { %6418 = vmatpush1.bf16.xpose.msra.mxu1 %v10316_v8  ;;  %6449 = vmatprep.mubr.bf16.mxu1 %v6296_v24  ;;  %v6497_v8 = vpack.c.bf16 %v10770_v32, %v10770_v32 }
 0x8a0   : > { %6745 = vmatpush1.bf16.xpose.msra.mxu0 %v10499_v25  ;;  %6419 = vmatprep.subr.bf16.mxu1 %v10320_v13  ;;  %v7749_v13 = vld [vmem:[%s9738_s14 + $0x398] sm:$0xff] }
 0x8a1   : > { %6778 = vmatprep.subr.bf16.mxu0 %v10503_v19  ;;  %v10527_v6 = vcombine.high %v7749_v13, %v7753_v33  ;;  %v10535_v4 = vcombine.low %v7749_v13, %v7753_v33 }
 0x8a7   : > { %6771 = vmatmul.mubr.bf16.vlgmr.msra.gmra.mrb[52].mxu0 %v6494_v59  ;;  %6420 = vmatpush1.bf16.xpose.msra.mxu1 %v10330_v35  ;;  %v7757_v35 = vld [vmem:[%s9738_s14 + $0x3d8] sm:$0xff]  ;;  %s7058_s14 = sshll.u32 %s10594_s13, 4  ;;  %s10635_s14 = int_to_ptr.vmem [resolvable:$true] %s7058_s14 }
 0x8a8   : > { %6779 = vmatpush1.bf16.xpose.msra.mxu0 %v10511_v50  ;;  %6810 = vmatprep.mubr.bf16.mxu0 %v6497_v8  ;;  %s8446_s0 = scalar_lea.vmem %s10635_s14, 256  ;;  %p8453_p4 = scmp.lt.s32.totalorder %s10635_s14, %s8451_s24 }
 0x8a9   : > { %6421 = vmatprep.subr.bf16.mxu1 %v10332_v53  ;;  %6780 = vmatprep.subr.bf16.mxu0 %v10515_v26  ;;  %v10537_v53 = vcombine.high %v7757_v35, %v7761_v20  ;;  %p8447_p1 = scmp.ne.s32.totalorder %s10635_s14, %s8446_s0  ;;  %p8454_p5 = scmp.lt.s32.totalorder %s8452_s27, %s8446_s0 }
 0x8ab   : > { %p8448_p2 = pnand %p8447_p1, %p8650_p6  ;;  %p8455_p7 = por %p8454_p5, %p8453_p4 }
 0x8ad   : > { %p8449_p3 = pneg %p8448_p2 }
 0x8af   : > { %6422 = vmatpush1.bf16.xpose.msra.mxu1 %v10340_v9  ;;  %v10771_v9 = vld [vmem:[#allocation29_spill] sm:$0xff]  ;;  %p8456_p9 = pnand %p8455_p7, %p8449_p3 }
 0x8b0   : > { %6781 = vmatpush1.bf16.xpose.msra.mxu0 %v10525_v3  ;;  %6423 = vmatprep.subr.bf16.mxu1 %v10342_v49  ;;  %v6295_v27 = vpack.c.bf16 %v10771_v9, %v10771_v9  ;;  %v10545_v49 = vcombine.low %v7757_v35, %v7761_v20 }
 0x8b1   : > { %6782 = vmatprep.subr.bf16.mxu0 %v10527_v6 }
 0x8b7   : > { %6424 = vmatpush1.bf16.xpose.msra.mxu1 %v10352_v62  ;;  %v10773_v62 = vld [vmem:[#allocation18_spill] sm:$0xff] }
 0x8b8   : > { %6783 = vmatpush1.bf16.xpose.msra.mxu0 %v10535_v4  ;;  %6826 = vmatprep.subr.bf16.mxu1 %v10356_v58  ;;  %v6496_v58 = vpack.c.bf16 %v10773_v62, %v10773_v62 }
 0x8b9   : > { %6784 = vmatprep.subr.bf16.mxu0 %v10537_v53 }
 0x8be   : > { %6450 = vmatmul.mubr.bf16.vlgmr.msra.gmra.mrb[48].mxu1 %v6295_v27 }
 0x8bf   : > { %6827 = vmatpush1.bf16.xpose.msra.mxu1 %v10364_v28  ;;  %6858 = vmatprep.mubr.bf16.mxu1 %v6819_v36  ;;  %v10774_v28 = vld [vmem:[#allocation24_spill] sm:$0xff] }
 0x8c0   : > { %6785 = vmatpush1.bf16.xpose.msra.mxu0 %v10545_v49  ;;  %6828 = vmatprep.subr.bf16.mxu1 %v10368_v43  ;;  %v6818_v7 = vpack.c.bf16 %v10774_v28, %v10774_v28  ;;  %v10775_v43 = vld [vmem:[#allocation27_spill] sm:$0xff] }
 0x8c1   : > { %v6821_v21 = vpack.c.bf16 %v10775_v43, %v10775_v43 }
 0x8c7   : > { %6811 = vmatmul.mubr.bf16.vlgmr.msra.gmra.mrb[52].mxu0 %v6496_v58  ;;  %6829 = vmatpush1.bf16.xpose.msra.mxu1 %v10378_v46  ;;  %v10776_v46 = vld [vmem:[#allocation25_spill] sm:$0xff] }
 0x8c8   : > { %6830 = vmatprep.subr.bf16.mxu1 %v10380_v48  ;;  %v6820_v48 = vpack.c.bf16 %v10776_v46, %v10776_v46 }
 0x8cf   : > { %6831 = vmatpush1.bf16.xpose.msra.mxu1 %v10388_v10  ;;  %v6823_v10 = vpack.c.bf16 %v10126_v29, %v10126_v29 }
 0x8d0   : > { %6832 = vmatprep.subr.bf16.mxu1 %v10390_v2  ;;  %v6996_v2 = vld [vmem:[%s10582_s16] sm:$0x3] }
 0x8d7   : > { %6833 = vmatpush1.bf16.xpose.msra.mxu1 %v10400_v11  ;;  %v10777_v11 = vld [vmem:[#allocation12_spill] sm:$0xff] }
 0x8d8   : > { %6866 = vmatprep.subr.bf16.mxu1 %v10404_v51  ;;  %v7001_v29 = vrot.slane %v6996_v2, %v10777_v11 }
 0x8de   : > { %6859 = vmatmul.mubr.bf16.vlgmr.msra.gmra.mrb[52].mxu1 %v6818_v7 }
 0x8df   : > { %6867 = vmatpush1.bf16.xpose.msra.mxu1 %v10412_v22  ;;  %6898 = vmatprep.mubr.bf16.mxu1 %v6821_v21 }
 0x8e0   : > { %6868 = vmatprep.subr.bf16.mxu1 %v10416_v52 }
 0x8e7   : > { %6869 = vmatpush1.bf16.xpose.msra.mxu1 %v10426_v39 }
 0x8e8   : > { %6870 = vmatprep.subr.bf16.mxu1 %v10428_v40 }
 0x8ef   : > { %6871 = vmatpush1.bf16.xpose.msra.mxu1 %v10436_v18 }
 0x8f0   : > { %6872 = vmatprep.subr.bf16.mxu1 %v10438_v61 }
 0x8f7   : > { %6873 = vmatpush1.bf16.xpose.msra.mxu1 %v10448_v38 }
 0x8f8   : > { %6906 = vmatprep.subr.bf16.mxu1 %v10452_v56  ;;  %v6822_v56 = vpack.c.bf16 %v10118_v31, %v10118_v31  ;;  %v7022_v31 = vld [vmem:[%s10582_s16] sm:$0x3]  ;;  %s10633_s16 = scalar_lea.hbm %s10723_s10, %s10729_s30 }
 0x8fe   : > { %6899 = vmatmul.mubr.bf16.vlgmr.msra.gmra.mrb[52].mxu1 %v6820_v48 }
 0x8ff   : > { %6907 = vmatpush1.bf16.xpose.msra.mxu1 %v10460_v44  ;;  %6938 = vmatprep.mubr.bf16.mxu1 %v6823_v10 }
 0x900   : > { %6908 = vmatprep.subr.bf16.mxu1 %v10464_v57  ;;  %v6825_v57 = vpack.c.bf16 %v10128_v54, %v10128_v54  ;;  %v6824_v54 = vpack.c.bf16 %v10120_v45, %v10120_v45 }
 0x907   : > { %6909 = vmatpush1.bf16.xpose.msra.mxu1 %v10474_v47 }
 0x908   : > { %6910 = vmatprep.subr.bf16.mxu1 %v10476_v15  ;;  %v7027_v15 = vrot.slane %v7022_v31, %v10777_v11 }
 0x90c   : > { %v6988_v51 = vpop.permute.xlu1 %6987 }
 0x90d   : > { %v6994_v22 = vsel %vm3553_vm1, %v10297_v5, %v6988_v51 }
 0x90e   : > { %v7008_v52 = vadd.f32 %v7001_v29, %v6994_v22 }
 0x90f   : > { %6911 = vmatpush1.bf16.xpose.msra.mxu1 %v10486_v17 }
 0x910   : > { %7010 = vst [vmem:[%s10594_s13] sm:$0xff] %v7008_v52  ;;  %6912 = vmatprep.subr.bf16.mxu1 %v10488_v42 }
 0x911   : > { %v5922_v39 = vpop.f32.mrb[44].mxu1 }
 0x912   : > { %v5924_v40 = vpop.f32.mrb[45].mxu1  ;;  %7013 = vrot.lane.b32.xlu1 %v5922_v39, %s8544_s25 }
 0x913   : > { %v5925_v18 = vpop.f32.mrb[46].mxu1 }
 0x914   : > { %v5926_v61 = vpop.f32.mrb[47].mxu1 }
 0x917   : > { %6913 = vmatpush1.bf16.xpose.msra.mxu1 %v10499_v25 }
 0x918   : > { %6946 = vmatprep.subr.bf16.mxu1 %v10503_v19 }
 0x91a   : > { %v6283_v5 = vpop.f32.mrb[48].mxu0 }
 0x91b   : > { %v6285_v38 = vpop.f32.mrb[49].mxu0 }
 0x91c   : > { %v6286_v44 = vpop.f32.mrb[50].mxu0 }
 0x91d   : > { %v6287_v47 = vpop.f32.mrb[51].mxu0 }
 0x91e   : > { %6939 = vmatmul.mubr.bf16.vlgmr.msra.gmra.mrb[52].mxu1 %v6822_v56 }
 0x91f   : > { %6947 = vmatpush1.bf16.xpose.msra.mxu1 %v10511_v50  ;;  %6978 = vmatprep.mubr.bf16.mxu1 %v6825_v57 }
 0x920   : > { %6948 = vmatprep.subr.bf16.mxu1 %v10515_v26 }
 0x927   : > { %6949 = vmatpush1.bf16.xpose.msra.mxu1 %v10525_v3 }
 0x928   : > { %6950 = vmatprep.subr.bf16.mxu1 %v10527_v6 }
 0x92f   : > { %6951 = vmatpush1.bf16.xpose.msra.mxu1 %v10535_v4 }
 0x930   : > { %6952 = vmatprep.subr.bf16.mxu1 %v10537_v53 }
 0x937   : > { %6953 = vmatpush1.bf16.xpose.msra.mxu1 %v10545_v49 }
 0x93e   : > { %6979 = vmatmul.mubr.bf16.vlgmr.msra.gmra.mrb[52].mxu1 %v6824_v54 }
 0x984   : > { %v7014_v17 = vpop.permute.xlu1 %7013 }
 0x985   : > { %v7020_v42 = vsel %vm3553_vm1, %v10481_v12, %v7014_v17  ;;  %v10778_v12 = vld [vmem:[#allocation13_spill] sm:$0xff] }
 0x986   : > { %v7034_v63 = vadd.f32 %v7027_v15, %v7020_v42  ;;  %v7005_v34 = vrot.slane %v6996_v2, %v10778_v12 }
 0x988   : > { %7036 = vst [vmem:[%s10620_s12] sm:$0xff] %v7034_v63 }
 0x991   : > { %v6451_v0 = vpop.f32.mrb[48].mxu1 }
 0x992   : > { %v6453_v30 = vpop.f32.mrb[49].mxu1 }
 0x993   : > { %v6454_v45 = vpop.f32.mrb[50].mxu1 }
 0x994   : > { %v6455_v41 = vpop.f32.mrb[51].mxu1 }
 0x99a   : > { %v6812_v14 = vpop.f32.mrb[52].mxu0 }
 0x99b   : > { %6991 = vrot.lane.b32.xlu0 %v6812_v14, %s8544_s25  ;;  %v6814_v16 = vpop.f32.mrb[53].mxu0 }
 0x99c   : > { %v6815_v23 = vpop.f32.mrb[54].mxu0 }
 0x99d   : > { %v6816_v25 = vpop.f32.mrb[55].mxu0 }
 0xa0d   : > { %v6992_v24 = vpop.permute.xlu0 %6991 }
 0xa0e   : > { %v6995_v19 = vsel %vm3553_vm1, %v6283_v5, %v6992_v24 }
 0xa0f   : > { %v7009_v1 = vadd.f32 %v7005_v34, %v6995_v19 }
 0xa11   : > { %7011 = vst [vmem:[%s10594_s13 + $0x8] sm:$0xff] %v7009_v1  ;;  %v6980_v60 = vpop.f32.mrb[52].mxu1 }
 0xa12   : > { %v6982_v50 = vpop.f32.mrb[53].mxu1  ;;  %7017 = vrot.lane.b32.xlu1 %v6980_v60, %s8544_s25 }
 0xa13   : > { %8459 = shalt.err (!%p8456_p9)
}
 0xa14   : > { %s8460_s25 = scalar_lea.hbm %s10633_s16, 256  ;;  %s8464_s1 = scalar_lea.hbm %s10723_s10, 1024 }
 0xa15   : > { %p8461_p10 = scmp.ne.s32.totalorder %s10633_s16, %s8460_s25  ;;  %p8465_p13 = scmp.lt.u32.totalorder %s10633_s16, %s10723_s10 }
 0xa16   : > { %p8466_p0 = scmp.lt.u32.totalorder %s8464_s1, %s8460_s25  ;;  %p8468_p2 = scmp.lt.u32.totalorder %s8460_s25, %s10633_s16 }
 0xa17   : > { %p8462_p11 = pnand %p8461_p10, %p8650_p6 }
 0xa18   : > { %p8467_p1 = por %p8466_p0, %p8465_p13 }
 0xa19   : > { %p8463_p12 = pneg %p8462_p11 }
 0xa1a   : > { %p8469_p3 = por %p8468_p2, %p8467_p1 }
 0xa1c   : > { %p8470_p4 = pnand %p8469_p3, %p8463_p12 }
 0xa1e   : > { %8473 = shalt.err (!%p8470_p4)
}
 0xa1f   : > { %7959 = dma.vmem_to_hbm [thread:$0]  (%p8650_p6), %s10635_s14, 256, %s10633_s16, %s7039_s22   ;;  %v6983_v37 = vpop.f32.mrb[54].mxu1  ;;  %v7031_v26 = vrot.slane %v7022_v31, %v10778_v12 }
 0xa20   : > { %v6984_v59 = vpop.f32.mrb[55].mxu1  ;;  %s7072_s0 = sshll.u32 %s10620_s12, 4  ;;  %s10779_s2 = sshll.u32 %s8628_s21, 8  ;;  %s10671_s0 = int_to_ptr.vmem [resolvable:$true] %s7072_s0 }
 0xa21   : > { %s10669_s25 = scalar_lea.hbm %s10724_s11, %s10779_s2  ;;  %s7044_s14 = scalar_lea.sflag [#allocation9], %s9196_s15 }
 0xa22   : > { %s8474_s16 = scalar_lea.vmem %s10671_s0, 256  ;;  %s8546_s22 = smov [#allocation8]  }
 0xa23   : > { %p8475_p5 = scmp.ne.s32.totalorder %s10671_s0, %s8474_s16  ;;  %s8478_s13 = sshll.u32 %s8546_s22, 4  ;;  %s8479_s13 = int_to_ptr.vmem [resolvable:$false] %s8478_s13 }
 0xa24   : > { %s8480_s21 = scalar_lea.vmem %s8479_s13, 512  ;;  %p8481_p10 = scmp.lt.s32.totalorder %s10671_s0, %s8479_s13 }
 0xa25   : > { %p8476_p7 = pnand %p8475_p5, %p8650_p6  ;;  %p8482_p11 = scmp.lt.s32.totalorder %s8480_s21, %s8474_s16 }
 0xa27   : > { %p8477_p9 = pneg %p8476_p7  ;;  %p8483_p12 = por %p8482_p11, %p8481_p10 }
 0xa29   : > { %p8484_p13 = pnand %p8483_p12, %p8477_p9 }
 0xa84   : > { %v7018_v32 = vpop.permute.xlu1 %7017 }
 0xa85   : > { %v7021_v8 = vsel %vm3553_vm1, %v6451_v0, %v7018_v32 }
 0xa86   : > { %v7035_v13 = vadd.f32 %v7031_v26, %v7021_v8 }
 0xa88   : > { %7037 = vst [vmem:[%s10620_s12 + $0x8] sm:$0xff] %v7035_v13 }
 0xa89   : > { %8487 = shalt.err (!%p8484_p13)
}
 0xa8a   : > { %s8488_s15 = scalar_lea.hbm %s10669_s25, 256  ;;  %s8492_s24 = scalar_lea.hbm %s10724_s11, 1024 }
 0xa8b   : > { %p8489_p0 = scmp.ne.s32.totalorder %s10669_s25, %s8488_s15  ;;  %p8493_p3 = scmp.lt.u32.totalorder %s10669_s25, %s10724_s11 }
 0xa8c   : > { %p8494_p4 = scmp.lt.u32.totalorder %s8492_s24, %s8488_s15  ;;  %p8496_p7 = scmp.lt.u32.totalorder %s8488_s15, %s10669_s25 }
 0xa8d   : > { %p8490_p1 = pnand %p8489_p0, %p8650_p6 }
 0xa8e   : > { %p8495_p5 = por %p8494_p4, %p8493_p3 }
 0xa8f   : > { %p8491_p2 = pneg %p8490_p1 }
 0xa90   : > { %p8497_p9 = por %p8496_p7, %p8495_p5 }
 0xa92   : > { %p8498_p10 = pnand %p8497_p9, %p8491_p2 }
 0xa94   : > { %8501 = shalt.err (!%p8498_p10)
}
 0xa95   : > { %7960 = dma.vmem_to_hbm [thread:$0]  (%p8650_p6), %s10671_s0, 256, %s10669_s25, %s7044_s14  }
 0xa96 PF: > { %p7970_p11 = scmp.ge.s32.totalorder %s8540_s20, 2  ;;  %s7084_s27 = sand.u32 1, %s8528_s17  }
 0xa97   : > { %s7085_s16 = scalar_lea.sflag [#allocation7], %s7084_s27 }
 0xa98   : > { %p7964_p12 = pnand %p7970_p11, %p8654_p8 }
 0xa9a   : > { %8519 = dma.done.wait (!%p7964_p12), %s7085_s16, 256  }
 0xa9b   : > { %8521 = vsyncadd (!%p7964_p12), %s7085_s16, 4294967040  ;;  %s7094_s22 = scalar_lea.sflag [#allocation9], %s7084_s27 }
 0xa9c   : > { %8523 = dma.done.wait (!%p7964_p12), %s7094_s22, 256  }
 0xa9d   : > { %8525 = vsyncadd (!%p7964_p12), %s7094_s22, 4294967040  ;;  %p25_p6 = scmp.ge.s32.totalorder %s8632_s23, 6   ;;  %s10780_s17 = smov %s8532_s18 }
 0xa9e   : > { %s10781_s18 = smov %s8536_s19  ;;  %s10782_s19 = smov %s8644_s26 }
 0xa9f   : > { %s10783_s20 = smov %s8632_s23  ;;  %27 = sbr.rel (!%p25_p6) target bundleno = 9 (0x9), region = 222 }
 0xaa6   :  { %7099 = vsyncpa [#allocation7], 1 }
 0xaa7   :  { %7101 = vsyncpa [#allocation7 + $0x1], 1 }
 0xaa8   :  { %7102 = vsyncpa [#allocation9], 1 }
 0xaa9   :  { %7104 = vsyncpa [#allocation9 + $0x1], 1 }

</bundles_post_ra>
